<compile_context>
chip_gen: v6e
topology: v6e:2x2x1
jax: 0.10.0
libtpu: 0.0.40
codegen_flags: <defaults>
</compile_context>

<pallas_src>
import math
import functools

import jax
import jax.numpy as jnp
from jax.experimental import pallas as pl
from jax.experimental.pallas import tpu as pltpu

VMEM_SPEC = pl.BlockSpec(memory_space=pltpu.MemorySpace.VMEM)
_PARALLEL_1D = pltpu.CompilerParams(dimension_semantics=("parallel",))


def _row_tile(M, tm_max):
    # Second-to-last block dim must be a multiple of 8 OR equal the full array dim.
    return M if M <= tm_max else tm_max


# ----------------------------------------------------------------------------
# Linear (+optional bias, optional ReLU), row-tiled, bf16 MXU inputs
# ----------------------------------------------------------------------------
def _linear_bias_kernel(x_ref, w_ref, b_ref, o_ref, *, relu):
    x = x_ref[...].astype(jnp.bfloat16)
    w = w_ref[...].astype(jnp.bfloat16)
    y = jnp.dot(x, w, preferred_element_type=jnp.float32) + b_ref[...]
    if relu:
        y = jnp.maximum(y, 0.0)
    o_ref[...] = y


def _linear_nobias_kernel(x_ref, w_ref, o_ref):
    x = x_ref[...].astype(jnp.bfloat16)
    w = w_ref[...].astype(jnp.bfloat16)
    o_ref[...] = jnp.dot(x, w, preferred_element_type=jnp.float32)


def pallas_linear(x, w, b=None, relu=False, tm_max=512):
    M, K = x.shape
    N = w.shape[1]
    tm = _row_tile(M, tm_max)
    grid = (pl.cdiv(M, tm),)
    x_spec = pl.BlockSpec((tm, K), lambda i: (i, 0))
    w_spec = pl.BlockSpec((K, N), lambda i: (0, 0))
    o_spec = pl.BlockSpec((tm, N), lambda i: (i, 0))
    if b is None:
        return pl.pallas_call(
            _linear_nobias_kernel,
            out_shape=jax.ShapeDtypeStruct((M, N), jnp.float32),
            grid=grid, in_specs=[x_spec, w_spec], out_specs=o_spec,
            compiler_params=_PARALLEL_1D,
        )(x, w)
    kern = functools.partial(_linear_bias_kernel, relu=relu)
    b_spec = pl.BlockSpec((1, N), lambda i: (0, 0))
    return pl.pallas_call(
        kern, out_shape=jax.ShapeDtypeStruct((M, N), jnp.float32),
        grid=grid, in_specs=[x_spec, w_spec, b_spec], out_specs=o_spec,
        compiler_params=_PARALLEL_1D,
    )(x, w, b.reshape(1, N))


# ----------------------------------------------------------------------------
# LayerNorm (last dim, eps=1e-5), row-tiled
# ----------------------------------------------------------------------------
def _layernorm_kernel(x_ref, g_ref, b_ref, o_ref):
    x = x_ref[...]
    mu = jnp.mean(x, axis=-1, keepdims=True)
    var = jnp.mean(jnp.square(x - mu), axis=-1, keepdims=True)
    o_ref[...] = (x - mu) * jax.lax.rsqrt(var + 1e-5) * g_ref[...] + b_ref[...]


def pallas_layernorm(x2d, gamma, beta, tm_max=1024):
    M, C = x2d.shape
    tm = _row_tile(M, tm_max)
    grid = (pl.cdiv(M, tm),)
    return pl.pallas_call(
        _layernorm_kernel,
        out_shape=jax.ShapeDtypeStruct((M, C), jnp.float32),
        grid=grid,
        in_specs=[pl.BlockSpec((tm, C), lambda i: (i, 0)),
                  pl.BlockSpec((1, C), lambda i: (0, 0)),
                  pl.BlockSpec((1, C), lambda i: (0, 0))],
        out_specs=pl.BlockSpec((tm, C), lambda i: (i, 0)),
        compiler_params=_PARALLEL_1D,
    )(x2d, gamma.reshape(1, C), beta.reshape(1, C))


# ----------------------------------------------------------------------------
# PPEG: folded 7x7 effective depthwise filter (7/5/3 convs + identity), one bias
# ----------------------------------------------------------------------------
def _ppeg_kernel(pad_ref, w_ref, b_ref, o_ref):
    P = pad_ref[...]                       # (B, H+6, W+6, C), zero-padded by 3
    w = w_ref[...]                         # (7, 7, C) effective filter
    H, W = o_ref.shape[1], o_ref.shape[2]
    acc = P[:, 0:H, 0:W, :] * w[0, 0, :]
    for dy in range(7):
        for dx in range(7):
            if dy == 0 and dx == 0:
                continue
            acc = acc + P[:, dy:dy + H, dx:dx + W, :] * w[dy, dx, :]
    o_ref[...] = acc + b_ref[...]


def ppeg(x, Hs, Ws, p):
    B, _, C = x.shape
    cls_tok = x[:, :1]
    feat = x[:, 1:].reshape(B, Hs, Ws, C)                   # NHWC (token n -> (n//W, n%W))
    P = jnp.pad(feat, ((0, 0), (3, 3), (3, 3), (0, 0)))
    # Fold the three depthwise filters + identity into one 7x7 filter, one bias.
    w_eff = p['w7']
    w_eff = w_eff.at[1:6, 1:6, :].add(p['w5'])
    w_eff = w_eff.at[2:5, 2:5, :].add(p['w3'])
    w_eff = w_eff.at[3, 3, :].add(1.0)
    b_eff = (p['b7'] + p['b5'] + p['b3']).reshape(1, 1, 1, C)
    out = pl.pallas_call(
        _ppeg_kernel,
        out_shape=jax.ShapeDtypeStruct((B, Hs, Ws, C), jnp.float32),
        in_specs=[VMEM_SPEC] * 3,
        out_specs=VMEM_SPEC,
    )(P, w_eff, b_eff)
    out = out.reshape(B, Hs * Ws, C)
    return jnp.concatenate([cls_tok, out], axis=1)


# ----------------------------------------------------------------------------
# Nystrom attention core: one (batch*head) group per grid step
# ----------------------------------------------------------------------------
def _softmax_lastdim(s):
    s = s - jnp.max(s, axis=-1, keepdims=True)
    e = jnp.exp(s)
    return e * pl.reciprocal(jnp.sum(e, axis=-1, keepdims=True), approx=True)


def _nystrom_core_kernel(q_ref, k_ref, v_ref, ql_ref, kl_ref, a2_ref, eye_ref,
                         sc_ref, o_ref, *, iters):
    q = q_ref[0]        # (n, d)  already scaled by dim_head**-0.5
    k = k_ref[0]        # (n, d)
    v = v_ref[0]        # (n, d)
    ql = ql_ref[0]      # (m, d)
    kl = kl_ref[0]      # (m, d)
    a2 = a2_ref[0]      # (m, m)  softmax(ql @ kl^T), f32
    eye = eye_ref[...]  # (m, m)
    sc = sc_ref[...]    # (1, 1)  global pinv init scale

    qb, kb, vb = q.astype(jnp.bfloat16), k.astype(jnp.bfloat16), v.astype(jnp.bfloat16)
    qlb, klb = ql.astype(jnp.bfloat16), kl.astype(jnp.bfloat16)

    s1 = jnp.einsum('nd,md->nm', qb, klb, preferred_element_type=jnp.float32)
    s3 = jnp.einsum('md,nd->mn', qlb, kb, preferred_element_type=jnp.float32)
    a1 = _softmax_lastdim(s1)
    a3 = _softmax_lastdim(s3)

    # Moore-Penrose iterative pseudo-inverse of a2 (f32, 6 iterations, as in reference).
    z = a2.T * sc
    for _ in range(iters):
        xz = jnp.dot(a2, z, preferred_element_type=jnp.float32)
        t = 7.0 * eye - xz
        t = 15.0 * eye - jnp.dot(xz, t, preferred_element_type=jnp.float32)
        t = 13.0 * eye - jnp.dot(xz, t, preferred_element_type=jnp.float32)
        z = 0.25 * jnp.dot(z, t, preferred_element_type=jnp.float32)

    # Re-associated output: out = a1 @ (z @ (a3 @ v))   [identical math, far fewer FLOPs]
    av = jnp.dot(a3.astype(jnp.bfloat16), vb, preferred_element_type=jnp.float32)   # (m, d)
    zav = jnp.dot(z, av, preferred_element_type=jnp.float32)                         # (m, d)
    o_ref[0] = jnp.dot(a1.astype(jnp.bfloat16), zav.astype(jnp.bfloat16),
                       preferred_element_type=jnp.float32)


def _resconv_kernel(vpad_ref, w_ref, o_ref):
    # Depthwise (ks, 1) conv along the sequence dim, lane-dense (channels = heads*dim_head).
    vpad = vpad_ref[0]      # (n + ks - 1, inner)
    w = w_ref[...]          # (ks, inner) per-lane tap weights
    n = o_ref.shape[1]
    ks = w.shape[0]
    acc = vpad[0:n, :] * w[0, :]
    for t in range(1, ks):
        acc = acc + vpad[t:t + n, :] * w[t, :]
    o_ref[0] = acc


def nystrom_attention(x, p, *, heads, dim_head, num_landmarks, pinv_iters=6,
                      res_kernel=33):
    B, n, C = x.shape
    inner = heads * dim_head
    m = num_landmarks

    pad = (m - n % m) % m
    xp = jnp.pad(x, ((0, 0), (pad, 0), (0, 0)))              # pad at the front (reference)
    npad = n + pad

    # qkv projection (bias=False in the reference)
    qkv = pallas_linear(xp.reshape(B * npad, C), p['w_qkv'])
    qkv = qkv.reshape(B, npad, 3 * inner)
    q_f = qkv[..., :inner]
    k_f = qkv[..., inner:2 * inner]
    v_f = qkv[..., 2 * inner:]

    # Residual depthwise conv on v, lane-dense layout (B, npad, heads*dim_head).
    padc = res_kernel // 2
    vpad = jnp.pad(v_f, ((0, 0), (padc, padc), (0, 0)))
    w_lane = jnp.repeat(p['w_res'].T, dim_head, axis=1)       # (ks, inner)
    res = pl.pallas_call(
        _resconv_kernel,
        out_shape=jax.ShapeDtypeStruct((B, npad, inner), jnp.float32),
        grid=(B,),
        in_specs=[pl.BlockSpec((1, npad + res_kernel - 1, inner), lambda b: (b, 0, 0)),
                  pl.BlockSpec((res_kernel, inner), lambda b: (0, 0))],
        out_specs=pl.BlockSpec((1, npad, inner), lambda b: (b, 0, 0)),
        compiler_params=_PARALLEL_1D,
    )(vpad, w_lane)

    # Head split.  TODO(synk): fold into the attention kernel grid to avoid HBM transposes.
    def to_heads(t):
        return t.reshape(B, npad, heads, dim_head).transpose(0, 2, 1, 3).reshape(
            B * heads, npad, dim_head)

    q = to_heads(q_f) * (dim_head ** -0.5)
    k = to_heads(k_f)
    v = to_heads(v_f)

    G = B * heads
    l = npad // m
    ql = q.reshape(G, m, l, dim_head).sum(axis=2) / float(l)
    kl = k.reshape(G, m, l, dim_head).sum(axis=2) / float(l)

    # a2 and the global (cross-group) pinv init scale, in f32 to match torch.max semantics.
    s2 = jnp.einsum('gmd,gud->gmu', ql, kl, preferred_element_type=jnp.float32)
    a2 = jax.nn.softmax(s2, axis=-1)
    abs2 = jnp.abs(a2)
    pinv_scale = (1.0 / (jnp.max(jnp.sum(abs2, axis=-1)) *
                         jnp.max(jnp.sum(abs2, axis=-2)))).reshape(1, 1).astype(jnp.float32)

    eye = jnp.eye(m, dtype=jnp.float32)

    # TODO(synk): for very long sequences on v7x, additionally tile the n dimension
    # (flash-style online softmax for a3) to stay within the 64 MiB VMEM budget.
    core = functools.partial(_nystrom_core_kernel, iters=pinv_iters)
    out = pl.pallas_call(
        core,
        out_shape=jax.ShapeDtypeStruct((G, npad, dim_head), jnp.float32),
        grid=(G,),
        in_specs=[
            pl.BlockSpec((1, npad, dim_head), lambda g: (g, 0, 0)),   # q
            pl.BlockSpec((1, npad, dim_head), lambda g: (g, 0, 0)),   # k
            pl.BlockSpec((1, npad, dim_head), lambda g: (g, 0, 0)),   # v
            pl.BlockSpec((1, m, dim_head), lambda g: (g, 0, 0)),      # ql
            pl.BlockSpec((1, m, dim_head), lambda g: (g, 0, 0)),      # kl
            pl.BlockSpec((1, m, m), lambda g: (g, 0, 0)),             # a2
            pl.BlockSpec((m, m), lambda g: (0, 0)),                   # eye
            pl.BlockSpec((1, 1), lambda g: (0, 0)),                   # pinv scale
        ],
        out_specs=pl.BlockSpec((1, npad, dim_head), lambda g: (g, 0, 0)),
        compiler_params=_PARALLEL_1D,
    )(q, k, v, ql, kl, a2, eye, pinv_scale)

    # Merge heads back, add residual conv, project out.
    out = out.reshape(B, heads, npad, dim_head).transpose(0, 2, 1, 3).reshape(B, npad, inner)
    out = out + res
    out = pallas_linear(out.reshape(B * npad, inner), p['w_out'], p['b_out'])
    out = out.reshape(B, npad, C)
    return out[:, -n:]                                        # drop the front padding


def trans_layer(x, p, *, heads):
    B, n, C = x.shape
    y = pallas_layernorm(x.reshape(B * n, C), p['ln_g'], p['ln_b']).reshape(B, n, C)
    attn = nystrom_attention(y, p, heads=heads, dim_head=C // 8,
                             num_landmarks=C // 2, pinv_iters=6)
    return x + attn


# ----------------------------------------------------------------------------
# Full TransMIL forward
# ----------------------------------------------------------------------------
def transmil_forward(h, params):
    B, N, Din = h.shape
    C = params['fc1_w'].shape[1]
    heads = 8

    # _fc1: Linear + ReLU
    h = pallas_linear(h.reshape(B * N, Din), params['fc1_w'], params['fc1_b'],
                      relu=True).reshape(B, N, C)

    Hlen = h.shape[1]
    _H = _W = int(math.ceil(math.sqrt(Hlen)))
    add_length = _H * _W - Hlen
    if add_length > 0:
        h = jnp.concatenate([h, h[:, :add_length, :]], axis=1)

    cls_tokens = jnp.broadcast_to(params['cls_token'], (B, 1, C))
    h = jnp.concatenate([cls_tokens, h], axis=1)

    h = trans_layer(h, params['layer1'], heads=heads)
    h = ppeg(h, _H, _W, params['ppeg'])
    h = trans_layer(h, params['layer2'], heads=heads)

    # TODO(synk): modify()/mfc() depends on DownSample, MultiLevelFuse,
    # FeatureFreProcessing, InstanceMemory, InterventionOnline which are not
    # defined in the provided source; left as identity rather than faked.

    h_norm = pallas_layernorm(h.reshape(-1, C), params['norm_g'],
                              params['norm_b']).reshape(h.shape)
    bag = h_norm[:, 0]                                        # (B, C)
    logits = pallas_linear(bag, params['fc2_w'], params['fc2_b'])
    Y_hat = jnp.argmax(logits, axis=1)
    Y_prob = jax.nn.softmax(logits, axis=1)
    return {'logits': logits, 'Y_prob': Y_prob, 'Y_hat': Y_hat, 'bag_feature': bag}


# ----------------------------------------------------------------------------
# Deterministic parameter init (synthetic weights, shapes match the module)
# ----------------------------------------------------------------------------
def init_params(key, input_dim, embed_dim, heads=8, res_kernel=33):
    assert embed_dim % 8 == 0
    keys = iter(jax.random.split(key, 16))

    def nrm(shape, scale=0.02):
        return (scale * jax.random.normal(next(keys), shape)).astype(jnp.float32)

    def attn_layer():
        inner = heads * (embed_dim // heads)
        return {
            'ln_g': jnp.ones((embed_dim,), jnp.float32),
            'ln_b': jnp.zeros((embed_dim,), jnp.float32),
            'w_qkv': nrm((embed_dim, 3 * inner)),
            'w_out': nrm((inner, embed_dim)),
            'b_out': jnp.zeros((embed_dim,), jnp.float32),
            'w_res': nrm((heads, res_kernel)),
        }

    return {
        'fc1_w': nrm((input_dim, embed_dim)),
        'fc1_b': jnp.zeros((embed_dim,), jnp.float32),
        'cls_token': nrm((1, 1, embed_dim), scale=1.0),
        'layer1': attn_layer(),
        'layer2': attn_layer(),
        'ppeg': {
            'w7': nrm((7, 7, embed_dim)), 'b7': jnp.zeros((embed_dim,), jnp.float32),
            'w5': nrm((5, 5, embed_dim)), 'b5': jnp.zeros((embed_dim,), jnp.float32),
            'w3': nrm((3, 3, embed_dim)), 'b3': jnp.zeros((embed_dim,), jnp.float32),
        },
        'norm_g': jnp.ones((embed_dim,), jnp.float32),
        'norm_b': jnp.zeros((embed_dim,), jnp.float32),
        'fc2_w': nrm((embed_dim, 2)),
        'fc2_b': jnp.zeros((2,), jnp.float32),
    }


if __name__ == "__main__":
    B, N_INST, INPUT_DIM, EMBED_DIM = 2, 9, 48, 64

    key = jax.random.PRNGKey(0)
    k_in, k_par = jax.random.split(key)
    x = jax.random.normal(k_in, (B, N_INST, INPUT_DIM), dtype=jnp.float32)
    params = init_params(k_par, INPUT_DIM, EMBED_DIM)

    fwd = jax.jit(transmil_forward)
    out = fwd(x, params)
    out = jax.block_until_ready(out)

    assert out['logits'].shape == (B, 2)
    assert out['Y_prob'].shape == (B, 2)
    assert out['Y_hat'].shape == (B,)
    assert out['bag_feature'].shape == (B, EMBED_DIM)
    assert bool(jnp.all(jnp.isfinite(out['logits'])))
    print("KERNEL_OK")
</pallas_src>

<mosaic_0001>
module attributes {stable_mosaic.version = 11 : i64} {
  func.func @_linear_bias_kernel(%arg0: i32, %arg1: memref<18x48xf32, #tpu.memory_space<vmem>>, %arg2: memref<48x64xf32, #tpu.memory_space<vmem>>, %arg3: memref<1x64xf32, #tpu.memory_space<vmem>>, %arg4: memref<18x64xf32, #tpu.memory_space<vmem>>) attributes {dimension_semantics = [#tpu.dimension_semantics<parallel>], iteration_bounds = array<i64: 1>, scalar_prefetch = 0 : i64, scratch_operands = 0 : i64, tpu.core_type = #tpu.core_type<tc>, window_params = [{transform_indices = @transform_0, window_bounds = array<i64: 18, 48>}, {pipeline_mode = #tpu.pipeline_mode<synchronous>, transform_indices = @transform_1, window_bounds = array<i64: 48, 64>}, {pipeline_mode = #tpu.pipeline_mode<synchronous>, transform_indices = @transform_2, window_bounds = array<i64: 1, 64>}, {transform_indices = @transform_3, window_bounds = array<i64: 18, 64>}]} {
    %c0 = arith.constant 0 : index
    %c0_0 = arith.constant 0 : index
    %0 = vector.load %arg1[%c0, %c0_0] : memref<18x48xf32, #tpu.memory_space<vmem>>, vector<18x48xf32>
    %1 = arith.truncf %0 : vector<18x48xf32> to vector<18x48xbf16>
    %c0_1 = arith.constant 0 : index
    %c0_2 = arith.constant 0 : index
    %2 = vector.load %arg2[%c0_1, %c0_2] : memref<48x64xf32, #tpu.memory_space<vmem>>, vector<48x64xf32>
    %3 = arith.truncf %2 : vector<48x64xf32> to vector<48x64xbf16>
    %cst = arith.constant dense<0.000000e+00> : vector<18x64xf32>
    %4 = tpu.matmul %1, %3, %cst {dimension_numbers = #tpu.dot_dimension_numbers<[1], [0], [0], [1], [0, 0, 1, 1], [], []>} : vector<18x48xbf16>, vector<48x64xbf16>, vector<18x64xf32> -> vector<18x64xf32>
    %c0_3 = arith.constant 0 : index
    %c0_4 = arith.constant 0 : index
    %5 = vector.load %arg3[%c0_3, %c0_4] : memref<1x64xf32, #tpu.memory_space<vmem>>, vector<1x64xf32>
    %6 = vector.broadcast %5 : vector<1x64xf32> to vector<18x64xf32>
    %7 = arith.addf %4, %6 : vector<18x64xf32>
    %cst_5 = arith.constant 0.000000e+00 : f32
    %8 = vector.broadcast %cst_5 : f32 to vector<18x64xf32>
    %9 = arith.maximumf %7, %8 : vector<18x64xf32>
    %c0_6 = arith.constant 0 : index
    %c0_7 = arith.constant 0 : index
    %10 = vector.load %arg4[%c0_6, %c0_7] : memref<18x64xf32, #tpu.memory_space<vmem>>, vector<18x64xf32>
    tpu.vector_store %arg4[%c0_6, %c0_7], %9 {strides = array<i32>} : memref<18x64xf32, #tpu.memory_space<vmem>>, vector<18x64xf32>,
    return
  }
  func.func @transform_0(%arg0: i32) -> (i32, i32) {
    %c0_i32 = arith.constant 0 : i32
    %c0_i32_0 = arith.constant 0 : i32
    return %arg0, %c0_i32 : i32, i32
  }
  func.func @transform_1(%arg0: i32) -> (i32, i32) {
    %c0_i32 = arith.constant 0 : i32
    %c0_i32_0 = arith.constant 0 : i32
    %c0_i32_1 = arith.constant 0 : i32
    return %c0_i32, %c0_i32_0 : i32, i32
  }
  func.func @transform_2(%arg0: i32) -> (i32, i32) {
    %c0_i32 = arith.constant 0 : i32
    %c0_i32_0 = arith.constant 0 : i32
    %c0_i32_1 = arith.constant 0 : i32
    return %c0_i32, %c0_i32_0 : i32, i32
  }
  func.func @transform_3(%arg0: i32) -> (i32, i32) {
    %c0_i32 = arith.constant 0 : i32
    %c0_i32_0 = arith.constant 0 : i32
    return %arg0, %c0_i32 : i32, i32
  }
}

module attributes {stable_mosaic.version = 11 : i64} {
  func.func @_layernorm_kernel(%arg0: i32, %arg1: memref<20x64xf32, #tpu.memory_space<vmem>>, %arg2: memref<1x64xf32, #tpu.memory_space<vmem>>, %arg3: memref<1x64xf32, #tpu.memory_space<vmem>>, %arg4: memref<20x64xf32, #tpu.memory_space<vmem>>) attributes {dimension_semantics = [#tpu.dimension_semantics<parallel>], iteration_bounds = array<i64: 1>, scalar_prefetch = 0 : i64, scratch_operands = 0 : i64, tpu.core_type = #tpu.core_type<tc>, window_params = [{transform_indices = @transform_0, window_bounds = array<i64: 20, 64>}, {pipeline_mode = #tpu.pipeline_mode<synchronous>, transform_indices = @transform_1, window_bounds = array<i64: 1, 64>}, {pipeline_mode = #tpu.pipeline_mode<synchronous>, transform_indices = @transform_2, window_bounds = array<i64: 1, 64>}, {transform_indices = @transform_3, window_bounds = array<i64: 20, 64>}]} {
    %c0 = arith.constant 0 : index
    %c0_0 = arith.constant 0 : index
    %0 = vector.load %arg1[%c0, %c0_0] : memref<20x64xf32, #tpu.memory_space<vmem>>, vector<20x64xf32>
    %cst = arith.constant dense<0.000000e+00> : vector<20xf32>
    %1 = vector.multi_reduction <add>, %0, %cst [1] : vector<20x64xf32> to vector<20xf32>
    %2 = vector.shape_cast %1 : vector<20xf32> to vector<20x1xf32>
    %cst_1 = arith.constant 6.400000e+01 : f32
    %3 = vector.broadcast %cst_1 : f32 to vector<20x1xf32>
    %4 = arith.divf %2, %3 : vector<20x1xf32>
    %5 = vector.broadcast %4 : vector<20x1xf32> to vector<20x64xf32>
    %6 = arith.subf %0, %5 : vector<20x64xf32>
    %7 = arith.mulf %6, %6 : vector<20x64xf32>
    %cst_2 = arith.constant dense<0.000000e+00> : vector<20xf32>
    %8 = vector.multi_reduction <add>, %7, %cst_2 [1] : vector<20x64xf32> to vector<20xf32>
    %9 = vector.shape_cast %8 : vector<20xf32> to vector<20x1xf32>
    %cst_3 = arith.constant 6.400000e+01 : f32
    %10 = vector.broadcast %cst_3 : f32 to vector<20x1xf32>
    %11 = arith.divf %9, %10 : vector<20x1xf32>
    %12 = vector.broadcast %4 : vector<20x1xf32> to vector<20x64xf32>
    %13 = arith.subf %0, %12 : vector<20x64xf32>
    %cst_4 = arith.constant 9.99999974E-6 : f32
    %14 = vector.broadcast %cst_4 : f32 to vector<20x1xf32>
    %15 = arith.addf %11, %14 : vector<20x1xf32>
    %16 = math.rsqrt %15 : vector<20x1xf32>
    %17 = vector.broadcast %16 : vector<20x1xf32> to vector<20x64xf32>
    %18 = arith.mulf %13, %17 : vector<20x64xf32>
    %c0_5 = arith.constant 0 : index
    %c0_6 = arith.constant 0 : index
    %19 = vector.load %arg2[%c0_5, %c0_6] : memref<1x64xf32, #tpu.memory_space<vmem>>, vector<1x64xf32>
    %20 = vector.broadcast %19 : vector<1x64xf32> to vector<20x64xf32>
    %21 = arith.mulf %18, %20 : vector<20x64xf32>
    %c0_7 = arith.constant 0 : index
    %c0_8 = arith.constant 0 : index
    %22 = vector.load %arg3[%c0_7, %c0_8] : memref<1x64xf32, #tpu.memory_space<vmem>>, vector<1x64xf32>
    %23 = vector.broadcast %22 : vector<1x64xf32> to vector<20x64xf32>
    %24 = arith.addf %21, %23 : vector<20x64xf32>
    %c0_9 = arith.constant 0 : index
    %c0_10 = arith.constant 0 : index
    %25 = vector.load %arg4[%c0_9, %c0_10] : memref<20x64xf32, #tpu.memory_space<vmem>>, vector<20x64xf32>
    tpu.vector_store %arg4[%c0_9, %c0_10], %24 {strides = array<i32>} : memref<20x64xf32, #tpu.memory_space<vmem>>, vector<20x64xf32>,
    return
  }
  func.func @transform_0(%arg0: i32) -> (i32, i32) {
    %c0_i32 = arith.constant 0 : i32
    %c0_i32_0 = arith.constant 0 : i32
    return %arg0, %c0_i32 : i32, i32
  }
  func.func @transform_1(%arg0: i32) -> (i32, i32) {
    %c0_i32 = arith.constant 0 : i32
    %c0_i32_0 = arith.constant 0 : i32
    %c0_i32_1 = arith.constant 0 : i32
    return %c0_i32, %c0_i32_0 : i32, i32
  }
  func.func @transform_2(%arg0: i32) -> (i32, i32) {
    %c0_i32 = arith.constant 0 : i32
    %c0_i32_0 = arith.constant 0 : i32
    %c0_i32_1 = arith.constant 0 : i32
    return %c0_i32, %c0_i32_0 : i32, i32
  }
  func.func @transform_3(%arg0: i32) -> (i32, i32) {
    %c0_i32 = arith.constant 0 : i32
    %c0_i32_0 = arith.constant 0 : i32
    return %arg0, %c0_i32 : i32, i32
  }
}

module attributes {stable_mosaic.version = 11 : i64} {
  func.func @_linear_nobias_kernel(%arg0: i32, %arg1: memref<64x64xf32, #tpu.memory_space<vmem>>, %arg2: memref<64x192xf32, #tpu.memory_space<vmem>>, %arg3: memref<64x192xf32, #tpu.memory_space<vmem>>) attributes {dimension_semantics = [#tpu.dimension_semantics<parallel>], iteration_bounds = array<i64: 1>, scalar_prefetch = 0 : i64, scratch_operands = 0 : i64, tpu.core_type = #tpu.core_type<tc>, window_params = [{transform_indices = @transform_0, window_bounds = array<i64: 64, 64>}, {pipeline_mode = #tpu.pipeline_mode<synchronous>, transform_indices = @transform_1, window_bounds = array<i64: 64, 192>}, {transform_indices = @transform_2, window_bounds = array<i64: 64, 192>}]} {
    %c0 = arith.constant 0 : index
    %c0_0 = arith.constant 0 : index
    %0 = vector.load %arg1[%c0, %c0_0] : memref<64x64xf32, #tpu.memory_space<vmem>>, vector<64x64xf32>
    %1 = arith.truncf %0 : vector<64x64xf32> to vector<64x64xbf16>
    %c0_1 = arith.constant 0 : index
    %c0_2 = arith.constant 0 : index
    %2 = vector.load %arg2[%c0_1, %c0_2] : memref<64x192xf32, #tpu.memory_space<vmem>>, vector<64x192xf32>
    %3 = arith.truncf %2 : vector<64x192xf32> to vector<64x192xbf16>
    %cst = arith.constant dense<0.000000e+00> : vector<64x192xf32>
    %4 = tpu.matmul %1, %3, %cst {dimension_numbers = #tpu.dot_dimension_numbers<[1], [0], [0], [1], [0, 0, 1, 1], [], []>} : vector<64x64xbf16>, vector<64x192xbf16>, vector<64x192xf32> -> vector<64x192xf32>
    %c0_3 = arith.constant 0 : index
    %c0_4 = arith.constant 0 : index
    %5 = vector.load %arg3[%c0_3, %c0_4] : memref<64x192xf32, #tpu.memory_space<vmem>>, vector<64x192xf32>
    tpu.vector_store %arg3[%c0_3, %c0_4], %4 {strides = array<i32>} : memref<64x192xf32, #tpu.memory_space<vmem>>, vector<64x192xf32>,
    return
  }
  func.func @transform_0(%arg0: i32) -> (i32, i32) {
    %c0_i32 = arith.constant 0 : i32
    %c0_i32_0 = arith.constant 0 : i32
    return %arg0, %c0_i32 : i32, i32
  }
  func.func @transform_1(%arg0: i32) -> (i32, i32) {
    %c0_i32 = arith.constant 0 : i32
    %c0_i32_0 = arith.constant 0 : i32
    %c0_i32_1 = arith.constant 0 : i32
    return %c0_i32, %c0_i32_0 : i32, i32
  }
  func.func @transform_2(%arg0: i32) -> (i32, i32) {
    %c0_i32 = arith.constant 0 : i32
    %c0_i32_0 = arith.constant 0 : i32
    return %arg0, %c0_i32 : i32, i32
  }
}

module attributes {stable_mosaic.version = 11 : i64} {
  func.func @_nystrom_core_kernel(%arg0: i32, %arg1: memref<1x32x8xf32, #tpu.memory_space<vmem>>, %arg2: memref<1x32x8xf32, #tpu.memory_space<vmem>>, %arg3: memref<1x32x8xf32, #tpu.memory_space<vmem>>, %arg4: memref<1x32x8xf32, #tpu.memory_space<vmem>>, %arg5: memref<1x32x8xf32, #tpu.memory_space<vmem>>, %arg6: memref<1x32x32xf32, #tpu.memory_space<vmem>>, %arg7: memref<32x32xf32, #tpu.memory_space<vmem>>, %arg8: memref<1x1xf32, #tpu.memory_space<vmem>>, %arg9: memref<1x32x8xf32, #tpu.memory_space<vmem>>) attributes {dimension_semantics = [#tpu.dimension_semantics<parallel>], iteration_bounds = array<i64: 16>, scalar_prefetch = 0 : i64, scratch_operands = 0 : i64, tpu.core_type = #tpu.core_type<tc>, window_params = [{transform_indices = @transform_0, window_bounds = array<i64: 1, 32, 8>}, {transform_indices = @transform_1, window_bounds = array<i64: 1, 32, 8>}, {transform_indices = @transform_2, window_bounds = array<i64: 1, 32, 8>}, {transform_indices = @transform_3, window_bounds = array<i64: 1, 32, 8>}, {transform_indices = @transform_4, window_bounds = array<i64: 1, 32, 8>}, {transform_indices = @transform_5, window_bounds = array<i64: 1, 32, 32>}, {pipeline_mode = #tpu.pipeline_mode<synchronous>, transform_indices = @transform_6, window_bounds = array<i64: 32, 32>}, {pipeline_mode = #tpu.pipeline_mode<synchronous>, transform_indices = @transform_7, window_bounds = array<i64: 1, 1>}, {transform_indices = @transform_8, window_bounds = array<i64: 1, 32, 8>}]} {
    %c0 = arith.constant 0 : index
    %c0_0 = arith.constant 0 : index
    %c0_1 = arith.constant 0 : index
    %0 = vector.load %arg1[%c0, %c0_0, %c0_1] : memref<1x32x8xf32, #tpu.memory_space<vmem>>, vector<1x32x8xf32>
    %1 = vector.shape_cast %0 : vector<1x32x8xf32> to vector<32x8xf32>
    %c0_2 = arith.constant 0 : index
    %c0_3 = arith.constant 0 : index
    %c0_4 = arith.constant 0 : index
    %2 = vector.load %arg2[%c0_2, %c0_3, %c0_4] : memref<1x32x8xf32, #tpu.memory_space<vmem>>, vector<1x32x8xf32>
    %3 = vector.shape_cast %2 : vector<1x32x8xf32> to vector<32x8xf32>
    %c0_5 = arith.constant 0 : index
    %c0_6 = arith.constant 0 : index
    %c0_7 = arith.constant 0 : index
    %4 = vector.load %arg3[%c0_5, %c0_6, %c0_7] : memref<1x32x8xf32, #tpu.memory_space<vmem>>, vector<1x32x8xf32>
    %5 = vector.shape_cast %4 : vector<1x32x8xf32> to vector<32x8xf32>
    %c0_8 = arith.constant 0 : index
    %c0_9 = arith.constant 0 : index
    %c0_10 = arith.constant 0 : index
    %6 = vector.load %arg4[%c0_8, %c0_9, %c0_10] : memref<1x32x8xf32, #tpu.memory_space<vmem>>, vector<1x32x8xf32>
    %7 = vector.shape_cast %6 : vector<1x32x8xf32> to vector<32x8xf32>
    %c0_11 = arith.constant 0 : index
    %c0_12 = arith.constant 0 : index
    %c0_13 = arith.constant 0 : index
    %8 = vector.load %arg5[%c0_11, %c0_12, %c0_13] : memref<1x32x8xf32, #tpu.memory_space<vmem>>, vector<1x32x8xf32>
    %9 = vector.shape_cast %8 : vector<1x32x8xf32> to vector<32x8xf32>
    %c0_14 = arith.constant 0 : index
    %c0_15 = arith.constant 0 : index
    %c0_16 = arith.constant 0 : index
    %10 = vector.load %arg6[%c0_14, %c0_15, %c0_16] : memref<1x32x32xf32, #tpu.memory_space<vmem>>, vector<1x32x32xf32>
    %11 = vector.shape_cast %10 : vector<1x32x32xf32> to vector<32x32xf32>
    %c0_17 = arith.constant 0 : index
    %c0_18 = arith.constant 0 : index
    %12 = vector.load %arg7[%c0_17, %c0_18] : memref<32x32xf32, #tpu.memory_space<vmem>>, vector<32x32xf32>
    %c0_19 = arith.constant 0 : index
    %c0_20 = arith.constant 0 : index
    %13 = vector.load %arg8[%c0_19, %c0_20] : memref<1x1xf32, #tpu.memory_space<vmem>>, vector<1x1xf32>
    %14 = arith.truncf %1 : vector<32x8xf32> to vector<32x8xbf16>
    %15 = arith.truncf %3 : vector<32x8xf32> to vector<32x8xbf16>
    %16 = arith.truncf %5 : vector<32x8xf32> to vector<32x8xbf16>
    %17 = arith.truncf %7 : vector<32x8xf32> to vector<32x8xbf16>
    %18 = arith.truncf %9 : vector<32x8xf32> to vector<32x8xbf16>
    "tpu.trace_start"() <{level = 10 : i32, message = "nd,md->nm"}> : () -> ()
    %cst = arith.constant dense<0.000000e+00> : vector<32x32xf32>
    %19 = tpu.matmul %14, %18, %cst {dimension_numbers = #tpu.dot_dimension_numbers<[1], [1], [0], [0], [0, 0, 1, 0], [], []>} : vector<32x8xbf16>, vector<32x8xbf16>, vector<32x32xf32> -> vector<32x32xf32>
    "tpu.trace_stop"() : () -> ()
    "tpu.trace_start"() <{level = 10 : i32, message = "md,nd->mn"}> : () -> ()
    %cst_21 = arith.constant dense<0.000000e+00> : vector<32x32xf32>
    %20 = tpu.matmul %17, %15, %cst_21 {dimension_numbers = #tpu.dot_dimension_numbers<[1], [1], [0], [0], [0, 0, 1, 0], [], []>} : vector<32x8xbf16>, vector<32x8xbf16>, vector<32x32xf32> -> vector<32x32xf32>
    "tpu.trace_stop"() : () -> ()
    %cst_22 = arith.constant dense<0xFF800000> : vector<32xf32>
    %21 = vector.multi_reduction <maximumf>, %19, %cst_22 [1] : vector<32x32xf32> to vector<32xf32>
    %22 = vector.shape_cast %21 : vector<32xf32> to vector<32x1xf32>
    %23 = vector.broadcast %22 : vector<32x1xf32> to vector<32x32xf32>
    %24 = arith.subf %19, %23 : vector<32x32xf32>
    %25 = math.exp %24 : vector<32x32xf32>
    %cst_23 = arith.constant dense<0.000000e+00> : vector<32xf32>
    %26 = vector.multi_reduction <add>, %25, %cst_23 [1] : vector<32x32xf32> to vector<32xf32>
    %27 = vector.shape_cast %26 : vector<32xf32> to vector<32x1xf32>
    %28 = tpu.reciprocal %27 {approx = true} : vector<32x1xf32> -> vector<32x1xf32>
    %29 = vector.broadcast %28 : vector<32x1xf32> to vector<32x32xf32>
    %30 = arith.mulf %25, %29 : vector<32x32xf32>
    %cst_24 = arith.constant dense<0xFF800000> : vector<32xf32>
    %31 = vector.multi_reduction <maximumf>, %20, %cst_24 [1] : vector<32x32xf32> to vector<32xf32>
    %32 = vector.shape_cast %31 : vector<32xf32> to vector<32x1xf32>
    %33 = vector.broadcast %32 : vector<32x1xf32> to vector<32x32xf32>
    %34 = arith.subf %20, %33 : vector<32x32xf32>
    %35 = math.exp %34 : vector<32x32xf32>
    %cst_25 = arith.constant dense<0.000000e+00> : vector<32xf32>
    %36 = vector.multi_reduction <add>, %35, %cst_25 [1] : vector<32x32xf32> to vector<32xf32>
    %37 = vector.shape_cast %36 : vector<32xf32> to vector<32x1xf32>
    %38 = tpu.reciprocal %37 {approx = true} : vector<32x1xf32> -> vector<32x1xf32>
    %39 = vector.broadcast %38 : vector<32x1xf32> to vector<32x32xf32>
    %40 = arith.mulf %35, %39 : vector<32x32xf32>
    %41 = tpu.transpose %11, [1, 0] : vector<32x32xf32> -> vector<32x32xf32>
    %42 = vector.broadcast %13 : vector<1x1xf32> to vector<32x32xf32>
    %43 = arith.mulf %41, %42 : vector<32x32xf32>
    %cst_26 = arith.constant dense<0.000000e+00> : vector<32x32xf32>
    %44 = tpu.matmul %11, %43, %cst_26 {dimension_numbers = #tpu.dot_dimension_numbers<[1], [0], [0], [1], [0, 0, 1, 1], [], []>} : vector<32x32xf32>, vector<32x32xf32>, vector<32x32xf32> -> vector<32x32xf32>
    %cst_27 = arith.constant 7.000000e+00 : f32
    %45 = vector.broadcast %cst_27 : f32 to vector<32x32xf32>
    %46 = arith.mulf %45, %12 : vector<32x32xf32>
    %47 = arith.subf %46, %44 : vector<32x32xf32>
    %cst_28 = arith.constant 1.500000e+01 : f32
    %48 = vector.broadcast %cst_28 : f32 to vector<32x32xf32>
    %49 = arith.mulf %48, %12 : vector<32x32xf32>
    %cst_29 = arith.constant dense<0.000000e+00> : vector<32x32xf32>
    %50 = tpu.matmul %44, %47, %cst_29 {dimension_numbers = #tpu.dot_dimension_numbers<[1], [0], [0], [1], [0, 0, 1, 1], [], []>} : vector<32x32xf32>, vector<32x32xf32>, vector<32x32xf32> -> vector<32x32xf32>
    %51 = arith.subf %49, %50 : vector<32x32xf32>
    %cst_30 = arith.constant 1.300000e+01 : f32
    %52 = vector.broadcast %cst_30 : f32 to vector<32x32xf32>
    %53 = arith.mulf %52, %12 : vector<32x32xf32>
    %cst_31 = arith.constant dense<0.000000e+00> : vector<32x32xf32>
    %54 = tpu.matmul %44, %51, %cst_31 {dimension_numbers = #tpu.dot_dimension_numbers<[1], [0], [0], [1], [0, 0, 1, 1], [], []>} : vector<32x32xf32>, vector<32x32xf32>, vector<32x32xf32> -> vector<32x32xf32>
    %55 = arith.subf %53, %54 : vector<32x32xf32>
    %cst_32 = arith.constant dense<0.000000e+00> : vector<32x32xf32>
    %56 = tpu.matmul %43, %55, %cst_32 {dimension_numbers = #tpu.dot_dimension_numbers<[1], [0], [0], [1], [0, 0, 1, 1], [], []>} : vector<32x32xf32>, vector<32x32xf32>, vector<32x32xf32> -> vector<32x32xf32>
    %cst_33 = arith.constant 2.500000e-01 : f32
    %57 = vector.broadcast %cst_33 : f32 to vector<32x32xf32>
    %58 = arith.mulf %57, %56 : vector<32x32xf32>
    %cst_34 = arith.constant dense<0.000000e+00> : vector<32x32xf32>
    %59 = tpu.matmul %11, %58, %cst_34 {dimension_numbers = #tpu.dot_dimension_numbers<[1], [0], [0], [1], [0, 0, 1, 1], [], []>} : vector<32x32xf32>, vector<32x32xf32>, vector<32x32xf32> -> vector<32x32xf32>
    %cst_35 = arith.constant 7.000000e+00 : f32
    %60 = vector.broadcast %cst_35 : f32 to vector<32x32xf32>
    %61 = arith.mulf %60, %12 : vector<32x32xf32>
    %62 = arith.subf %61, %59 : vector<32x32xf32>
    %cst_36 = arith.constant 1.500000e+01 : f32
    %63 = vector.broadcast %cst_36 : f32 to vector<32x32xf32>
    %64 = arith.mulf %63, %12 : vector<32x32xf32>
    %cst_37 = arith.constant dense<0.000000e+00> : vector<32x32xf32>
    %65 = tpu.matmul %59, %62, %cst_37 {dimension_numbers = #tpu.dot_dimension_numbers<[1], [0], [0], [1], [0, 0, 1, 1], [], []>} : vector<32x32xf32>, vector<32x32xf32>, vector<32x32xf32> -> vector<32x32xf32>
    %66 = arith.subf %64, %65 : vector<32x32xf32>
    %cst_38 = arith.constant 1.300000e+01 : f32
    %67 = vector.broadcast %cst_38 : f32 to vector<32x32xf32>
    %68 = arith.mulf %67, %12 : vector<32x32xf32>
    %cst_39 = arith.constant dense<0.000000e+00> : vector<32x32xf32>
    %69 = tpu.matmul %59, %66, %cst_39 {dimension_numbers = #tpu.dot_dimension_numbers<[1], [0], [0], [1], [0, 0, 1, 1], [], []>} : vector<32x32xf32>, vector<32x32xf32>, vector<32x32xf32> -> vector<32x32xf32>
    %70 = arith.subf %68, %69 : vector<32x32xf32>
    %cst_40 = arith.constant dense<0.000000e+00> : vector<32x32xf32>
    %71 = tpu.matmul %58, %70, %cst_40 {dimension_numbers = #tpu.dot_dimension_numbers<[1], [0], [0], [1], [0, 0, 1, 1], [], []>} : vector<32x32xf32>, vector<32x32xf32>, vector<32x32xf32> -> vector<32x32xf32>
    %cst_41 = arith.constant 2.500000e-01 : f32
    %72 = vector.broadcast %cst_41 : f32 to vector<32x32xf32>
    %73 = arith.mulf %72, %71 : vector<32x32xf32>
    %cst_42 = arith.constant dense<0.000000e+00> : vector<32x32xf32>
    %74 = tpu.matmul %11, %73, %cst_42 {dimension_numbers = #tpu.dot_dimension_numbers<[1], [0], [0], [1], [0, 0, 1, 1], [], []>} : vector<32x32xf32>, vector<32x32xf32>, vector<32x32xf32> -> vector<32x32xf32>
    %cst_43 = arith.constant 7.000000e+00 : f32
    %75 = vector.broadcast %cst_43 : f32 to vector<32x32xf32>
    %76 = arith.mulf %75, %12 : vector<32x32xf32>
    %77 = arith.subf %76, %74 : vector<32x32xf32>
    %cst_44 = arith.constant 1.500000e+01 : f32
    %78 = vector.broadcast %cst_44 : f32 to vector<32x32xf32>
    %79 = arith.mulf %78, %12 : vector<32x32xf32>
    %cst_45 = arith.constant dense<0.000000e+00> : vector<32x32xf32>
    %80 = tpu.matmul %74, %77, %cst_45 {dimension_numbers = #tpu.dot_dimension_numbers<[1], [0], [0], [1], [0, 0, 1, 1], [], []>} : vector<32x32xf32>, vector<32x32xf32>, vector<32x32xf32> -> vector<32x32xf32>
    %81 = arith.subf %79, %80 : vector<32x32xf32>
    %cst_46 = arith.constant 1.300000e+01 : f32
    %82 = vector.broadcast %cst_46 : f32 to vector<32x32xf32>
    %83 = arith.mulf %82, %12 : vector<32x32xf32>
    %cst_47 = arith.constant dense<0.000000e+00> : vector<32x32xf32>
    %84 = tpu.matmul %74, %81, %cst_47 {dimension_numbers = #tpu.dot_dimension_numbers<[1], [0], [0], [1], [0, 0, 1, 1], [], []>} : vector<32x32xf32>, vector<32x32xf32>, vector<32x32xf32> -> vector<32x32xf32>
    %85 = arith.subf %83, %84 : vector<32x32xf32>
    %cst_48 = arith.constant dense<0.000000e+00> : vector<32x32xf32>
    %86 = tpu.matmul %73, %85, %cst_48 {dimension_numbers = #tpu.dot_dimension_numbers<[1], [0], [0], [1], [0, 0, 1, 1], [], []>} : vector<32x32xf32>, vector<32x32xf32>, vector<32x32xf32> -> vector<32x32xf32>
    %cst_49 = arith.constant 2.500000e-01 : f32
    %87 = vector.broadcast %cst_49 : f32 to vector<32x32xf32>
    %88 = arith.mulf %87, %86 : vector<32x32xf32>
    %cst_50 = arith.constant dense<0.000000e+00> : vector<32x32xf32>
    %89 = tpu.matmul %11, %88, %cst_50 {dimension_numbers = #tpu.dot_dimension_numbers<[1], [0], [0], [1], [0, 0, 1, 1], [], []>} : vector<32x32xf32>, vector<32x32xf32>, vector<32x32xf32> -> vector<32x32xf32>
    %cst_51 = arith.constant 7.000000e+00 : f32
    %90 = vector.broadcast %cst_51 : f32 to vector<32x32xf32>
    %91 = arith.mulf %90, %12 : vector<32x32xf32>
    %92 = arith.subf %91, %89 : vector<32x32xf32>
    %cst_52 = arith.constant 1.500000e+01 : f32
    %93 = vector.broadcast %cst_52 : f32 to vector<32x32xf32>
    %94 = arith.mulf %93, %12 : vector<32x32xf32>
    %cst_53 = arith.constant dense<0.000000e+00> : vector<32x32xf32>
    %95 = tpu.matmul %89, %92, %cst_53 {dimension_numbers = #tpu.dot_dimension_numbers<[1], [0], [0], [1], [0, 0, 1, 1], [], []>} : vector<32x32xf32>, vector<32x32xf32>, vector<32x32xf32> -> vector<32x32xf32>
    %96 = arith.subf %94, %95 : vector<32x32xf32>
    %cst_54 = arith.constant 1.300000e+01 : f32
    %97 = vector.broadcast %cst_54 : f32 to vector<32x32xf32>
    %98 = arith.mulf %97, %12 : vector<32x32xf32>
    %cst_55 = arith.constant dense<0.000000e+00> : vector<32x32xf32>
    %99 = tpu.matmul %89, %96, %cst_55 {dimension_numbers = #tpu.dot_dimension_numbers<[1], [0], [0], [1], [0, 0, 1, 1], [], []>} : vector<32x32xf32>, vector<32x32xf32>, vector<32x32xf32> -> vector<32x32xf32>
    %100 = arith.subf %98, %99 : vector<32x32xf32>
    %cst_56 = arith.constant dense<0.000000e+00> : vector<32x32xf32>
    %101 = tpu.matmul %88, %100, %cst_56 {dimension_numbers = #tpu.dot_dimension_numbers<[1], [0], [0], [1], [0, 0, 1, 1], [], []>} : vector<32x32xf32>, vector<32x32xf32>, vector<32x32xf32> -> vector<32x32xf32>
    %cst_57 = arith.constant 2.500000e-01 : f32
    %102 = vector.broadcast %cst_57 : f32 to vector<32x32xf32>
    %103 = arith.mulf %102, %101 : vector<32x32xf32>
    %cst_58 = arith.constant dense<0.000000e+00> : vector<32x32xf32>
    %104 = tpu.matmul %11, %103, %cst_58 {dimension_numbers = #tpu.dot_dimension_numbers<[1], [0], [0], [1], [0, 0, 1, 1], [], []>} : vector<32x32xf32>, vector<32x32xf32>, vector<32x32xf32> -> vector<32x32xf32>
    %cst_59 = arith.constant 7.000000e+00 : f32
    %105 = vector.broadcast %cst_59 : f32 to vector<32x32xf32>
    %106 = arith.mulf %105, %12 : vector<32x32xf32>
    %107 = arith.subf %106, %104 : vector<32x32xf32>
    %cst_60 = arith.constant 1.500000e+01 : f32
    %108 = vector.broadcast %cst_60 : f32 to vector<32x32xf32>
    %109 = arith.mulf %108, %12 : vector<32x32xf32>
    %cst_61 = arith.constant dense<0.000000e+00> : vector<32x32xf32>
    %110 = tpu.matmul %104, %107, %cst_61 {dimension_numbers = #tpu.dot_dimension_numbers<[1], [0], [0], [1], [0, 0, 1, 1], [], []>} : vector<32x32xf32>, vector<32x32xf32>, vector<32x32xf32> -> vector<32x32xf32>
    %111 = arith.subf %109, %110 : vector<32x32xf32>
    %cst_62 = arith.constant 1.300000e+01 : f32
    %112 = vector.broadcast %cst_62 : f32 to vector<32x32xf32>
    %113 = arith.mulf %112, %12 : vector<32x32xf32>
    %cst_63 = arith.constant dense<0.000000e+00> : vector<32x32xf32>
    %114 = tpu.matmul %104, %111, %cst_63 {dimension_numbers = #tpu.dot_dimension_numbers<[1], [0], [0], [1], [0, 0, 1, 1], [], []>} : vector<32x32xf32>, vector<32x32xf32>, vector<32x32xf32> -> vector<32x32xf32>
    %115 = arith.subf %113, %114 : vector<32x32xf32>
    %cst_64 = arith.constant dense<0.000000e+00> : vector<32x32xf32>
    %116 = tpu.matmul %103, %115, %cst_64 {dimension_numbers = #tpu.dot_dimension_numbers<[1], [0], [0], [1], [0, 0, 1, 1], [], []>} : vector<32x32xf32>, vector<32x32xf32>, vector<32x32xf32> -> vector<32x32xf32>
    %cst_65 = arith.constant 2.500000e-01 : f32
    %117 = vector.broadcast %cst_65 : f32 to vector<32x32xf32>
    %118 = arith.mulf %117, %116 : vector<32x32xf32>
    %cst_66 = arith.constant dense<0.000000e+00> : vector<32x32xf32>
    %119 = tpu.matmul %11, %118, %cst_66 {dimension_numbers = #tpu.dot_dimension_numbers<[1], [0], [0], [1], [0, 0, 1, 1], [], []>} : vector<32x32xf32>, vector<32x32xf32>, vector<32x32xf32> -> vector<32x32xf32>
    %cst_67 = arith.constant 7.000000e+00 : f32
    %120 = vector.broadcast %cst_67 : f32 to vector<32x32xf32>
    %121 = arith.mulf %120, %12 : vector<32x32xf32>
    %122 = arith.subf %121, %119 : vector<32x32xf32>
    %cst_68 = arith.constant 1.500000e+01 : f32
    %123 = vector.broadcast %cst_68 : f32 to vector<32x32xf32>
    %124 = arith.mulf %123, %12 : vector<32x32xf32>
    %cst_69 = arith.constant dense<0.000000e+00> : vector<32x32xf32>
    %125 = tpu.matmul %119, %122, %cst_69 {dimension_numbers = #tpu.dot_dimension_numbers<[1], [0], [0], [1], [0, 0, 1, 1], [], []>} : vector<32x32xf32>, vector<32x32xf32>, vector<32x32xf32> -> vector<32x32xf32>
    %126 = arith.subf %124, %125 : vector<32x32xf32>
    %cst_70 = arith.constant 1.300000e+01 : f32
    %127 = vector.broadcast %cst_70 : f32 to vector<32x32xf32>
    %128 = arith.mulf %127, %12 : vector<32x32xf32>
    %cst_71 = arith.constant dense<0.000000e+00> : vector<32x32xf32>
    %129 = tpu.matmul %119, %126, %cst_71 {dimension_numbers = #tpu.dot_dimension_numbers<[1], [0], [0], [1], [0, 0, 1, 1], [], []>} : vector<32x32xf32>, vector<32x32xf32>, vector<32x32xf32> -> vector<32x32xf32>
    %130 = arith.subf %128, %129 : vector<32x32xf32>
    %cst_72 = arith.constant dense<0.000000e+00> : vector<32x32xf32>
    %131 = tpu.matmul %118, %130, %cst_72 {dimension_numbers = #tpu.dot_dimension_numbers<[1], [0], [0], [1], [0, 0, 1, 1], [], []>} : vector<32x32xf32>, vector<32x32xf32>, vector<32x32xf32> -> vector<32x32xf32>
    %cst_73 = arith.constant 2.500000e-01 : f32
    %132 = vector.broadcast %cst_73 : f32 to vector<32x32xf32>
    %133 = arith.mulf %132, %131 : vector<32x32xf32>
    %134 = arith.truncf %40 : vector<32x32xf32> to vector<32x32xbf16>
    %cst_74 = arith.constant dense<0.000000e+00> : vector<32x8xf32>
    %135 = tpu.matmul %134, %16, %cst_74 {dimension_numbers = #tpu.dot_dimension_numbers<[1], [0], [0], [1], [0, 0, 1, 1], [], []>} : vector<32x32xbf16>, vector<32x8xbf16>, vector<32x8xf32> -> vector<32x8xf32>
    %cst_75 = arith.constant dense<0.000000e+00> : vector<32x8xf32>
    %136 = tpu.matmul %133, %135, %cst_75 {dimension_numbers = #tpu.dot_dimension_numbers<[1], [0], [0], [1], [0, 0, 1, 1], [], []>} : vector<32x32xf32>, vector<32x8xf32>, vector<32x8xf32> -> vector<32x8xf32>
    %137 = arith.truncf %30 : vector<32x32xf32> to vector<32x32xbf16>
    %138 = arith.truncf %136 : vector<32x8xf32> to vector<32x8xbf16>
    %cst_76 = arith.constant dense<0.000000e+00> : vector<32x8xf32>
    %139 = tpu.matmul %137, %138, %cst_76 {dimension_numbers = #tpu.dot_dimension_numbers<[1], [0], [0], [1], [0, 0, 1, 1], [], []>} : vector<32x32xbf16>, vector<32x8xbf16>, vector<32x8xf32> -> vector<32x8xf32>
    %c0_77 = arith.constant 0 : index
    %c0_78 = arith.constant 0 : index
    %c0_79 = arith.constant 0 : index
    %140 = vector.load %arg9[%c0_77, %c0_78, %c0_79] : memref<1x32x8xf32, #tpu.memory_space<vmem>>, vector<1x32x8xf32>
    %141 = vector.shape_cast %140 : vector<1x32x8xf32> to vector<32x8xf32>
    %142 = vector.shape_cast %139 : vector<32x8xf32> to vector<1x32x8xf32>
    tpu.vector_store %arg9[%c0_77, %c0_78, %c0_79], %142 {strides = array<i32>} : memref<1x32x8xf32, #tpu.memory_space<vmem>>, vector<1x32x8xf32>,
    return
  }
  func.func @transform_0(%arg0: i32) -> (i32, i32, i32) {
    %c0_i32 = arith.constant 0 : i32
    %c0_i32_0 = arith.constant 0 : i32
    %c0_i32_1 = arith.constant 0 : i32
    return %arg0, %c0_i32, %c0_i32_0 : i32, i32, i32
  }
  func.func @transform_1(%arg0: i32) -> (i32, i32, i32) {
    %c0_i32 = arith.constant 0 : i32
    %c0_i32_0 = arith.constant 0 : i32
    %c0_i32_1 = arith.constant 0 : i32
    return %arg0, %c0_i32, %c0_i32_0 : i32, i32, i32
  }
  func.func @transform_2(%arg0: i32) -> (i32, i32, i32) {
    %c0_i32 = arith.constant 0 : i32
    %c0_i32_0 = arith.constant 0 : i32
    %c0_i32_1 = arith.constant 0 : i32
    return %arg0, %c0_i32, %c0_i32_0 : i32, i32, i32
  }
  func.func @transform_3(%arg0: i32) -> (i32, i32, i32) {
    %c0_i32 = arith.constant 0 : i32
    %c0_i32_0 = arith.constant 0 : i32
    %c0_i32_1 = arith.constant 0 : i32
    return %arg0, %c0_i32, %c0_i32_0 : i32, i32, i32
  }
  func.func @transform_4(%arg0: i32) -> (i32, i32, i32) {
    %c0_i32 = arith.constant 0 : i32
    %c0_i32_0 = arith.constant 0 : i32
    %c0_i32_1 = arith.constant 0 : i32
    return %arg0, %c0_i32, %c0_i32_0 : i32, i32, i32
  }
  func.func @transform_5(%arg0: i32) -> (i32, i32, i32) {
    %c0_i32 = arith.constant 0 : i32
    %c0_i32_0 = arith.constant 0 : i32
    %c0_i32_1 = arith.constant 0 : i32
    return %arg0, %c0_i32, %c0_i32_0 : i32, i32, i32
  }
  func.func @transform_6(%arg0: i32) -> (i32, i32) {
    %c0_i32 = arith.constant 0 : i32
    %c0_i32_0 = arith.constant 0 : i32
    %c0_i32_1 = arith.constant 0 : i32
    return %c0_i32, %c0_i32_0 : i32, i32
  }
  func.func @transform_7(%arg0: i32) -> (i32, i32) {
    %c0_i32 = arith.constant 0 : i32
    %c0_i32_0 = arith.constant 0 : i32
    %c0_i32_1 = arith.constant 0 : i32
    return %c0_i32, %c0_i32_0 : i32, i32
  }
  func.func @transform_8(%arg0: i32) -> (i32, i32, i32) {
    %c0_i32 = arith.constant 0 : i32
    %c0_i32_0 = arith.constant 0 : i32
    %c0_i32_1 = arith.constant 0 : i32
    return %arg0, %c0_i32, %c0_i32_0 : i32, i32, i32
  }
}

module attributes {stable_mosaic.version = 11 : i64} {
  func.func @_linear_bias_kernel(%arg0: i32, %arg1: memref<64x64xf32, #tpu.memory_space<vmem>>, %arg2: memref<64x64xf32, #tpu.memory_space<vmem>>, %arg3: memref<1x64xf32, #tpu.memory_space<vmem>>, %arg4: memref<64x64xf32, #tpu.memory_space<vmem>>) attributes {dimension_semantics = [#tpu.dimension_semantics<parallel>], iteration_bounds = array<i64: 1>, scalar_prefetch = 0 : i64, scratch_operands = 0 : i64, tpu.core_type = #tpu.core_type<tc>, window_params = [{transform_indices = @transform_0, window_bounds = array<i64: 64, 64>}, {pipeline_mode = #tpu.pipeline_mode<synchronous>, transform_indices = @transform_1, window_bounds = array<i64: 64, 64>}, {pipeline_mode = #tpu.pipeline_mode<synchronous>, transform_indices = @transform_2, window_bounds = array<i64: 1, 64>}, {transform_indices = @transform_3, window_bounds = array<i64: 64, 64>}]} {
    %c0 = arith.constant 0 : index
    %c0_0 = arith.constant 0 : index
    %0 = vector.load %arg1[%c0, %c0_0] : memref<64x64xf32, #tpu.memory_space<vmem>>, vector<64x64xf32>
    %1 = arith.truncf %0 : vector<64x64xf32> to vector<64x64xbf16>
    %c0_1 = arith.constant 0 : index
    %c0_2 = arith.constant 0 : index
    %2 = vector.load %arg2[%c0_1, %c0_2] : memref<64x64xf32, #tpu.memory_space<vmem>>, vector<64x64xf32>
    %3 = arith.truncf %2 : vector<64x64xf32> to vector<64x64xbf16>
    %cst = arith.constant dense<0.000000e+00> : vector<64x64xf32>
    %4 = tpu.matmul %1, %3, %cst {dimension_numbers = #tpu.dot_dimension_numbers<[1], [0], [0], [1], [0, 0, 1, 1], [], []>} : vector<64x64xbf16>, vector<64x64xbf16>, vector<64x64xf32> -> vector<64x64xf32>
    %c0_3 = arith.constant 0 : index
    %c0_4 = arith.constant 0 : index
    %5 = vector.load %arg3[%c0_3, %c0_4] : memref<1x64xf32, #tpu.memory_space<vmem>>, vector<1x64xf32>
    %6 = vector.broadcast %5 : vector<1x64xf32> to vector<64x64xf32>
    %7 = arith.addf %4, %6 : vector<64x64xf32>
    %c0_5 = arith.constant 0 : index
    %c0_6 = arith.constant 0 : index
    %8 = vector.load %arg4[%c0_5, %c0_6] : memref<64x64xf32, #tpu.memory_space<vmem>>, vector<64x64xf32>
    tpu.vector_store %arg4[%c0_5, %c0_6], %7 {strides = array<i32>} : memref<64x64xf32, #tpu.memory_space<vmem>>, vector<64x64xf32>,
    return
  }
  func.func @transform_0(%arg0: i32) -> (i32, i32) {
    %c0_i32 = arith.constant 0 : i32
    %c0_i32_0 = arith.constant 0 : i32
    return %arg0, %c0_i32 : i32, i32
  }
  func.func @transform_1(%arg0: i32) -> (i32, i32) {
    %c0_i32 = arith.constant 0 : i32
    %c0_i32_0 = arith.constant 0 : i32
    %c0_i32_1 = arith.constant 0 : i32
    return %c0_i32, %c0_i32_0 : i32, i32
  }
  func.func @transform_2(%arg0: i32) -> (i32, i32) {
    %c0_i32 = arith.constant 0 : i32
    %c0_i32_0 = arith.constant 0 : i32
    %c0_i32_1 = arith.constant 0 : i32
    return %c0_i32, %c0_i32_0 : i32, i32
  }
  func.func @transform_3(%arg0: i32) -> (i32, i32) {
    %c0_i32 = arith.constant 0 : i32
    %c0_i32_0 = arith.constant 0 : i32
    return %arg0, %c0_i32 : i32, i32
  }
}

module attributes {stable_mosaic.version = 11 : i64} {
  func.func @_resconv_kernel(%arg0: i32, %arg1: memref<1x64x64xf32, #tpu.memory_space<vmem>>, %arg2: memref<33x64xf32, #tpu.memory_space<vmem>>, %arg3: memref<1x32x64xf32, #tpu.memory_space<vmem>>) attributes {dimension_semantics = [#tpu.dimension_semantics<parallel>], iteration_bounds = array<i64: 2>, scalar_prefetch = 0 : i64, scratch_operands = 0 : i64, tpu.core_type = #tpu.core_type<tc>, window_params = [{transform_indices = @transform_0, window_bounds = array<i64: 1, 64, 64>}, {pipeline_mode = #tpu.pipeline_mode<synchronous>, transform_indices = @transform_1, window_bounds = array<i64: 33, 64>}, {transform_indices = @transform_2, window_bounds = array<i64: 1, 32, 64>}]} {
    %c0 = arith.constant 0 : index
    %c0_0 = arith.constant 0 : index
    %c0_1 = arith.constant 0 : index
    %0 = vector.load %arg1[%c0, %c0_0, %c0_1] : memref<1x64x64xf32, #tpu.memory_space<vmem>>, vector<1x64x64xf32>
    %1 = vector.shape_cast %0 : vector<1x64x64xf32> to vector<64x64xf32>
    %c0_2 = arith.constant 0 : index
    %c0_3 = arith.constant 0 : index
    %2 = vector.load %arg2[%c0_2, %c0_3] : memref<33x64xf32, #tpu.memory_space<vmem>>, vector<33x64xf32>
    %3 = vector.extract_strided_slice %1 {offsets = [0, 0], sizes = [32, 64], strides = [1, 1]} : vector<64x64xf32> to vector<32x64xf32>
    %4 = vector.extract_strided_slice %2 {offsets = [0, 0], sizes = [1, 64], strides = [1, 1]} : vector<33x64xf32> to vector<1x64xf32>
    %5 = vector.shape_cast %4 : vector<1x64xf32> to vector<64xf32>
    %6 = vector.shape_cast %5 : vector<64xf32> to vector<1x64xf32>
    %7 = vector.broadcast %6 : vector<1x64xf32> to vector<32x64xf32>
    %8 = arith.mulf %3, %7 : vector<32x64xf32>
    %9 = vector.extract_strided_slice %1 {offsets = [1, 0], sizes = [32, 64], strides = [1, 1]} : vector<64x64xf32> to vector<32x64xf32>
    %10 = vector.extract_strided_slice %2 {offsets = [1, 0], sizes = [1, 64], strides = [1, 1]} : vector<33x64xf32> to vector<1x64xf32>
    %11 = vector.shape_cast %10 : vector<1x64xf32> to vector<64xf32>
    %12 = vector.shape_cast %11 : vector<64xf32> to vector<1x64xf32>
    %13 = vector.broadcast %12 : vector<1x64xf32> to vector<32x64xf32>
    %14 = arith.mulf %9, %13 : vector<32x64xf32>
    %15 = arith.addf %8, %14 : vector<32x64xf32>
    %16 = vector.extract_strided_slice %1 {offsets = [2, 0], sizes = [32, 64], strides = [1, 1]} : vector<64x64xf32> to vector<32x64xf32>
    %17 = vector.extract_strided_slice %2 {offsets = [2, 0], sizes = [1, 64], strides = [1, 1]} : vector<33x64xf32> to vector<1x64xf32>
    %18 = vector.shape_cast %17 : vector<1x64xf32> to vector<64xf32>
    %19 = vector.shape_cast %18 : vector<64xf32> to vector<1x64xf32>
    %20 = vector.broadcast %19 : vector<1x64xf32> to vector<32x64xf32>
    %21 = arith.mulf %16, %20 : vector<32x64xf32>
    %22 = arith.addf %15, %21 : vector<32x64xf32>
    %23 = vector.extract_strided_slice %1 {offsets = [3, 0], sizes = [32, 64], strides = [1, 1]} : vector<64x64xf32> to vector<32x64xf32>
    %24 = vector.extract_strided_slice %2 {offsets = [3, 0], sizes = [1, 64], strides = [1, 1]} : vector<33x64xf32> to vector<1x64xf32>
    %25 = vector.shape_cast %24 : vector<1x64xf32> to vector<64xf32>
    %26 = vector.shape_cast %25 : vector<64xf32> to vector<1x64xf32>
    %27 = vector.broadcast %26 : vector<1x64xf32> to vector<32x64xf32>
    %28 = arith.mulf %23, %27 : vector<32x64xf32>
    %29 = arith.addf %22, %28 : vector<32x64xf32>
    %30 = vector.extract_strided_slice %1 {offsets = [4, 0], sizes = [32, 64], strides = [1, 1]} : vector<64x64xf32> to vector<32x64xf32>
    %31 = vector.extract_strided_slice %2 {offsets = [4, 0], sizes = [1, 64], strides = [1, 1]} : vector<33x64xf32> to vector<1x64xf32>
    %32 = vector.shape_cast %31 : vector<1x64xf32> to vector<64xf32>
    %33 = vector.shape_cast %32 : vector<64xf32> to vector<1x64xf32>
    %34 = vector.broadcast %33 : vector<1x64xf32> to vector<32x64xf32>
    %35 = arith.mulf %30, %34 : vector<32x64xf32>
    %36 = arith.addf %29, %35 : vector<32x64xf32>
    %37 = vector.extract_strided_slice %1 {offsets = [5, 0], sizes = [32, 64], strides = [1, 1]} : vector<64x64xf32> to vector<32x64xf32>
    %38 = vector.extract_strided_slice %2 {offsets = [5, 0], sizes = [1, 64], strides = [1, 1]} : vector<33x64xf32> to vector<1x64xf32>
    %39 = vector.shape_cast %38 : vector<1x64xf32> to vector<64xf32>
    %40 = vector.shape_cast %39 : vector<64xf32> to vector<1x64xf32>
    %41 = vector.broadcast %40 : vector<1x64xf32> to vector<32x64xf32>
    %42 = arith.mulf %37, %41 : vector<32x64xf32>
    %43 = arith.addf %36, %42 : vector<32x64xf32>
    %44 = vector.extract_strided_slice %1 {offsets = [6, 0], sizes = [32, 64], strides = [1, 1]} : vector<64x64xf32> to vector<32x64xf32>
    %45 = vector.extract_strided_slice %2 {offsets = [6, 0], sizes = [1, 64], strides = [1, 1]} : vector<33x64xf32> to vector<1x64xf32>
    %46 = vector.shape_cast %45 : vector<1x64xf32> to vector<64xf32>
    %47 = vector.shape_cast %46 : vector<64xf32> to vector<1x64xf32>
    %48 = vector.broadcast %47 : vector<1x64xf32> to vector<32x64xf32>
    %49 = arith.mulf %44, %48 : vector<32x64xf32>
    %50 = arith.addf %43, %49 : vector<32x64xf32>
    %51 = vector.extract_strided_slice %1 {offsets = [7, 0], sizes = [32, 64], strides = [1, 1]} : vector<64x64xf32> to vector<32x64xf32>
    %52 = vector.extract_strided_slice %2 {offsets = [7, 0], sizes = [1, 64], strides = [1, 1]} : vector<33x64xf32> to vector<1x64xf32>
    %53 = vector.shape_cast %52 : vector<1x64xf32> to vector<64xf32>
    %54 = vector.shape_cast %53 : vector<64xf32> to vector<1x64xf32>
    %55 = vector.broadcast %54 : vector<1x64xf32> to vector<32x64xf32>
    %56 = arith.mulf %51, %55 : vector<32x64xf32>
    %57 = arith.addf %50, %56 : vector<32x64xf32>
    %58 = vector.extract_strided_slice %1 {offsets = [8, 0], sizes = [32, 64], strides = [1, 1]} : vector<64x64xf32> to vector<32x64xf32>
    %59 = vector.extract_strided_slice %2 {offsets = [8, 0], sizes = [1, 64], strides = [1, 1]} : vector<33x64xf32> to vector<1x64xf32>
    %60 = vector.shape_cast %59 : vector<1x64xf32> to vector<64xf32>
    %61 = vector.shape_cast %60 : vector<64xf32> to vector<1x64xf32>
    %62 = vector.broadcast %61 : vector<1x64xf32> to vector<32x64xf32>
    %63 = arith.mulf %58, %62 : vector<32x64xf32>
    %64 = arith.addf %57, %63 : vector<32x64xf32>
    %65 = vector.extract_strided_slice %1 {offsets = [9, 0], sizes = [32, 64], strides = [1, 1]} : vector<64x64xf32> to vector<32x64xf32>
    %66 = vector.extract_strided_slice %2 {offsets = [9, 0], sizes = [1, 64], strides = [1, 1]} : vector<33x64xf32> to vector<1x64xf32>
    %67 = vector.shape_cast %66 : vector<1x64xf32> to vector<64xf32>
    %68 = vector.shape_cast %67 : vector<64xf32> to vector<1x64xf32>
    %69 = vector.broadcast %68 : vector<1x64xf32> to vector<32x64xf32>
    %70 = arith.mulf %65, %69 : vector<32x64xf32>
    %71 = arith.addf %64, %70 : vector<32x64xf32>
    %72 = vector.extract_strided_slice %1 {offsets = [10, 0], sizes = [32, 64], strides = [1, 1]} : vector<64x64xf32> to vector<32x64xf32>
    %73 = vector.extract_strided_slice %2 {offsets = [10, 0], sizes = [1, 64], strides = [1, 1]} : vector<33x64xf32> to vector<1x64xf32>
    %74 = vector.shape_cast %73 : vector<1x64xf32> to vector<64xf32>
    %75 = vector.shape_cast %74 : vector<64xf32> to vector<1x64xf32>
    %76 = vector.broadcast %75 : vector<1x64xf32> to vector<32x64xf32>
    %77 = arith.mulf %72, %76 : vector<32x64xf32>
    %78 = arith.addf %71, %77 : vector<32x64xf32>
    %79 = vector.extract_strided_slice %1 {offsets = [11, 0], sizes = [32, 64], strides = [1, 1]} : vector<64x64xf32> to vector<32x64xf32>
    %80 = vector.extract_strided_slice %2 {offsets = [11, 0], sizes = [1, 64], strides = [1, 1]} : vector<33x64xf32> to vector<1x64xf32>
    %81 = vector.shape_cast %80 : vector<1x64xf32> to vector<64xf32>
    %82 = vector.shape_cast %81 : vector<64xf32> to vector<1x64xf32>
    %83 = vector.broadcast %82 : vector<1x64xf32> to vector<32x64xf32>
    %84 = arith.mulf %79, %83 : vector<32x64xf32>
    %85 = arith.addf %78, %84 : vector<32x64xf32>
    %86 = vector.extract_strided_slice %1 {offsets = [12, 0], sizes = [32, 64], strides = [1, 1]} : vector<64x64xf32> to vector<32x64xf32>
    %87 = vector.extract_strided_slice %2 {offsets = [12, 0], sizes = [1, 64], strides = [1, 1]} : vector<33x64xf32> to vector<1x64xf32>
    %88 = vector.shape_cast %87 : vector<1x64xf32> to vector<64xf32>
    %89 = vector.shape_cast %88 : vector<64xf32> to vector<1x64xf32>
    %90 = vector.broadcast %89 : vector<1x64xf32> to vector<32x64xf32>
    %91 = arith.mulf %86, %90 : vector<32x64xf32>
    %92 = arith.addf %85, %91 : vector<32x64xf32>
    %93 = vector.extract_strided_slice %1 {offsets = [13, 0], sizes = [32, 64], strides = [1, 1]} : vector<64x64xf32> to vector<32x64xf32>
    %94 = vector.extract_strided_slice %2 {offsets = [13, 0], sizes = [1, 64], strides = [1, 1]} : vector<33x64xf32> to vector<1x64xf32>
    %95 = vector.shape_cast %94 : vector<1x64xf32> to vector<64xf32>
    %96 = vector.shape_cast %95 : vector<64xf32> to vector<1x64xf32>
    %97 = vector.broadcast %96 : vector<1x64xf32> to vector<32x64xf32>
    %98 = arith.mulf %93, %97 : vector<32x64xf32>
    %99 = arith.addf %92, %98 : vector<32x64xf32>
    %100 = vector.extract_strided_slice %1 {offsets = [14, 0], sizes = [32, 64], strides = [1, 1]} : vector<64x64xf32> to vector<32x64xf32>
    %101 = vector.extract_strided_slice %2 {offsets = [14, 0], sizes = [1, 64], strides = [1, 1]} : vector<33x64xf32> to vector<1x64xf32>
    %102 = vector.shape_cast %101 : vector<1x64xf32> to vector<64xf32>
    %103 = vector.shape_cast %102 : vector<64xf32> to vector<1x64xf32>
    %104 = vector.broadcast %103 : vector<1x64xf32> to vector<32x64xf32>
    %105 = arith.mulf %100, %104 : vector<32x64xf32>
    %106 = arith.addf %99, %105 : vector<32x64xf32>
    %107 = vector.extract_strided_slice %1 {offsets = [15, 0], sizes = [32, 64], strides = [1, 1]} : vector<64x64xf32> to vector<32x64xf32>
    %108 = vector.extract_strided_slice %2 {offsets = [15, 0], sizes = [1, 64], strides = [1, 1]} : vector<33x64xf32> to vector<1x64xf32>
    %109 = vector.shape_cast %108 : vector<1x64xf32> to vector<64xf32>
    %110 = vector.shape_cast %109 : vector<64xf32> to vector<1x64xf32>
    %111 = vector.broadcast %110 : vector<1x64xf32> to vector<32x64xf32>
    %112 = arith.mulf %107, %111 : vector<32x64xf32>
    %113 = arith.addf %106, %112 : vector<32x64xf32>
    %114 = vector.extract_strided_slice %1 {offsets = [16, 0], sizes = [32, 64], strides = [1, 1]} : vector<64x64xf32> to vector<32x64xf32>
    %115 = vector.extract_strided_slice %2 {offsets = [16, 0], sizes = [1, 64], strides = [1, 1]} : vector<33x64xf32> to vector<1x64xf32>
    %116 = vector.shape_cast %115 : vector<1x64xf32> to vector<64xf32>
    %117 = vector.shape_cast %116 : vector<64xf32> to vector<1x64xf32>
    %118 = vector.broadcast %117 : vector<1x64xf32> to vector<32x64xf32>
    %119 = arith.mulf %114, %118 : vector<32x64xf32>
    %120 = arith.addf %113, %119 : vector<32x64xf32>
    %121 = vector.extract_strided_slice %1 {offsets = [17, 0], sizes = [32, 64], strides = [1, 1]} : vector<64x64xf32> to vector<32x64xf32>
    %122 = vector.extract_strided_slice %2 {offsets = [17, 0], sizes = [1, 64], strides = [1, 1]} : vector<33x64xf32> to vector<1x64xf32>
    %123 = vector.shape_cast %122 : vector<1x64xf32> to vector<64xf32>
    %124 = vector.shape_cast %123 : vector<64xf32> to vector<1x64xf32>
    %125 = vector.broadcast %124 : vector<1x64xf32> to vector<32x64xf32>
    %126 = arith.mulf %121, %125 : vector<32x64xf32>
    %127 = arith.addf %120, %126 : vector<32x64xf32>
    %128 = vector.extract_strided_slice %1 {offsets = [18, 0], sizes = [32, 64], strides = [1, 1]} : vector<64x64xf32> to vector<32x64xf32>
    %129 = vector.extract_strided_slice %2 {offsets = [18, 0], sizes = [1, 64], strides = [1, 1]} : vector<33x64xf32> to vector<1x64xf32>
    %130 = vector.shape_cast %129 : vector<1x64xf32> to vector<64xf32>
    %131 = vector.shape_cast %130 : vector<64xf32> to vector<1x64xf32>
    %132 = vector.broadcast %131 : vector<1x64xf32> to vector<32x64xf32>
    %133 = arith.mulf %128, %132 : vector<32x64xf32>
    %134 = arith.addf %127, %133 : vector<32x64xf32>
    %135 = vector.extract_strided_slice %1 {offsets = [19, 0], sizes = [32, 64], strides = [1, 1]} : vector<64x64xf32> to vector<32x64xf32>
    %136 = vector.extract_strided_slice %2 {offsets = [19, 0], sizes = [1, 64], strides = [1, 1]} : vector<33x64xf32> to vector<1x64xf32>
    %137 = vector.shape_cast %136 : vector<1x64xf32> to vector<64xf32>
    %138 = vector.shape_cast %137 : vector<64xf32> to vector<1x64xf32>
    %139 = vector.broadcast %138 : vector<1x64xf32> to vector<32x64xf32>
    %140 = arith.mulf %135, %139 : vector<32x64xf32>
    %141 = arith.addf %134, %140 : vector<32x64xf32>
    %142 = vector.extract_strided_slice %1 {offsets = [20, 0], sizes = [32, 64], strides = [1, 1]} : vector<64x64xf32> to vector<32x64xf32>
    %143 = vector.extract_strided_slice %2 {offsets = [20, 0], sizes = [1, 64], strides = [1, 1]} : vector<33x64xf32> to vector<1x64xf32>
    %144 = vector.shape_cast %143 : vector<1x64xf32> to vector<64xf32>
    %145 = vector.shape_cast %144 : vector<64xf32> to vector<1x64xf32>
    %146 = vector.broadcast %145 : vector<1x64xf32> to vector<32x64xf32>
    %147 = arith.mulf %142, %146 : vector<32x64xf32>
    %148 = arith.addf %141, %147 : vector<32x64xf32>
    %149 = vector.extract_strided_slice %1 {offsets = [21, 0], sizes = [32, 64], strides = [1, 1]} : vector<64x64xf32> to vector<32x64xf32>
    %150 = vector.extract_strided_slice %2 {offsets = [21, 0], sizes = [1, 64], strides = [1, 1]} : vector<33x64xf32> to vector<1x64xf32>
    %151 = vector.shape_cast %150 : vector<1x64xf32> to vector<64xf32>
    %152 = vector.shape_cast %151 : vector<64xf32> to vector<1x64xf32>
    %153 = vector.broadcast %152 : vector<1x64xf32> to vector<32x64xf32>
    %154 = arith.mulf %149, %153 : vector<32x64xf32>
    %155 = arith.addf %148, %154 : vector<32x64xf32>
    %156 = vector.extract_strided_slice %1 {offsets = [22, 0], sizes = [32, 64], strides = [1, 1]} : vector<64x64xf32> to vector<32x64xf32>
    %157 = vector.extract_strided_slice %2 {offsets = [22, 0], sizes = [1, 64], strides = [1, 1]} : vector<33x64xf32> to vector<1x64xf32>
    %158 = vector.shape_cast %157 : vector<1x64xf32> to vector<64xf32>
    %159 = vector.shape_cast %158 : vector<64xf32> to vector<1x64xf32>
    %160 = vector.broadcast %159 : vector<1x64xf32> to vector<32x64xf32>
    %161 = arith.mulf %156, %160 : vector<32x64xf32>
    %162 = arith.addf %155, %161 : vector<32x64xf32>
    %163 = vector.extract_strided_slice %1 {offsets = [23, 0], sizes = [32, 64], strides = [1, 1]} : vector<64x64xf32> to vector<32x64xf32>
    %164 = vector.extract_strided_slice %2 {offsets = [23, 0], sizes = [1, 64], strides = [1, 1]} : vector<33x64xf32> to vector<1x64xf32>
    %165 = vector.shape_cast %164 : vector<1x64xf32> to vector<64xf32>
    %166 = vector.shape_cast %165 : vector<64xf32> to vector<1x64xf32>
    %167 = vector.broadcast %166 : vector<1x64xf32> to vector<32x64xf32>
    %168 = arith.mulf %163, %167 : vector<32x64xf32>
    %169 = arith.addf %162, %168 : vector<32x64xf32>
    %170 = vector.extract_strided_slice %1 {offsets = [24, 0], sizes = [32, 64], strides = [1, 1]} : vector<64x64xf32> to vector<32x64xf32>
    %171 = vector.extract_strided_slice %2 {offsets = [24, 0], sizes = [1, 64], strides = [1, 1]} : vector<33x64xf32> to vector<1x64xf32>
    %172 = vector.shape_cast %171 : vector<1x64xf32> to vector<64xf32>
    %173 = vector.shape_cast %172 : vector<64xf32> to vector<1x64xf32>
    %174 = vector.broadcast %173 : vector<1x64xf32> to vector<32x64xf32>
    %175 = arith.mulf %170, %174 : vector<32x64xf32>
    %176 = arith.addf %169, %175 : vector<32x64xf32>
    %177 = vector.extract_strided_slice %1 {offsets = [25, 0], sizes = [32, 64], strides = [1, 1]} : vector<64x64xf32> to vector<32x64xf32>
    %178 = vector.extract_strided_slice %2 {offsets = [25, 0], sizes = [1, 64], strides = [1, 1]} : vector<33x64xf32> to vector<1x64xf32>
    %179 = vector.shape_cast %178 : vector<1x64xf32> to vector<64xf32>
    %180 = vector.shape_cast %179 : vector<64xf32> to vector<1x64xf32>
    %181 = vector.broadcast %180 : vector<1x64xf32> to vector<32x64xf32>
    %182 = arith.mulf %177, %181 : vector<32x64xf32>
    %183 = arith.addf %176, %182 : vector<32x64xf32>
    %184 = vector.extract_strided_slice %1 {offsets = [26, 0], sizes = [32, 64], strides = [1, 1]} : vector<64x64xf32> to vector<32x64xf32>
    %185 = vector.extract_strided_slice %2 {offsets = [26, 0], sizes = [1, 64], strides = [1, 1]} : vector<33x64xf32> to vector<1x64xf32>
    %186 = vector.shape_cast %185 : vector<1x64xf32> to vector<64xf32>
    %187 = vector.shape_cast %186 : vector<64xf32> to vector<1x64xf32>
    %188 = vector.broadcast %187 : vector<1x64xf32> to vector<32x64xf32>
    %189 = arith.mulf %184, %188 : vector<32x64xf32>
    %190 = arith.addf %183, %189 : vector<32x64xf32>
    %191 = vector.extract_strided_slice %1 {offsets = [27, 0], sizes = [32, 64], strides = [1, 1]} : vector<64x64xf32> to vector<32x64xf32>
    %192 = vector.extract_strided_slice %2 {offsets = [27, 0], sizes = [1, 64], strides = [1, 1]} : vector<33x64xf32> to vector<1x64xf32>
    %193 = vector.shape_cast %192 : vector<1x64xf32> to vector<64xf32>
    %194 = vector.shape_cast %193 : vector<64xf32> to vector<1x64xf32>
    %195 = vector.broadcast %194 : vector<1x64xf32> to vector<32x64xf32>
    %196 = arith.mulf %191, %195 : vector<32x64xf32>
    %197 = arith.addf %190, %196 : vector<32x64xf32>
    %198 = vector.extract_strided_slice %1 {offsets = [28, 0], sizes = [32, 64], strides = [1, 1]} : vector<64x64xf32> to vector<32x64xf32>
    %199 = vector.extract_strided_slice %2 {offsets = [28, 0], sizes = [1, 64], strides = [1, 1]} : vector<33x64xf32> to vector<1x64xf32>
    %200 = vector.shape_cast %199 : vector<1x64xf32> to vector<64xf32>
    %201 = vector.shape_cast %200 : vector<64xf32> to vector<1x64xf32>
    %202 = vector.broadcast %201 : vector<1x64xf32> to vector<32x64xf32>
    %203 = arith.mulf %198, %202 : vector<32x64xf32>
    %204 = arith.addf %197, %203 : vector<32x64xf32>
    %205 = vector.extract_strided_slice %1 {offsets = [29, 0], sizes = [32, 64], strides = [1, 1]} : vector<64x64xf32> to vector<32x64xf32>
    %206 = vector.extract_strided_slice %2 {offsets = [29, 0], sizes = [1, 64], strides = [1, 1]} : vector<33x64xf32> to vector<1x64xf32>
    %207 = vector.shape_cast %206 : vector<1x64xf32> to vector<64xf32>
    %208 = vector.shape_cast %207 : vector<64xf32> to vector<1x64xf32>
    %209 = vector.broadcast %208 : vector<1x64xf32> to vector<32x64xf32>
    %210 = arith.mulf %205, %209 : vector<32x64xf32>
    %211 = arith.addf %204, %210 : vector<32x64xf32>
    %212 = vector.extract_strided_slice %1 {offsets = [30, 0], sizes = [32, 64], strides = [1, 1]} : vector<64x64xf32> to vector<32x64xf32>
    %213 = vector.extract_strided_slice %2 {offsets = [30, 0], sizes = [1, 64], strides = [1, 1]} : vector<33x64xf32> to vector<1x64xf32>
    %214 = vector.shape_cast %213 : vector<1x64xf32> to vector<64xf32>
    %215 = vector.shape_cast %214 : vector<64xf32> to vector<1x64xf32>
    %216 = vector.broadcast %215 : vector<1x64xf32> to vector<32x64xf32>
    %217 = arith.mulf %212, %216 : vector<32x64xf32>
    %218 = arith.addf %211, %217 : vector<32x64xf32>
    %219 = vector.extract_strided_slice %1 {offsets = [31, 0], sizes = [32, 64], strides = [1, 1]} : vector<64x64xf32> to vector<32x64xf32>
    %220 = vector.extract_strided_slice %2 {offsets = [31, 0], sizes = [1, 64], strides = [1, 1]} : vector<33x64xf32> to vector<1x64xf32>
    %221 = vector.shape_cast %220 : vector<1x64xf32> to vector<64xf32>
    %222 = vector.shape_cast %221 : vector<64xf32> to vector<1x64xf32>
    %223 = vector.broadcast %222 : vector<1x64xf32> to vector<32x64xf32>
    %224 = arith.mulf %219, %223 : vector<32x64xf32>
    %225 = arith.addf %218, %224 : vector<32x64xf32>
    %226 = vector.extract_strided_slice %1 {offsets = [32, 0], sizes = [32, 64], strides = [1, 1]} : vector<64x64xf32> to vector<32x64xf32>
    %227 = vector.extract_strided_slice %2 {offsets = [32, 0], sizes = [1, 64], strides = [1, 1]} : vector<33x64xf32> to vector<1x64xf32>
    %228 = vector.shape_cast %227 : vector<1x64xf32> to vector<64xf32>
    %229 = vector.shape_cast %228 : vector<64xf32> to vector<1x64xf32>
    %230 = vector.broadcast %229 : vector<1x64xf32> to vector<32x64xf32>
    %231 = arith.mulf %226, %230 : vector<32x64xf32>
    %232 = arith.addf %225, %231 : vector<32x64xf32>
    %c0_4 = arith.constant 0 : index
    %c0_5 = arith.constant 0 : index
    %c0_6 = arith.constant 0 : index
    %233 = vector.load %arg3[%c0_4, %c0_5, %c0_6] : memref<1x32x64xf32, #tpu.memory_space<vmem>>, vector<1x32x64xf32>
    %234 = vector.shape_cast %233 : vector<1x32x64xf32> to vector<32x64xf32>
    %235 = vector.shape_cast %232 : vector<32x64xf32> to vector<1x32x64xf32>
    tpu.vector_store %arg3[%c0_4, %c0_5, %c0_6], %235 {strides = array<i32>} : memref<1x32x64xf32, #tpu.memory_space<vmem>>, vector<1x32x64xf32>,
    return
  }
  func.func @transform_0(%arg0: i32) -> (i32, i32, i32) {
    %c0_i32 = arith.constant 0 : i32
    %c0_i32_0 = arith.constant 0 : i32
    %c0_i32_1 = arith.constant 0 : i32
    return %arg0, %c0_i32, %c0_i32_0 : i32, i32, i32
  }
  func.func @transform_1(%arg0: i32) -> (i32, i32) {
    %c0_i32 = arith.constant 0 : i32
    %c0_i32_0 = arith.constant 0 : i32
    %c0_i32_1 = arith.constant 0 : i32
    return %c0_i32, %c0_i32_0 : i32, i32
  }
  func.func @transform_2(%arg0: i32) -> (i32, i32, i32) {
    %c0_i32 = arith.constant 0 : i32
    %c0_i32_0 = arith.constant 0 : i32
    %c0_i32_1 = arith.constant 0 : i32
    return %arg0, %c0_i32, %c0_i32_0 : i32, i32, i32
  }
}

module attributes {stable_mosaic.version = 11 : i64} {
  func.func @_ppeg_kernel(%arg0: memref<2x9x9x64xf32, #tpu.memory_space<vmem>>, %arg1: memref<7x7x64xf32, #tpu.memory_space<vmem>>, %arg2: memref<1x1x1x64xf32, #tpu.memory_space<vmem>>, %arg3: memref<2x3x3x64xf32, #tpu.memory_space<vmem>>) attributes {dimension_semantics = [], scalar_prefetch = 0 : i64, scratch_operands = 0 : i64, tpu.core_type = #tpu.core_type<tc>} {
    %c0 = arith.constant 0 : index
    %c0_0 = arith.constant 0 : index
    %c0_1 = arith.constant 0 : index
    %c0_2 = arith.constant 0 : index
    %0 = vector.load %arg0[%c0, %c0_0, %c0_1, %c0_2] : memref<2x9x9x64xf32, #tpu.memory_space<vmem>>, vector<2x9x9x64xf32>
    %c0_3 = arith.constant 0 : index
    %c0_4 = arith.constant 0 : index
    %c0_5 = arith.constant 0 : index
    %1 = vector.load %arg1[%c0_3, %c0_4, %c0_5] : memref<7x7x64xf32, #tpu.memory_space<vmem>>, vector<7x7x64xf32>
    %2 = vector.extract_strided_slice %0 {offsets = [0, 0, 0, 0], sizes = [2, 3, 3, 64], strides = [1, 1, 1, 1]} : vector<2x9x9x64xf32> to vector<2x3x3x64xf32>
    %3 = vector.extract_strided_slice %1 {offsets = [0, 0, 0], sizes = [1, 1, 64], strides = [1, 1, 1]} : vector<7x7x64xf32> to vector<1x1x64xf32>
    %4 = vector.shape_cast %3 : vector<1x1x64xf32> to vector<64xf32>
    %5 = vector.shape_cast %4 : vector<64xf32> to vector<1x1x1x64xf32>
    %6 = vector.broadcast %5 : vector<1x1x1x64xf32> to vector<2x3x3x64xf32>
    %7 = arith.mulf %2, %6 : vector<2x3x3x64xf32>
    %8 = vector.extract_strided_slice %0 {offsets = [0, 0, 1, 0], sizes = [2, 3, 3, 64], strides = [1, 1, 1, 1]} : vector<2x9x9x64xf32> to vector<2x3x3x64xf32>
    %9 = vector.extract_strided_slice %1 {offsets = [0, 1, 0], sizes = [1, 1, 64], strides = [1, 1, 1]} : vector<7x7x64xf32> to vector<1x1x64xf32>
    %10 = vector.shape_cast %9 : vector<1x1x64xf32> to vector<64xf32>
    %11 = vector.shape_cast %10 : vector<64xf32> to vector<1x1x1x64xf32>
    %12 = vector.broadcast %11 : vector<1x1x1x64xf32> to vector<2x3x3x64xf32>
    %13 = arith.mulf %8, %12 : vector<2x3x3x64xf32>
    %14 = arith.addf %7, %13 : vector<2x3x3x64xf32>
    %15 = vector.extract_strided_slice %0 {offsets = [0, 0, 2, 0], sizes = [2, 3, 3, 64], strides = [1, 1, 1, 1]} : vector<2x9x9x64xf32> to vector<2x3x3x64xf32>
    %16 = vector.extract_strided_slice %1 {offsets = [0, 2, 0], sizes = [1, 1, 64], strides = [1, 1, 1]} : vector<7x7x64xf32> to vector<1x1x64xf32>
    %17 = vector.shape_cast %16 : vector<1x1x64xf32> to vector<64xf32>
    %18 = vector.shape_cast %17 : vector<64xf32> to vector<1x1x1x64xf32>
    %19 = vector.broadcast %18 : vector<1x1x1x64xf32> to vector<2x3x3x64xf32>
    %20 = arith.mulf %15, %19 : vector<2x3x3x64xf32>
    %21 = arith.addf %14, %20 : vector<2x3x3x64xf32>
    %22 = vector.extract_strided_slice %0 {offsets = [0, 0, 3, 0], sizes = [2, 3, 3, 64], strides = [1, 1, 1, 1]} : vector<2x9x9x64xf32> to vector<2x3x3x64xf32>
    %23 = vector.extract_strided_slice %1 {offsets = [0, 3, 0], sizes = [1, 1, 64], strides = [1, 1, 1]} : vector<7x7x64xf32> to vector<1x1x64xf32>
    %24 = vector.shape_cast %23 : vector<1x1x64xf32> to vector<64xf32>
    %25 = vector.shape_cast %24 : vector<64xf32> to vector<1x1x1x64xf32>
    %26 = vector.broadcast %25 : vector<1x1x1x64xf32> to vector<2x3x3x64xf32>
    %27 = arith.mulf %22, %26 : vector<2x3x3x64xf32>
    %28 = arith.addf %21, %27 : vector<2x3x3x64xf32>
    %29 = vector.extract_strided_slice %0 {offsets = [0, 0, 4, 0], sizes = [2, 3, 3, 64], strides = [1, 1, 1, 1]} : vector<2x9x9x64xf32> to vector<2x3x3x64xf32>
    %30 = vector.extract_strided_slice %1 {offsets = [0, 4, 0], sizes = [1, 1, 64], strides = [1, 1, 1]} : vector<7x7x64xf32> to vector<1x1x64xf32>
    %31 = vector.shape_cast %30 : vector<1x1x64xf32> to vector<64xf32>
    %32 = vector.shape_cast %31 : vector<64xf32> to vector<1x1x1x64xf32>
    %33 = vector.broadcast %32 : vector<1x1x1x64xf32> to vector<2x3x3x64xf32>
    %34 = arith.mulf %29, %33 : vector<2x3x3x64xf32>
    %35 = arith.addf %28, %34 : vector<2x3x3x64xf32>
    %36 = vector.extract_strided_slice %0 {offsets = [0, 0, 5, 0], sizes = [2, 3, 3, 64], strides = [1, 1, 1, 1]} : vector<2x9x9x64xf32> to vector<2x3x3x64xf32>
    %37 = vector.extract_strided_slice %1 {offsets = [0, 5, 0], sizes = [1, 1, 64], strides = [1, 1, 1]} : vector<7x7x64xf32> to vector<1x1x64xf32>
    %38 = vector.shape_cast %37 : vector<1x1x64xf32> to vector<64xf32>
    %39 = vector.shape_cast %38 : vector<64xf32> to vector<1x1x1x64xf32>
    %40 = vector.broadcast %39 : vector<1x1x1x64xf32> to vector<2x3x3x64xf32>
    %41 = arith.mulf %36, %40 : vector<2x3x3x64xf32>
    %42 = arith.addf %35, %41 : vector<2x3x3x64xf32>
    %43 = vector.extract_strided_slice %0 {offsets = [0, 0, 6, 0], sizes = [2, 3, 3, 64], strides = [1, 1, 1, 1]} : vector<2x9x9x64xf32> to vector<2x3x3x64xf32>
    %44 = vector.extract_strided_slice %1 {offsets = [0, 6, 0], sizes = [1, 1, 64], strides = [1, 1, 1]} : vector<7x7x64xf32> to vector<1x1x64xf32>
    %45 = vector.shape_cast %44 : vector<1x1x64xf32> to vector<64xf32>
    %46 = vector.shape_cast %45 : vector<64xf32> to vector<1x1x1x64xf32>
    %47 = vector.broadcast %46 : vector<1x1x1x64xf32> to vector<2x3x3x64xf32>
    %48 = arith.mulf %43, %47 : vector<2x3x3x64xf32>
    %49 = arith.addf %42, %48 : vector<2x3x3x64xf32>
    %50 = vector.extract_strided_slice %0 {offsets = [0, 1, 0, 0], sizes = [2, 3, 3, 64], strides = [1, 1, 1, 1]} : vector<2x9x9x64xf32> to vector<2x3x3x64xf32>
    %51 = vector.extract_strided_slice %1 {offsets = [1, 0, 0], sizes = [1, 1, 64], strides = [1, 1, 1]} : vector<7x7x64xf32> to vector<1x1x64xf32>
    %52 = vector.shape_cast %51 : vector<1x1x64xf32> to vector<64xf32>
    %53 = vector.shape_cast %52 : vector<64xf32> to vector<1x1x1x64xf32>
    %54 = vector.broadcast %53 : vector<1x1x1x64xf32> to vector<2x3x3x64xf32>
    %55 = arith.mulf %50, %54 : vector<2x3x3x64xf32>
    %56 = arith.addf %49, %55 : vector<2x3x3x64xf32>
    %57 = vector.extract_strided_slice %0 {offsets = [0, 1, 1, 0], sizes = [2, 3, 3, 64], strides = [1, 1, 1, 1]} : vector<2x9x9x64xf32> to vector<2x3x3x64xf32>
    %58 = vector.extract_strided_slice %1 {offsets = [1, 1, 0], sizes = [1, 1, 64], strides = [1, 1, 1]} : vector<7x7x64xf32> to vector<1x1x64xf32>
    %59 = vector.shape_cast %58 : vector<1x1x64xf32> to vector<64xf32>
    %60 = vector.shape_cast %59 : vector<64xf32> to vector<1x1x1x64xf32>
    %61 = vector.broadcast %60 : vector<1x1x1x64xf32> to vector<2x3x3x64xf32>
    %62 = arith.mulf %57, %61 : vector<2x3x3x64xf32>
    %63 = arith.addf %56, %62 : vector<2x3x3x64xf32>
    %64 = vector.extract_strided_slice %0 {offsets = [0, 1, 2, 0], sizes = [2, 3, 3, 64], strides = [1, 1, 1, 1]} : vector<2x9x9x64xf32> to vector<2x3x3x64xf32>
    %65 = vector.extract_strided_slice %1 {offsets = [1, 2, 0], sizes = [1, 1, 64], strides = [1, 1, 1]} : vector<7x7x64xf32> to vector<1x1x64xf32>
    %66 = vector.shape_cast %65 : vector<1x1x64xf32> to vector<64xf32>
    %67 = vector.shape_cast %66 : vector<64xf32> to vector<1x1x1x64xf32>
    %68 = vector.broadcast %67 : vector<1x1x1x64xf32> to vector<2x3x3x64xf32>
    %69 = arith.mulf %64, %68 : vector<2x3x3x64xf32>
    %70 = arith.addf %63, %69 : vector<2x3x3x64xf32>
    %71 = vector.extract_strided_slice %0 {offsets = [0, 1, 3, 0], sizes = [2, 3, 3, 64], strides = [1, 1, 1, 1]} : vector<2x9x9x64xf32> to vector<2x3x3x64xf32>
    %72 = vector.extract_strided_slice %1 {offsets = [1, 3, 0], sizes = [1, 1, 64], strides = [1, 1, 1]} : vector<7x7x64xf32> to vector<1x1x64xf32>
    %73 = vector.shape_cast %72 : vector<1x1x64xf32> to vector<64xf32>
    %74 = vector.shape_cast %73 : vector<64xf32> to vector<1x1x1x64xf32>
    %75 = vector.broadcast %74 : vector<1x1x1x64xf32> to vector<2x3x3x64xf32>
    %76 = arith.mulf %71, %75 : vector<2x3x3x64xf32>
    %77 = arith.addf %70, %76 : vector<2x3x3x64xf32>
    %78 = vector.extract_strided_slice %0 {offsets = [0, 1, 4, 0], sizes = [2, 3, 3, 64], strides = [1, 1, 1, 1]} : vector<2x9x9x64xf32> to vector<2x3x3x64xf32>
    %79 = vector.extract_strided_slice %1 {offsets = [1, 4, 0], sizes = [1, 1, 64], strides = [1, 1, 1]} : vector<7x7x64xf32> to vector<1x1x64xf32>
    %80 = vector.shape_cast %79 : vector<1x1x64xf32> to vector<64xf32>
    %81 = vector.shape_cast %80 : vector<64xf32> to vector<1x1x1x64xf32>
    %82 = vector.broadcast %81 : vector<1x1x1x64xf32> to vector<2x3x3x64xf32>
    %83 = arith.mulf %78, %82 : vector<2x3x3x64xf32>
    %84 = arith.addf %77, %83 : vector<2x3x3x64xf32>
    %85 = vector.extract_strided_slice %0 {offsets = [0, 1, 5, 0], sizes = [2, 3, 3, 64], strides = [1, 1, 1, 1]} : vector<2x9x9x64xf32> to vector<2x3x3x64xf32>
    %86 = vector.extract_strided_slice %1 {offsets = [1, 5, 0], sizes = [1, 1, 64], strides = [1, 1, 1]} : vector<7x7x64xf32> to vector<1x1x64xf32>
    %87 = vector.shape_cast %86 : vector<1x1x64xf32> to vector<64xf32>
    %88 = vector.shape_cast %87 : vector<64xf32> to vector<1x1x1x64xf32>
    %89 = vector.broadcast %88 : vector<1x1x1x64xf32> to vector<2x3x3x64xf32>
    %90 = arith.mulf %85, %89 : vector<2x3x3x64xf32>
    %91 = arith.addf %84, %90 : vector<2x3x3x64xf32>
    %92 = vector.extract_strided_slice %0 {offsets = [0, 1, 6, 0], sizes = [2, 3, 3, 64], strides = [1, 1, 1, 1]} : vector<2x9x9x64xf32> to vector<2x3x3x64xf32>
    %93 = vector.extract_strided_slice %1 {offsets = [1, 6, 0], sizes = [1, 1, 64], strides = [1, 1, 1]} : vector<7x7x64xf32> to vector<1x1x64xf32>
    %94 = vector.shape_cast %93 : vector<1x1x64xf32> to vector<64xf32>
    %95 = vector.shape_cast %94 : vector<64xf32> to vector<1x1x1x64xf32>
    %96 = vector.broadcast %95 : vector<1x1x1x64xf32> to vector<2x3x3x64xf32>
    %97 = arith.mulf %92, %96 : vector<2x3x3x64xf32>
    %98 = arith.addf %91, %97 : vector<2x3x3x64xf32>
    %99 = vector.extract_strided_slice %0 {offsets = [0, 2, 0, 0], sizes = [2, 3, 3, 64], strides = [1, 1, 1, 1]} : vector<2x9x9x64xf32> to vector<2x3x3x64xf32>
    %100 = vector.extract_strided_slice %1 {offsets = [2, 0, 0], sizes = [1, 1, 64], strides = [1, 1, 1]} : vector<7x7x64xf32> to vector<1x1x64xf32>
    %101 = vector.shape_cast %100 : vector<1x1x64xf32> to vector<64xf32>
    %102 = vector.shape_cast %101 : vector<64xf32> to vector<1x1x1x64xf32>
    %103 = vector.broadcast %102 : vector<1x1x1x64xf32> to vector<2x3x3x64xf32>
    %104 = arith.mulf %99, %103 : vector<2x3x3x64xf32>
    %105 = arith.addf %98, %104 : vector<2x3x3x64xf32>
    %106 = vector.extract_strided_slice %0 {offsets = [0, 2, 1, 0], sizes = [2, 3, 3, 64], strides = [1, 1, 1, 1]} : vector<2x9x9x64xf32> to vector<2x3x3x64xf32>
    %107 = vector.extract_strided_slice %1 {offsets = [2, 1, 0], sizes = [1, 1, 64], strides = [1, 1, 1]} : vector<7x7x64xf32> to vector<1x1x64xf32>
    %108 = vector.shape_cast %107 : vector<1x1x64xf32> to vector<64xf32>
    %109 = vector.shape_cast %108 : vector<64xf32> to vector<1x1x1x64xf32>
    %110 = vector.broadcast %109 : vector<1x1x1x64xf32> to vector<2x3x3x64xf32>
    %111 = arith.mulf %106, %110 : vector<2x3x3x64xf32>
    %112 = arith.addf %105, %111 : vector<2x3x3x64xf32>
    %113 = vector.extract_strided_slice %0 {offsets = [0, 2, 2, 0], sizes = [2, 3, 3, 64], strides = [1, 1, 1, 1]} : vector<2x9x9x64xf32> to vector<2x3x3x64xf32>
    %114 = vector.extract_strided_slice %1 {offsets = [2, 2, 0], sizes = [1, 1, 64], strides = [1, 1, 1]} : vector<7x7x64xf32> to vector<1x1x64xf32>
    %115 = vector.shape_cast %114 : vector<1x1x64xf32> to vector<64xf32>
    %116 = vector.shape_cast %115 : vector<64xf32> to vector<1x1x1x64xf32>
    %117 = vector.broadcast %116 : vector<1x1x1x64xf32> to vector<2x3x3x64xf32>
    %118 = arith.mulf %113, %117 : vector<2x3x3x64xf32>
    %119 = arith.addf %112, %118 : vector<2x3x3x64xf32>
    %120 = vector.extract_strided_slice %0 {offsets = [0, 2, 3, 0], sizes = [2, 3, 3, 64], strides = [1, 1, 1, 1]} : vector<2x9x9x64xf32> to vector<2x3x3x64xf32>
    %121 = vector.extract_strided_slice %1 {offsets = [2, 3, 0], sizes = [1, 1, 64], strides = [1, 1, 1]} : vector<7x7x64xf32> to vector<1x1x64xf32>
    %122 = vector.shape_cast %121 : vector<1x1x64xf32> to vector<64xf32>
    %123 = vector.shape_cast %122 : vector<64xf32> to vector<1x1x1x64xf32>
    %124 = vector.broadcast %123 : vector<1x1x1x64xf32> to vector<2x3x3x64xf32>
    %125 = arith.mulf %120, %124 : vector<2x3x3x64xf32>
    %126 = arith.addf %119, %125 : vector<2x3x3x64xf32>
    %127 = vector.extract_strided_slice %0 {offsets = [0, 2, 4, 0], sizes = [2, 3, 3, 64], strides = [1, 1, 1, 1]} : vector<2x9x9x64xf32> to vector<2x3x3x64xf32>
    %128 = vector.extract_strided_slice %1 {offsets = [2, 4, 0], sizes = [1, 1, 64], strides = [1, 1, 1]} : vector<7x7x64xf32> to vector<1x1x64xf32>
    %129 = vector.shape_cast %128 : vector<1x1x64xf32> to vector<64xf32>
    %130 = vector.shape_cast %129 : vector<64xf32> to vector<1x1x1x64xf32>
    %131 = vector.broadcast %130 : vector<1x1x1x64xf32> to vector<2x3x3x64xf32>
    %132 = arith.mulf %127, %131 : vector<2x3x3x64xf32>
    %133 = arith.addf %126, %132 : vector<2x3x3x64xf32>
    %134 = vector.extract_strided_slice %0 {offsets = [0, 2, 5, 0], sizes = [2, 3, 3, 64], strides = [1, 1, 1, 1]} : vector<2x9x9x64xf32> to vector<2x3x3x64xf32>
    %135 = vector.extract_strided_slice %1 {offsets = [2, 5, 0], sizes = [1, 1, 64], strides = [1, 1, 1]} : vector<7x7x64xf32> to vector<1x1x64xf32>
    %136 = vector.shape_cast %135 : vector<1x1x64xf32> to vector<64xf32>
    %137 = vector.shape_cast %136 : vector<64xf32> to vector<1x1x1x64xf32>
    %138 = vector.broadcast %137 : vector<1x1x1x64xf32> to vector<2x3x3x64xf32>
    %139 = arith.mulf %134, %138 : vector<2x3x3x64xf32>
    %140 = arith.addf %133, %139 : vector<2x3x3x64xf32>
    %141 = vector.extract_strided_slice %0 {offsets = [0, 2, 6, 0], sizes = [2, 3, 3, 64], strides = [1, 1, 1, 1]} : vector<2x9x9x64xf32> to vector<2x3x3x64xf32>
    %142 = vector.extract_strided_slice %1 {offsets = [2, 6, 0], sizes = [1, 1, 64], strides = [1, 1, 1]} : vector<7x7x64xf32> to vector<1x1x64xf32>
    %143 = vector.shape_cast %142 : vector<1x1x64xf32> to vector<64xf32>
    %144 = vector.shape_cast %143 : vector<64xf32> to vector<1x1x1x64xf32>
    %145 = vector.broadcast %144 : vector<1x1x1x64xf32> to vector<2x3x3x64xf32>
    %146 = arith.mulf %141, %145 : vector<2x3x3x64xf32>
    %147 = arith.addf %140, %146 : vector<2x3x3x64xf32>
    %148 = vector.extract_strided_slice %0 {offsets = [0, 3, 0, 0], sizes = [2, 3, 3, 64], strides = [1, 1, 1, 1]} : vector<2x9x9x64xf32> to vector<2x3x3x64xf32>
    %149 = vector.extract_strided_slice %1 {offsets = [3, 0, 0], sizes = [1, 1, 64], strides = [1, 1, 1]} : vector<7x7x64xf32> to vector<1x1x64xf32>
    %150 = vector.shape_cast %149 : vector<1x1x64xf32> to vector<64xf32>
    %151 = vector.shape_cast %150 : vector<64xf32> to vector<1x1x1x64xf32>
    %152 = vector.broadcast %151 : vector<1x1x1x64xf32> to vector<2x3x3x64xf32>
    %153 = arith.mulf %148, %152 : vector<2x3x3x64xf32>
    %154 = arith.addf %147, %153 : vector<2x3x3x64xf32>
    %155 = vector.extract_strided_slice %0 {offsets = [0, 3, 1, 0], sizes = [2, 3, 3, 64], strides = [1, 1, 1, 1]} : vector<2x9x9x64xf32> to vector<2x3x3x64xf32>
    %156 = vector.extract_strided_slice %1 {offsets = [3, 1, 0], sizes = [1, 1, 64], strides = [1, 1, 1]} : vector<7x7x64xf32> to vector<1x1x64xf32>
    %157 = vector.shape_cast %156 : vector<1x1x64xf32> to vector<64xf32>
    %158 = vector.shape_cast %157 : vector<64xf32> to vector<1x1x1x64xf32>
    %159 = vector.broadcast %158 : vector<1x1x1x64xf32> to vector<2x3x3x64xf32>
    %160 = arith.mulf %155, %159 : vector<2x3x3x64xf32>
    %161 = arith.addf %154, %160 : vector<2x3x3x64xf32>
    %162 = vector.extract_strided_slice %0 {offsets = [0, 3, 2, 0], sizes = [2, 3, 3, 64], strides = [1, 1, 1, 1]} : vector<2x9x9x64xf32> to vector<2x3x3x64xf32>
    %163 = vector.extract_strided_slice %1 {offsets = [3, 2, 0], sizes = [1, 1, 64], strides = [1, 1, 1]} : vector<7x7x64xf32> to vector<1x1x64xf32>
    %164 = vector.shape_cast %163 : vector<1x1x64xf32> to vector<64xf32>
    %165 = vector.shape_cast %164 : vector<64xf32> to vector<1x1x1x64xf32>
    %166 = vector.broadcast %165 : vector<1x1x1x64xf32> to vector<2x3x3x64xf32>
    %167 = arith.mulf %162, %166 : vector<2x3x3x64xf32>
    %168 = arith.addf %161, %167 : vector<2x3x3x64xf32>
    %169 = vector.extract_strided_slice %0 {offsets = [0, 3, 3, 0], sizes = [2, 3, 3, 64], strides = [1, 1, 1, 1]} : vector<2x9x9x64xf32> to vector<2x3x3x64xf32>
    %170 = vector.extract_strided_slice %1 {offsets = [3, 3, 0], sizes = [1, 1, 64], strides = [1, 1, 1]} : vector<7x7x64xf32> to vector<1x1x64xf32>
    %171 = vector.shape_cast %170 : vector<1x1x64xf32> to vector<64xf32>
    %172 = vector.shape_cast %171 : vector<64xf32> to vector<1x1x1x64xf32>
    %173 = vector.broadcast %172 : vector<1x1x1x64xf32> to vector<2x3x3x64xf32>
    %174 = arith.mulf %169, %173 : vector<2x3x3x64xf32>
    %175 = arith.addf %168, %174 : vector<2x3x3x64xf32>
    %176 = vector.extract_strided_slice %0 {offsets = [0, 3, 4, 0], sizes = [2, 3, 3, 64], strides = [1, 1, 1, 1]} : vector<2x9x9x64xf32> to vector<2x3x3x64xf32>
    %177 = vector.extract_strided_slice %1 {offsets = [3, 4, 0], sizes = [1, 1, 64], strides = [1, 1, 1]} : vector<7x7x64xf32> to vector<1x1x64xf32>
    %178 = vector.shape_cast %177 : vector<1x1x64xf32> to vector<64xf32>
    %179 = vector.shape_cast %178 : vector<64xf32> to vector<1x1x1x64xf32>
    %180 = vector.broadcast %179 : vector<1x1x1x64xf32> to vector<2x3x3x64xf32>
    %181 = arith.mulf %176, %180 : vector<2x3x3x64xf32>
    %182 = arith.addf %175, %181 : vector<2x3x3x64xf32>
    %183 = vector.extract_strided_slice %0 {offsets = [0, 3, 5, 0], sizes = [2, 3, 3, 64], strides = [1, 1, 1, 1]} : vector<2x9x9x64xf32> to vector<2x3x3x64xf32>
    %184 = vector.extract_strided_slice %1 {offsets = [3, 5, 0], sizes = [1, 1, 64], strides = [1, 1, 1]} : vector<7x7x64xf32> to vector<1x1x64xf32>
    %185 = vector.shape_cast %184 : vector<1x1x64xf32> to vector<64xf32>
    %186 = vector.shape_cast %185 : vector<64xf32> to vector<1x1x1x64xf32>
    %187 = vector.broadcast %186 : vector<1x1x1x64xf32> to vector<2x3x3x64xf32>
    %188 = arith.mulf %183, %187 : vector<2x3x3x64xf32>
    %189 = arith.addf %182, %188 : vector<2x3x3x64xf32>
    %190 = vector.extract_strided_slice %0 {offsets = [0, 3, 6, 0], sizes = [2, 3, 3, 64], strides = [1, 1, 1, 1]} : vector<2x9x9x64xf32> to vector<2x3x3x64xf32>
    %191 = vector.extract_strided_slice %1 {offsets = [3, 6, 0], sizes = [1, 1, 64], strides = [1, 1, 1]} : vector<7x7x64xf32> to vector<1x1x64xf32>
    %192 = vector.shape_cast %191 : vector<1x1x64xf32> to vector<64xf32>
    %193 = vector.shape_cast %192 : vector<64xf32> to vector<1x1x1x64xf32>
    %194 = vector.broadcast %193 : vector<1x1x1x64xf32> to vector<2x3x3x64xf32>
    %195 = arith.mulf %190, %194 : vector<2x3x3x64xf32>
    %196 = arith.addf %189, %195 : vector<2x3x3x64xf32>
    %197 = vector.extract_strided_slice %0 {offsets = [0, 4, 0, 0], sizes = [2, 3, 3, 64], strides = [1, 1, 1, 1]} : vector<2x9x9x64xf32> to vector<2x3x3x64xf32>
    %198 = vector.extract_strided_slice %1 {offsets = [4, 0, 0], sizes = [1, 1, 64], strides = [1, 1, 1]} : vector<7x7x64xf32> to vector<1x1x64xf32>
    %199 = vector.shape_cast %198 : vector<1x1x64xf32> to vector<64xf32>
    %200 = vector.shape_cast %199 : vector<64xf32> to vector<1x1x1x64xf32>
    %201 = vector.broadcast %200 : vector<1x1x1x64xf32> to vector<2x3x3x64xf32>
    %202 = arith.mulf %197, %201 : vector<2x3x3x64xf32>
    %203 = arith.addf %196, %202 : vector<2x3x3x64xf32>
    %204 = vector.extract_strided_slice %0 {offsets = [0, 4, 1, 0], sizes = [2, 3, 3, 64], strides = [1, 1, 1, 1]} : vector<2x9x9x64xf32> to vector<2x3x3x64xf32>
    %205 = vector.extract_strided_slice %1 {offsets = [4, 1, 0], sizes = [1, 1, 64], strides = [1, 1, 1]} : vector<7x7x64xf32> to vector<1x1x64xf32>
    %206 = vector.shape_cast %205 : vector<1x1x64xf32> to vector<64xf32>
    %207 = vector.shape_cast %206 : vector<64xf32> to vector<1x1x1x64xf32>
    %208 = vector.broadcast %207 : vector<1x1x1x64xf32> to vector<2x3x3x64xf32>
    %209 = arith.mulf %204, %208 : vector<2x3x3x64xf32>
    %210 = arith.addf %203, %209 : vector<2x3x3x64xf32>
    %211 = vector.extract_strided_slice %0 {offsets = [0, 4, 2, 0], sizes = [2, 3, 3, 64], strides = [1, 1, 1, 1]} : vector<2x9x9x64xf32> to vector<2x3x3x64xf32>
    %212 = vector.extract_strided_slice %1 {offsets = [4, 2, 0], sizes = [1, 1, 64], strides = [1, 1, 1]} : vector<7x7x64xf32> to vector<1x1x64xf32>
    %213 = vector.shape_cast %212 : vector<1x1x64xf32> to vector<64xf32>
    %214 = vector.shape_cast %213 : vector<64xf32> to vector<1x1x1x64xf32>
    %215 = vector.broadcast %214 : vector<1x1x1x64xf32> to vector<2x3x3x64xf32>
    %216 = arith.mulf %211, %215 : vector<2x3x3x64xf32>
    %217 = arith.addf %210, %216 : vector<2x3x3x64xf32>
    %218 = vector.extract_strided_slice %0 {offsets = [0, 4, 3, 0], sizes = [2, 3, 3, 64], strides = [1, 1, 1, 1]} : vector<2x9x9x64xf32> to vector<2x3x3x64xf32>
    %219 = vector.extract_strided_slice %1 {offsets = [4, 3, 0], sizes = [1, 1, 64], strides = [1, 1, 1]} : vector<7x7x64xf32> to vector<1x1x64xf32>
    %220 = vector.shape_cast %219 : vector<1x1x64xf32> to vector<64xf32>
    %221 = vector.shape_cast %220 : vector<64xf32> to vector<1x1x1x64xf32>
    %222 = vector.broadcast %221 : vector<1x1x1x64xf32> to vector<2x3x3x64xf32>
    %223 = arith.mulf %218, %222 : vector<2x3x3x64xf32>
    %224 = arith.addf %217, %223 : vector<2x3x3x64xf32>
    %225 = vector.extract_strided_slice %0 {offsets = [0, 4, 4, 0], sizes = [2, 3, 3, 64], strides = [1, 1, 1, 1]} : vector<2x9x9x64xf32> to vector<2x3x3x64xf32>
    %226 = vector.extract_strided_slice %1 {offsets = [4, 4, 0], sizes = [1, 1, 64], strides = [1, 1, 1]} : vector<7x7x64xf32> to vector<1x1x64xf32>
    %227 = vector.shape_cast %226 : vector<1x1x64xf32> to vector<64xf32>
    %228 = vector.shape_cast %227 : vector<64xf32> to vector<1x1x1x64xf32>
    %229 = vector.broadcast %228 : vector<1x1x1x64xf32> to vector<2x3x3x64xf32>
    %230 = arith.mulf %225, %229 : vector<2x3x3x64xf32>
    %231 = arith.addf %224, %230 : vector<2x3x3x64xf32>
    %232 = vector.extract_strided_slice %0 {offsets = [0, 4, 5, 0], sizes = [2, 3, 3, 64], strides = [1, 1, 1, 1]} : vector<2x9x9x64xf32> to vector<2x3x3x64xf32>
    %233 = vector.extract_strided_slice %1 {offsets = [4, 5, 0], sizes = [1, 1, 64], strides = [1, 1, 1]} : vector<7x7x64xf32> to vector<1x1x64xf32>
    %234 = vector.shape_cast %233 : vector<1x1x64xf32> to vector<64xf32>
    %235 = vector.shape_cast %234 : vector<64xf32> to vector<1x1x1x64xf32>
    %236 = vector.broadcast %235 : vector<1x1x1x64xf32> to vector<2x3x3x64xf32>
    %237 = arith.mulf %232, %236 : vector<2x3x3x64xf32>
    %238 = arith.addf %231, %237 : vector<2x3x3x64xf32>
    %239 = vector.extract_strided_slice %0 {offsets = [0, 4, 6, 0], sizes = [2, 3, 3, 64], strides = [1, 1, 1, 1]} : vector<2x9x9x64xf32> to vector<2x3x3x64xf32>
    %240 = vector.extract_strided_slice %1 {offsets = [4, 6, 0], sizes = [1, 1, 64], strides = [1, 1, 1]} : vector<7x7x64xf32> to vector<1x1x64xf32>
    %241 = vector.shape_cast %240 : vector<1x1x64xf32> to vector<64xf32>
    %242 = vector.shape_cast %241 : vector<64xf32> to vector<1x1x1x64xf32>
    %243 = vector.broadcast %242 : vector<1x1x1x64xf32> to vector<2x3x3x64xf32>
    %244 = arith.mulf %239, %243 : vector<2x3x3x64xf32>
    %245 = arith.addf %238, %244 : vector<2x3x3x64xf32>
    %246 = vector.extract_strided_slice %0 {offsets = [0, 5, 0, 0], sizes = [2, 3, 3, 64], strides = [1, 1, 1, 1]} : vector<2x9x9x64xf32> to vector<2x3x3x64xf32>
    %247 = vector.extract_strided_slice %1 {offsets = [5, 0, 0], sizes = [1, 1, 64], strides = [1, 1, 1]} : vector<7x7x64xf32> to vector<1x1x64xf32>
    %248 = vector.shape_cast %247 : vector<1x1x64xf32> to vector<64xf32>
    %249 = vector.shape_cast %248 : vector<64xf32> to vector<1x1x1x64xf32>
    %250 = vector.broadcast %249 : vector<1x1x1x64xf32> to vector<2x3x3x64xf32>
    %251 = arith.mulf %246, %250 : vector<2x3x3x64xf32>
    %252 = arith.addf %245, %251 : vector<2x3x3x64xf32>
    %253 = vector.extract_strided_slice %0 {offsets = [0, 5, 1, 0], sizes = [2, 3, 3, 64], strides = [1, 1, 1, 1]} : vector<2x9x9x64xf32> to vector<2x3x3x64xf32>
    %254 = vector.extract_strided_slice %1 {offsets = [5, 1, 0], sizes = [1, 1, 64], strides = [1, 1, 1]} : vector<7x7x64xf32> to vector<1x1x64xf32>
    %255 = vector.shape_cast %254 : vector<1x1x64xf32> to vector<64xf32>
    %256 = vector.shape_cast %255 : vector<64xf32> to vector<1x1x1x64xf32>
    %257 = vector.broadcast %256 : vector<1x1x1x64xf32> to vector<2x3x3x64xf32>
    %258 = arith.mulf %253, %257 : vector<2x3x3x64xf32>
    %259 = arith.addf %252, %258 : vector<2x3x3x64xf32>
    %260 = vector.extract_strided_slice %0 {offsets = [0, 5, 2, 0], sizes = [2, 3, 3, 64], strides = [1, 1, 1, 1]} : vector<2x9x9x64xf32> to vector<2x3x3x64xf32>
    %261 = vector.extract_strided_slice %1 {offsets = [5, 2, 0], sizes = [1, 1, 64], strides = [1, 1, 1]} : vector<7x7x64xf32> to vector<1x1x64xf32>
    %262 = vector.shape_cast %261 : vector<1x1x64xf32> to vector<64xf32>
    %263 = vector.shape_cast %262 : vector<64xf32> to vector<1x1x1x64xf32>
    %264 = vector.broadcast %263 : vector<1x1x1x64xf32> to vector<2x3x3x64xf32>
    %265 = arith.mulf %260, %264 : vector<2x3x3x64xf32>
    %266 = arith.addf %259, %265 : vector<2x3x3x64xf32>
    %267 = vector.extract_strided_slice %0 {offsets = [0, 5, 3, 0], sizes = [2, 3, 3, 64], strides = [1, 1, 1, 1]} : vector<2x9x9x64xf32> to vector<2x3x3x64xf32>
    %268 = vector.extract_strided_slice %1 {offsets = [5, 3, 0], sizes = [1, 1, 64], strides = [1, 1, 1]} : vector<7x7x64xf32> to vector<1x1x64xf32>
    %269 = vector.shape_cast %268 : vector<1x1x64xf32> to vector<64xf32>
    %270 = vector.shape_cast %269 : vector<64xf32> to vector<1x1x1x64xf32>
    %271 = vector.broadcast %270 : vector<1x1x1x64xf32> to vector<2x3x3x64xf32>
    %272 = arith.mulf %267, %271 : vector<2x3x3x64xf32>
    %273 = arith.addf %266, %272 : vector<2x3x3x64xf32>
    %274 = vector.extract_strided_slice %0 {offsets = [0, 5, 4, 0], sizes = [2, 3, 3, 64], strides = [1, 1, 1, 1]} : vector<2x9x9x64xf32> to vector<2x3x3x64xf32>
    %275 = vector.extract_strided_slice %1 {offsets = [5, 4, 0], sizes = [1, 1, 64], strides = [1, 1, 1]} : vector<7x7x64xf32> to vector<1x1x64xf32>
    %276 = vector.shape_cast %275 : vector<1x1x64xf32> to vector<64xf32>
    %277 = vector.shape_cast %276 : vector<64xf32> to vector<1x1x1x64xf32>
    %278 = vector.broadcast %277 : vector<1x1x1x64xf32> to vector<2x3x3x64xf32>
    %279 = arith.mulf %274, %278 : vector<2x3x3x64xf32>
    %280 = arith.addf %273, %279 : vector<2x3x3x64xf32>
    %281 = vector.extract_strided_slice %0 {offsets = [0, 5, 5, 0], sizes = [2, 3, 3, 64], strides = [1, 1, 1, 1]} : vector<2x9x9x64xf32> to vector<2x3x3x64xf32>
    %282 = vector.extract_strided_slice %1 {offsets = [5, 5, 0], sizes = [1, 1, 64], strides = [1, 1, 1]} : vector<7x7x64xf32> to vector<1x1x64xf32>
    %283 = vector.shape_cast %282 : vector<1x1x64xf32> to vector<64xf32>
    %284 = vector.shape_cast %283 : vector<64xf32> to vector<1x1x1x64xf32>
    %285 = vector.broadcast %284 : vector<1x1x1x64xf32> to vector<2x3x3x64xf32>
    %286 = arith.mulf %281, %285 : vector<2x3x3x64xf32>
    %287 = arith.addf %280, %286 : vector<2x3x3x64xf32>
    %288 = vector.extract_strided_slice %0 {offsets = [0, 5, 6, 0], sizes = [2, 3, 3, 64], strides = [1, 1, 1, 1]} : vector<2x9x9x64xf32> to vector<2x3x3x64xf32>
    %289 = vector.extract_strided_slice %1 {offsets = [5, 6, 0], sizes = [1, 1, 64], strides = [1, 1, 1]} : vector<7x7x64xf32> to vector<1x1x64xf32>
    %290 = vector.shape_cast %289 : vector<1x1x64xf32> to vector<64xf32>
    %291 = vector.shape_cast %290 : vector<64xf32> to vector<1x1x1x64xf32>
    %292 = vector.broadcast %291 : vector<1x1x1x64xf32> to vector<2x3x3x64xf32>
    %293 = arith.mulf %288, %292 : vector<2x3x3x64xf32>
    %294 = arith.addf %287, %293 : vector<2x3x3x64xf32>
    %295 = vector.extract_strided_slice %0 {offsets = [0, 6, 0, 0], sizes = [2, 3, 3, 64], strides = [1, 1, 1, 1]} : vector<2x9x9x64xf32> to vector<2x3x3x64xf32>
    %296 = vector.extract_strided_slice %1 {offsets = [6, 0, 0], sizes = [1, 1, 64], strides = [1, 1, 1]} : vector<7x7x64xf32> to vector<1x1x64xf32>
    %297 = vector.shape_cast %296 : vector<1x1x64xf32> to vector<64xf32>
    %298 = vector.shape_cast %297 : vector<64xf32> to vector<1x1x1x64xf32>
    %299 = vector.broadcast %298 : vector<1x1x1x64xf32> to vector<2x3x3x64xf32>
    %300 = arith.mulf %295, %299 : vector<2x3x3x64xf32>
    %301 = arith.addf %294, %300 : vector<2x3x3x64xf32>
    %302 = vector.extract_strided_slice %0 {offsets = [0, 6, 1, 0], sizes = [2, 3, 3, 64], strides = [1, 1, 1, 1]} : vector<2x9x9x64xf32> to vector<2x3x3x64xf32>
    %303 = vector.extract_strided_slice %1 {offsets = [6, 1, 0], sizes = [1, 1, 64], strides = [1, 1, 1]} : vector<7x7x64xf32> to vector<1x1x64xf32>
    %304 = vector.shape_cast %303 : vector<1x1x64xf32> to vector<64xf32>
    %305 = vector.shape_cast %304 : vector<64xf32> to vector<1x1x1x64xf32>
    %306 = vector.broadcast %305 : vector<1x1x1x64xf32> to vector<2x3x3x64xf32>
    %307 = arith.mulf %302, %306 : vector<2x3x3x64xf32>
    %308 = arith.addf %301, %307 : vector<2x3x3x64xf32>
    %309 = vector.extract_strided_slice %0 {offsets = [0, 6, 2, 0], sizes = [2, 3, 3, 64], strides = [1, 1, 1, 1]} : vector<2x9x9x64xf32> to vector<2x3x3x64xf32>
    %310 = vector.extract_strided_slice %1 {offsets = [6, 2, 0], sizes = [1, 1, 64], strides = [1, 1, 1]} : vector<7x7x64xf32> to vector<1x1x64xf32>
    %311 = vector.shape_cast %310 : vector<1x1x64xf32> to vector<64xf32>
    %312 = vector.shape_cast %311 : vector<64xf32> to vector<1x1x1x64xf32>
    %313 = vector.broadcast %312 : vector<1x1x1x64xf32> to vector<2x3x3x64xf32>
    %314 = arith.mulf %309, %313 : vector<2x3x3x64xf32>
    %315 = arith.addf %308, %314 : vector<2x3x3x64xf32>
    %316 = vector.extract_strided_slice %0 {offsets = [0, 6, 3, 0], sizes = [2, 3, 3, 64], strides = [1, 1, 1, 1]} : vector<2x9x9x64xf32> to vector<2x3x3x64xf32>
    %317 = vector.extract_strided_slice %1 {offsets = [6, 3, 0], sizes = [1, 1, 64], strides = [1, 1, 1]} : vector<7x7x64xf32> to vector<1x1x64xf32>
    %318 = vector.shape_cast %317 : vector<1x1x64xf32> to vector<64xf32>
    %319 = vector.shape_cast %318 : vector<64xf32> to vector<1x1x1x64xf32>
    %320 = vector.broadcast %319 : vector<1x1x1x64xf32> to vector<2x3x3x64xf32>
    %321 = arith.mulf %316, %320 : vector<2x3x3x64xf32>
    %322 = arith.addf %315, %321 : vector<2x3x3x64xf32>
    %323 = vector.extract_strided_slice %0 {offsets = [0, 6, 4, 0], sizes = [2, 3, 3, 64], strides = [1, 1, 1, 1]} : vector<2x9x9x64xf32> to vector<2x3x3x64xf32>
    %324 = vector.extract_strided_slice %1 {offsets = [6, 4, 0], sizes = [1, 1, 64], strides = [1, 1, 1]} : vector<7x7x64xf32> to vector<1x1x64xf32>
    %325 = vector.shape_cast %324 : vector<1x1x64xf32> to vector<64xf32>
    %326 = vector.shape_cast %325 : vector<64xf32> to vector<1x1x1x64xf32>
    %327 = vector.broadcast %326 : vector<1x1x1x64xf32> to vector<2x3x3x64xf32>
    %328 = arith.mulf %323, %327 : vector<2x3x3x64xf32>
    %329 = arith.addf %322, %328 : vector<2x3x3x64xf32>
    %330 = vector.extract_strided_slice %0 {offsets = [0, 6, 5, 0], sizes = [2, 3, 3, 64], strides = [1, 1, 1, 1]} : vector<2x9x9x64xf32> to vector<2x3x3x64xf32>
    %331 = vector.extract_strided_slice %1 {offsets = [6, 5, 0], sizes = [1, 1, 64], strides = [1, 1, 1]} : vector<7x7x64xf32> to vector<1x1x64xf32>
    %332 = vector.shape_cast %331 : vector<1x1x64xf32> to vector<64xf32>
    %333 = vector.shape_cast %332 : vector<64xf32> to vector<1x1x1x64xf32>
    %334 = vector.broadcast %333 : vector<1x1x1x64xf32> to vector<2x3x3x64xf32>
    %335 = arith.mulf %330, %334 : vector<2x3x3x64xf32>
    %336 = arith.addf %329, %335 : vector<2x3x3x64xf32>
    %337 = vector.extract_strided_slice %0 {offsets = [0, 6, 6, 0], sizes = [2, 3, 3, 64], strides = [1, 1, 1, 1]} : vector<2x9x9x64xf32> to vector<2x3x3x64xf32>
    %338 = vector.extract_strided_slice %1 {offsets = [6, 6, 0], sizes = [1, 1, 64], strides = [1, 1, 1]} : vector<7x7x64xf32> to vector<1x1x64xf32>
    %339 = vector.shape_cast %338 : vector<1x1x64xf32> to vector<64xf32>
    %340 = vector.shape_cast %339 : vector<64xf32> to vector<1x1x1x64xf32>
    %341 = vector.broadcast %340 : vector<1x1x1x64xf32> to vector<2x3x3x64xf32>
    %342 = arith.mulf %337, %341 : vector<2x3x3x64xf32>
    %343 = arith.addf %336, %342 : vector<2x3x3x64xf32>
    %c0_6 = arith.constant 0 : index
    %c0_7 = arith.constant 0 : index
    %c0_8 = arith.constant 0 : index
    %c0_9 = arith.constant 0 : index
    %344 = vector.load %arg2[%c0_6, %c0_7, %c0_8, %c0_9] : memref<1x1x1x64xf32, #tpu.memory_space<vmem>>, vector<1x1x1x64xf32>
    %345 = vector.broadcast %344 : vector<1x1x1x64xf32> to vector<2x3x3x64xf32>
    %346 = arith.addf %343, %345 : vector<2x3x3x64xf32>
    %c0_10 = arith.constant 0 : index
    %c0_11 = arith.constant 0 : index
    %c0_12 = arith.constant 0 : index
    %c0_13 = arith.constant 0 : index
    %347 = vector.load %arg3[%c0_10, %c0_11, %c0_12, %c0_13] : memref<2x3x3x64xf32, #tpu.memory_space<vmem>>, vector<2x3x3x64xf32>
    tpu.vector_store %arg3[%c0_10, %c0_11, %c0_12, %c0_13], %346 {strides = array<i32>} : memref<2x3x3x64xf32, #tpu.memory_space<vmem>>, vector<2x3x3x64xf32>,
    return
  }
}

module attributes {stable_mosaic.version = 11 : i64} {
  func.func @_linear_bias_kernel(%arg0: i32, %arg1: memref<2x64xf32, #tpu.memory_space<vmem>>, %arg2: memref<64x2xf32, #tpu.memory_space<vmem>>, %arg3: memref<1x2xf32, #tpu.memory_space<vmem>>, %arg4: memref<2x2xf32, #tpu.memory_space<vmem>>) attributes {dimension_semantics = [#tpu.dimension_semantics<parallel>], iteration_bounds = array<i64: 1>, scalar_prefetch = 0 : i64, scratch_operands = 0 : i64, tpu.core_type = #tpu.core_type<tc>, window_params = [{transform_indices = @transform_0, window_bounds = array<i64: 2, 64>}, {pipeline_mode = #tpu.pipeline_mode<synchronous>, transform_indices = @transform_1, window_bounds = array<i64: 64, 2>}, {pipeline_mode = #tpu.pipeline_mode<synchronous>, transform_indices = @transform_2, window_bounds = array<i64: 1, 2>}, {transform_indices = @transform_3, window_bounds = array<i64: 2, 2>}]} {
    %c0 = arith.constant 0 : index
    %c0_0 = arith.constant 0 : index
    %0 = vector.load %arg1[%c0, %c0_0] : memref<2x64xf32, #tpu.memory_space<vmem>>, vector<2x64xf32>
    %1 = arith.truncf %0 : vector<2x64xf32> to vector<2x64xbf16>
    %c0_1 = arith.constant 0 : index
    %c0_2 = arith.constant 0 : index
    %2 = vector.load %arg2[%c0_1, %c0_2] : memref<64x2xf32, #tpu.memory_space<vmem>>, vector<64x2xf32>
    %3 = arith.truncf %2 : vector<64x2xf32> to vector<64x2xbf16>
    %cst = arith.constant dense<0.000000e+00> : vector<2x2xf32>
    %4 = tpu.matmul %1, %3, %cst {dimension_numbers = #tpu.dot_dimension_numbers<[1], [0], [0], [1], [0, 0, 1, 1], [], []>} : vector<2x64xbf16>, vector<64x2xbf16>, vector<2x2xf32> -> vector<2x2xf32>
    %c0_3 = arith.constant 0 : index
    %c0_4 = arith.constant 0 : index
    %5 = vector.load %arg3[%c0_3, %c0_4] : memref<1x2xf32, #tpu.memory_space<vmem>>, vector<1x2xf32>
    %6 = vector.broadcast %5 : vector<1x2xf32> to vector<2x2xf32>
    %7 = arith.addf %4, %6 : vector<2x2xf32>
    %c0_5 = arith.constant 0 : index
    %c0_6 = arith.constant 0 : index
    %8 = vector.load %arg4[%c0_5, %c0_6] : memref<2x2xf32, #tpu.memory_space<vmem>>, vector<2x2xf32>
    tpu.vector_store %arg4[%c0_5, %c0_6], %7 {strides = array<i32>} : memref<2x2xf32, #tpu.memory_space<vmem>>, vector<2x2xf32>,
    return
  }
  func.func @transform_0(%arg0: i32) -> (i32, i32) {
    %c0_i32 = arith.constant 0 : i32
    %c0_i32_0 = arith.constant 0 : i32
    return %arg0, %c0_i32 : i32, i32
  }
  func.func @transform_1(%arg0: i32) -> (i32, i32) {
    %c0_i32 = arith.constant 0 : i32
    %c0_i32_0 = arith.constant 0 : i32
    %c0_i32_1 = arith.constant 0 : i32
    return %c0_i32, %c0_i32_0 : i32, i32
  }
  func.func @transform_2(%arg0: i32) -> (i32, i32) {
    %c0_i32 = arith.constant 0 : i32
    %c0_i32_0 = arith.constant 0 : i32
    %c0_i32_1 = arith.constant 0 : i32
    return %c0_i32, %c0_i32_0 : i32, i32
  }
  func.func @transform_3(%arg0: i32) -> (i32, i32) {
    %c0_i32 = arith.constant 0 : i32
    %c0_i32_0 = arith.constant 0 : i32
    return %arg0, %c0_i32 : i32, i32
  }
}

</mosaic_0001>

<bundles_post_ra>
// kernel: transmil_forward.14
= control target key start
LH: loop header
LB: loop body
LE: loop exit
PB: predicated region body
PF: predicated region fallthrough
CT: control target
= control target key end

     0   :  { %vm36_vm0 = vcmask 392192   ;;  %vm97_vm1 = vcmask 517120   ;;  %vm94_vm2 = vcmask 523264   ;;  %s180_s1 = inlined_call_operand.vmem [shape: f32[48,64], index: 1, kind: input, shape index: {}]   ;;  %s181_s0 = inlined_call_operand.vmem [shape: f32[18,48], index: 0, kind: input, shape index: {}]   ;;  %s182_s2 = inlined_call_operand.vmem [shape: f32[1,64], index: 2, kind: input, shape index: {}]   ;;  %s183_s3 = inlined_call_operand.vmem [shape: f32[18,64], index: 3, kind: output, shape index: {}]  }
   0x1   :  { %v24_v0 = vld [vmem:[%s180_s1 + $0x20] sm:$0xff]  ;;  %v25_v1 = vld [vmem:[%s180_s1 + $0x28] sm:$0xff]  ;;  %v22_v2 = vld [vmem:[%s180_s1 + $0x10] sm:$0xff] }
   0x2   :  { %v28_v3 = vpack.c.bf16 %v25_v1, %v24_v0  ;;  %v23_v4 = vld [vmem:[%s180_s1 + $0x18] sm:$0xff]  ;;  %v20_v5 = vld [vmem:[%s180_s1] sm:$0xff]  ;;  %v21_v7 = vld [vmem:[%s180_s1 + $0x8] sm:$0xff] }
   0x3   :  { %v27_v6 = vpack.c.bf16 %v23_v4, %v22_v2  ;;  %v15_v8 = vld [vmem:[%s181_s0] sm:$0xff]  ;;  %v16_v9 = vld [vmem:[%s181_s0 + $0x8] sm:$0xff]  ;;  %v26_v11 = vpack.c.bf16 %v21_v7, %v20_v5  ;;  %v17_v12 = vld [vmem:[%s181_s0 + $0x10] sm:$0x3] }
   0x4   :  { %111 = vmatprep.subr.bf16.mxu0 %v28_v3  ;;  %v18_v10 = vpack.c.bf16 %v16_v9, %v15_v8  ;;  %v19_v13 = vpack.c.bf16 %v17_v12, %v17_v12  ;;  %v103_v14 = vld [vmem:[%s182_s2] ss:$0 sm:$0xff] }
   0x5   :  { %112 = vmatpush3.bf16.msra.mxu0 %v28_v3 }
   0x6   :  { %113 = vmatprep.subr.bf16.mxu0 %v27_v6  ;;  %117 = vmatprep.mubr.msk.bf16.mxu0 %vm36_vm0, %v18_v10 }
   0x9   :  { %114 = vmatpush3.bf16.msra.mxu0 %v27_v6 }
   0xa   :  { %115 = vmatprep.subr.bf16.mxu0 %v26_v11 }
   0xd   :  { %116 = vmatpush3.bf16.msra.mxu0 %v26_v11 }
  0x10   :  { %118 = vmatmul.mubr.msk.bf16.vlgmr.msra.gmra.mxu0 %vm36_vm0, %v19_v13 }
  0xd0   :  { %v119_v15 = vpop.f32.mrf.mxu0 }
  0xd1   :  { %v86_v16 = vadd.f32 %v119_v15, %v103_v14 }
  0xd2   :  { %v77_v17 = vpop.f32.mrf.mxu0 }
  0xd3   :  { %v93_v18 = vmax.f32 %v86_v16, 0.0  ;;  %v78_v19 = vadd.f32 %v103_v14, %v77_v17 }
  0xd4   :  { %v120_v20 = vpop.f32.mrf.mxu0 }
  0xd5   :  { %98 = vst.msk [vmem:[%s183_s3 + $0x10] sm:$0x3] %vm97_vm1, %v93_v18  ;;  %v91_v21 = vmax.f32 %v78_v19, 0.0 }
  0xd6   :  { %v80_v22 = vpop.f32.mrf.mxu0 }
  0xd7   :  { %95 = vst.msk [vmem:[%s183_s3] sm:$0xff] %vm94_vm2, %v91_v21  ;;  %v81_v23 = vadd.f32 %v103_v14, %v80_v22 }
  0xd9   :  { %v92_v24 = vmax.f32 %v81_v23, 0.0 }
  0xdb   :  { %96 = vst.msk [vmem:[%s183_s3 + $0x8] sm:$0xff] %vm94_vm2, %v92_v24 }

// kernel: transmil_forward.15
= control target key start
LH: loop header
LB: loop body
LE: loop exit
PB: predicated region body
PF: predicated region fallthrough
CT: control target
= control target key end

     0   :  { %vm17_vm0 = vcmask 523264   ;;  %vm24_vm1 = vcmask 519168   ;;  %s147_s0 = inlined_call_operand.vmem [shape: f32[20,64], index: 0, kind: input, shape index: {}]   ;;  %s148_s1 = inlined_call_operand.vmem [shape: f32[1,64], index: 1, kind: input, shape index: {}]   ;;  %s149_s2 = inlined_call_operand.vmem [shape: f32[1,64], index: 2, kind: input, shape index: {}]   ;;  %s150_s3 = inlined_call_operand.vmem [shape: f32[20,64], index: 3, kind: output, shape index: {}]  }
   0x1   :  { %v14_v0 = vld [vmem:[%s147_s0] sm:$0xff]  ;;  %v16_v1 = vld [vmem:[%s147_s0 + $0x10] sm:$0xf]  ;;  %v15_v2 = vld [vmem:[%s147_s0 + $0x8] sm:$0xff] }
   0x2   :  { %v18_v3 = vsel %vm17_vm0, %v14_v0, 0.0  ;;  %v25_v4 = vsel %vm24_vm1, %v16_v1, 0.0  ;;  %v21_v5 = vsel %vm17_vm0, %v15_v2, 0.0  ;;  %v86_v31 = vld [vmem:[%s148_s1] ss:$0 sm:$0xff] }
   0x3   :  { %19 = vadd.xlane.f32.xlu0 %v18_v3  ;;  %26 = vadd.xlane.f32.xlu1 %v25_v4  ;;  %v87_v33 = vld [vmem:[%s149_s2] ss:$0 sm:$0xff] }
   0x7   :  { %22 = vadd.xlane.f32.xlu0 %v21_v5 }
  0x8c   :  { %v20_v6 = vpop.xlane.xlu0 %19  ;;  %v27_v7 = vpop.xlane.xlu1 %26 }
  0x8d   :  { %v29_v8 = vmul.f32 0.015625, %v20_v6  ;;  %v31_v9 = vmul.f32 0.015625, %v27_v7 }
  0x8f   :  { %v32_v10 = vsub.f32 %v14_v0, %v29_v8  ;;  %v34_v11 = vsub.f32 %v16_v1, %v31_v9 }
  0x90   :  { %v23_v12 = vpop.xlane.xlu0 %22 }
  0x91   :  { %v30_v13 = vmul.f32 0.015625, %v23_v12  ;;  %v35_v14 = vmul.f32 %v32_v10, %v32_v10  ;;  %v37_v15 = vmul.f32 %v34_v11, %v34_v11 }
  0x93   :  { %v33_v16 = vsub.f32 %v15_v2, %v30_v13  ;;  %v38_v17 = vsel %vm17_vm0, %v35_v14, 0.0  ;;  %v44_v18 = vsel %vm24_vm1, %v37_v15, 0.0 }
  0x94   :  { %39 = vadd.xlane.f32.xlu1 %v38_v17 }
  0x95   :  { %v36_v19 = vmul.f32 %v33_v16, %v33_v16 }
  0x97   :  { %v41_v20 = vsel %vm17_vm0, %v36_v19, 0.0 }
  0x98   :  { %45 = vadd.xlane.f32.xlu1 %v44_v18  ;;  %42 = vadd.xlane.f32.xlu0 %v41_v20 }
 0x11d   :  { %v40_v21 = vpop.xlane.xlu1 %39 }
 0x11e   :  { %v47_v22 = vmul.f32 0.015625, %v40_v21 }
 0x120   :  { %v50_v23 = vadd.f32 1e-05, %v47_v22 }
 0x121   :  { %v46_v24 = vpop.xlane.xlu1 %45  ;;  %v43_v25 = vpop.xlane.xlu0 %42 }
 0x122   :  { %88 = vrsqrt.f32 %v50_v23  ;;  %v49_v26 = vmul.f32 0.015625, %v46_v24  ;;  %v48_v27 = vmul.f32 0.015625, %v43_v25 }
 0x124   :  { %v52_v28 = vadd.f32 1e-05, %v49_v26  ;;  %v51_v29 = vadd.f32 1e-05, %v48_v27 }
 0x126   :  { %90 = vrsqrt.f32 %v52_v28 }
 0x127   :  { %92 = vrsqrt.f32 %v51_v29 }
 0x12f   :  { %v89_v30 = vpop.eup %88 }
 0x130   :  { %v56_v32 = vmul.f32 %v89_v30, %v32_v10 }
 0x132   :  { %v66_v34 = vmul.f32 %v86_v31, %v56_v32 }
 0x133   :  { %v91_v35 = vpop.eup %90 }
 0x134   :  { %v93_v36 = vpop.eup %92  ;;  %v76_v37 = vadd.f32 %v87_v33, %v66_v34  ;;  %v58_v38 = vmul.f32 %v91_v35, %v34_v11 }
 0x135   :  { %v57_v39 = vmul.f32 %v93_v36, %v33_v16 }
 0x136   :  { %79 = vst.msk [vmem:[%s150_s3] sm:$0xff] %vm17_vm0, %v76_v37  ;;  %v68_v40 = vmul.f32 %v86_v31, %v58_v38 }
 0x137   :  { %v67_v41 = vmul.f32 %v86_v31, %v57_v39 }
 0x138   :  { %v78_v42 = vadd.f32 %v87_v33, %v68_v40 }
 0x139   :  { %v77_v43 = vadd.f32 %v87_v33, %v67_v41 }
 0x13a   :  { %81 = vst.msk [vmem:[%s150_s3 + $0x10] sm:$0xf] %vm24_vm1, %v78_v42 }
 0x13b   :  { %80 = vst.msk [vmem:[%s150_s3 + $0x8] sm:$0xff] %vm17_vm0, %v77_v43 }

// kernel: transmil_forward.16
= control target key start
LH: loop header
LB: loop body
LE: loop exit
PB: predicated region body
PF: predicated region fallthrough
CT: control target
= control target key end

     0   :  { %v167_v3 = vmov 0   ;;  %vm48_vm0 = vcmask 523264   ;;  %s315_s1 = inlined_call_operand.vmem [shape: f32[64,192], index: 1, kind: input, shape index: {}]   ;;  %s316_s0 = inlined_call_operand.vmem [shape: f32[64,64], index: 0, kind: input, shape index: {}]   ;;  %s317_s2 = inlined_call_operand.vmem [shape: f32[64,192], index: 2, kind: output, shape index: {}]  }
   0x1   :  { %v37_v0 = vld [vmem:[%s315_s1 + $0x68] sm:$0xff]  ;;  %v39_v1 = vld [vmem:[%s315_s1 + $0x78] sm:$0xff]  ;;  %v36_v2 = vld [vmem:[%s315_s1 + $0x60] sm:$0xff]  ;;  %93 = vmatprep.mubr.bf16.mxu0 %v167_v3  ;;  %113 = vmatprep.mubr.bf16.mxu1 %v167_v3 }
   0x2   :  { %v47_v4 = vpack.c.bf16 %v39_v1, %v37_v0  ;;  %v38_v5 = vld [vmem:[%s315_s1 + $0x70] sm:$0xff]  ;;  %v33_v6 = vld [vmem:[%s315_s1 + $0x48] sm:$0xff]  ;;  %v35_v7 = vld [vmem:[%s315_s1 + $0x58] sm:$0xff] }
   0x3   :  { %v46_v8 = vpack.c.bf16 %v38_v5, %v36_v2  ;;  %v45_v9 = vpack.c.bf16 %v35_v7, %v33_v6  ;;  %v32_v10 = vld [vmem:[%s315_s1 + $0x40] sm:$0xff]  ;;  %v34_v11 = vld [vmem:[%s315_s1 + $0x50] sm:$0xff]  ;;  %v29_v12 = vld [vmem:[%s315_s1 + $0x28] sm:$0xff] }
   0x4   :  { %69 = vmatprep.subr.bf16.mxu0 %v47_v4  ;;  %158 = vmatprep.subr.bf16.mxu1 %v47_v4  ;;  %v31_v13 = vld [vmem:[%s315_s1 + $0x38] sm:$0xff]  ;;  %v44_v14 = vpack.c.bf16 %v34_v11, %v32_v10  ;;  %v28_v16 = vld [vmem:[%s315_s1 + $0x20] sm:$0xff]  ;;  %v30_v17 = vld [vmem:[%s315_s1 + $0x30] sm:$0xff] }
   0x5   :  { %70 = vmatpush1.bf16.msra.mxu0 %v46_v8  ;;  %162 = vmatpush1.bf16.msra.mxu1 %v46_v8  ;;  %v43_v15 = vpack.c.bf16 %v31_v13, %v29_v12  ;;  %v25_v18 = vld [vmem:[%s315_s1 + $0x8] sm:$0xff]  ;;  %v27_v19 = vld [vmem:[%s315_s1 + $0x18] sm:$0xff]  ;;  %v42_v20 = vpack.c.bf16 %v30_v17, %v28_v16  ;;  %v24_v22 = vld [vmem:[%s315_s1] sm:$0xff] }
   0x6   :  { %71 = vmatprep.subr.bf16.mxu0 %v45_v9  ;;  %159 = vmatprep.subr.bf16.mxu1 %v45_v9  ;;  %v41_v21 = vpack.c.bf16 %v27_v19, %v25_v18  ;;  %v26_v23 = vld [vmem:[%s315_s1 + $0x10] sm:$0xff]  ;;  %v12_v24 = vld [vmem:[%s316_s0] sm:$0xff]  ;;  %v13_v26 = vld [vmem:[%s316_s0 + $0x8] sm:$0xff] }
   0x7   :  { %v40_v25 = vpack.c.bf16 %v26_v23, %v24_v22  ;;  %v16_v27 = vld [vmem:[%s316_s0 + $0x20] sm:$0xff]  ;;  %v17_v28 = vld [vmem:[%s316_s0 + $0x28] sm:$0xff]  ;;  %v20_v29 = vpack.c.bf16 %v13_v26, %v12_v24  ;;  %v14_v31 = vld [vmem:[%s316_s0 + $0x10] sm:$0xff] }
   0x8   :  { %v22_v30 = vpack.c.bf16 %v17_v28, %v16_v27  ;;  %v15_v32 = vld [vmem:[%s316_s0 + $0x18] sm:$0xff]  ;;  %v18_v33 = vld [vmem:[%s316_s0 + $0x30] sm:$0xff] }
   0x9   :  { %72 = vmatpush1.bf16.msra.mxu0 %v44_v14  ;;  %163 = vmatpush1.bf16.msra.mxu1 %v44_v14  ;;  %v19_v34 = vld [vmem:[%s316_s0 + $0x38] sm:$0xff]  ;;  %v21_v35 = vpack.c.bf16 %v15_v32, %v14_v31 }
   0xa   :  { %73 = vmatprep.subr.bf16.mxu0 %v43_v15  ;;  %160 = vmatprep.subr.bf16.mxu1 %v43_v15  ;;  %v23_v36 = vpack.c.bf16 %v19_v34, %v18_v33 }
   0xd   :  { %74 = vmatpush1.bf16.msra.mxu0 %v42_v20  ;;  %164 = vmatpush1.bf16.msra.mxu1 %v42_v20 }
   0xe   :  { %75 = vmatprep.subr.bf16.mxu0 %v41_v21  ;;  %161 = vmatprep.subr.bf16.mxu1 %v41_v21 }
  0x11   :  { %76 = vmatpush1.bf16.msra.mxu0 %v40_v25  ;;  %165 = vmatpush1.bf16.msra.mxu1 %v40_v25 }
  0x14   :  { %154 = vmatmul.mubr.msk.bf16.vlgmr.msra.gmra.mxu0 %vm48_vm0, %v20_v29  ;;  %156 = vmatmul.mubr.msk.bf16.vlgmr.msra.gmra.mxu1 %vm48_vm0, %v22_v30 }
  0x15   :  { %103 = vmatprep.mubr.bf16.mxu0 %v167_v3  ;;  %123 = vmatprep.mubr.bf16.mxu1 %v167_v3 }
  0x1c   :  { %155 = vmatmul.mubr.msk.bf16.gmra.mxu0 %vm48_vm0, %v21_v35  ;;  %157 = vmatmul.mubr.msk.bf16.gmra.mxu1 %vm48_vm0, %v23_v36 }
  0xd4   :  { %v95_v37 = vpop.f32.mrf.mxu0  ;;  %v115_v38 = vpop.f32.mrf.mxu1 }
  0xd5   :  { %134 = vst [vmem:[%s317_s2] sm:$0xff] %v95_v37  ;;  %142 = vst [vmem:[%s317_s2 + $0x40] sm:$0xff] %v115_v38 }
  0xd6   :  { %v97_v39 = vpop.f32.mrf.mxu0  ;;  %v117_v40 = vpop.f32.mrf.mxu1 }
  0xd7   :  { %135 = vst.msk [vmem:[%s317_s2 + $0x8] sm:$0xff] %vm48_vm0, %v97_v39  ;;  %143 = vst.msk [vmem:[%s317_s2 + $0x48] sm:$0xff] %vm48_vm0, %v117_v40 }
  0xd8   :  { %v99_v41 = vpop.f32.mrf.mxu0  ;;  %v119_v42 = vpop.f32.mrf.mxu1 }
  0xd9   :  { %136 = vst [vmem:[%s317_s2 + $0x10] sm:$0xff] %v99_v41  ;;  %144 = vst [vmem:[%s317_s2 + $0x50] sm:$0xff] %v119_v42 }
  0xda   :  { %v101_v43 = vpop.f32.mrf.mxu0  ;;  %v121_v44 = vpop.f32.mrf.mxu1 }
  0xdb   :  { %137 = vst.msk [vmem:[%s317_s2 + $0x18] sm:$0xff] %vm48_vm0, %v101_v43  ;;  %145 = vst.msk [vmem:[%s317_s2 + $0x58] sm:$0xff] %vm48_vm0, %v121_v44 }
  0xdc   :  { %v105_v45 = vpop.f32.mrf.mxu0  ;;  %v125_v46 = vpop.f32.mrf.mxu1 }
  0xdd   :  { %138 = vst [vmem:[%s317_s2 + $0x20] sm:$0xff] %v105_v45  ;;  %146 = vst [vmem:[%s317_s2 + $0x60] sm:$0xff] %v125_v46 }
  0xde   :  { %v107_v47 = vpop.f32.mrf.mxu0  ;;  %v127_v48 = vpop.f32.mrf.mxu1 }
  0xdf   :  { %139 = vst.msk [vmem:[%s317_s2 + $0x28] sm:$0xff] %vm48_vm0, %v107_v47  ;;  %147 = vst.msk [vmem:[%s317_s2 + $0x68] sm:$0xff] %vm48_vm0, %v127_v48 }
  0xe0   :  { %v109_v49 = vpop.f32.mrf.mxu0  ;;  %v129_v50 = vpop.f32.mrf.mxu1 }
  0xe1   :  { %140 = vst [vmem:[%s317_s2 + $0x30] sm:$0xff] %v109_v49  ;;  %148 = vst [vmem:[%s317_s2 + $0x70] sm:$0xff] %v129_v50 }
  0xe2   :  { %v111_v51 = vpop.f32.mrf.mxu0  ;;  %v131_v52 = vpop.f32.mrf.mxu1 }
  0xe3   :  { %141 = vst.msk [vmem:[%s317_s2 + $0x38] sm:$0xff] %vm48_vm0, %v111_v51  ;;  %149 = vst.msk [vmem:[%s317_s2 + $0x78] sm:$0xff] %vm48_vm0, %v131_v52 }

// kernel: transmil_forward.19
= control target key start
LH: loop header
LB: loop body
LE: loop exit
PB: predicated region body
PF: predicated region fallthrough
CT: control target
= control target key end

     0   :  { %vm46_vm0 = vcmask 523264   ;;  %s280_s1 = inlined_call_operand.vmem [shape: f32[64,64], index: 1, kind: input, shape index: {}]   ;;  %s281_s0 = inlined_call_operand.vmem [shape: f32[64,64], index: 0, kind: input, shape index: {}]   ;;  %s282_s2 = inlined_call_operand.vmem [shape: f32[1,64], index: 2, kind: input, shape index: {}]   ;;  %s283_s3 = inlined_call_operand.vmem [shape: f32[64,64], index: 3, kind: output, shape index: {}]  }
   0x1   :  { %v33_v0 = vld [vmem:[%s280_s1 + $0x30] sm:$0xff]  ;;  %v34_v1 = vld [vmem:[%s280_s1 + $0x38] sm:$0xff]  ;;  %v31_v2 = vld [vmem:[%s280_s1 + $0x20] sm:$0xff] }
   0x2   :  { %v38_v3 = vpack.c.bf16 %v34_v1, %v33_v0  ;;  %v32_v4 = vld [vmem:[%s280_s1 + $0x28] sm:$0xff]  ;;  %v29_v6 = vld [vmem:[%s280_s1 + $0x10] sm:$0xff]  ;;  %v30_v7 = vld [vmem:[%s280_s1 + $0x18] sm:$0xff] }
   0x3   :  { %v37_v5 = vpack.c.bf16 %v32_v4, %v31_v2  ;;  %v15_v8 = vld [vmem:[%s281_s0] sm:$0xff]  ;;  %v16_v9 = vld [vmem:[%s281_s0 + $0x8] sm:$0xff]  ;;  %v36_v14 = vpack.c.bf16 %v30_v7, %v29_v6  ;;  %v17_v18 = vld [vmem:[%s281_s0 + $0x10] sm:$0xff] }
   0x4   :  { %149 = vmatprep.subr.bf16.mxu0 %v38_v3  ;;  %165 = vmatprep.subr.bf16.mxu1 %v38_v3  ;;  %v19_v10 = vld [vmem:[%s281_s0 + $0x20] sm:$0xff]  ;;  %v20_v11 = vld [vmem:[%s281_s0 + $0x28] sm:$0xff]  ;;  %v23_v12 = vpack.c.bf16 %v16_v9, %v15_v8  ;;  %v18_v19 = vld [vmem:[%s281_s0 + $0x18] sm:$0xff] }
   0x5   :  { %150 = vmatpush3.bf16.msra.mxu0 %v38_v3  ;;  %169 = vmatpush3.bf16.msra.mxu1 %v38_v3  ;;  %v25_v13 = vpack.c.bf16 %v20_v11, %v19_v10  ;;  %v27_v15 = vld [vmem:[%s280_s1] sm:$0xff]  ;;  %v28_v16 = vld [vmem:[%s280_s1 + $0x8] sm:$0xff]  ;;  %v21_v20 = vld [vmem:[%s281_s0 + $0x30] sm:$0xff]  ;;  %v24_v22 = vpack.c.bf16 %v18_v19, %v17_v18 }
   0x6   :  { %151 = vmatprep.subr.bf16.mxu0 %v37_v5  ;;  %166 = vmatprep.subr.bf16.mxu1 %v37_v5  ;;  %v35_v17 = vpack.c.bf16 %v28_v16, %v27_v15  ;;  %v22_v21 = vld [vmem:[%s281_s0 + $0x38] sm:$0xff]  ;;  %v136_v24 = vld [vmem:[%s282_s2] ss:$0 sm:$0xff] }
   0x7   :  { %157 = vmatprep.mubr.msk.bf16.mxu0 %vm46_vm0, %v23_v12  ;;  %161 = vmatprep.mubr.msk.bf16.mxu1 %vm46_vm0, %v25_v13  ;;  %v26_v23 = vpack.c.bf16 %v22_v21, %v21_v20 }
   0x9   :  { %152 = vmatpush3.bf16.msra.mxu0 %v37_v5  ;;  %170 = vmatpush3.bf16.msra.mxu1 %v37_v5 }
   0xa   :  { %153 = vmatprep.subr.bf16.mxu0 %v36_v14  ;;  %167 = vmatprep.subr.bf16.mxu1 %v36_v14 }
   0xd   :  { %154 = vmatpush3.bf16.msra.mxu0 %v36_v14  ;;  %171 = vmatpush3.bf16.msra.mxu1 %v36_v14 }
   0xe   :  { %155 = vmatprep.subr.bf16.mxu0 %v35_v17  ;;  %168 = vmatprep.subr.bf16.mxu1 %v35_v17 }
  0x11   :  { %156 = vmatpush3.bf16.msra.mxu0 %v35_v17  ;;  %172 = vmatpush3.bf16.msra.mxu1 %v35_v17 }
  0x14   :  { %158 = vmatmul.mubr.msk.bf16.vlgmr.msra.gmra.mxu0 %vm46_vm0, %v24_v22  ;;  %162 = vmatmul.mubr.msk.bf16.vlgmr.msra.gmra.mxu1 %vm46_vm0, %v26_v23 }
  0xd4   :  { %v159_v25 = vpop.f32.mrf.mxu0  ;;  %v163_v26 = vpop.f32.mrf.mxu1 }
  0xd5   :  { %v102_v27 = vadd.f32 %v159_v25, %v136_v24  ;;  %v118_v28 = vadd.f32 %v163_v26, %v136_v24 }
  0xd6   :  { %v93_v29 = vpop.f32.mrf.mxu0  ;;  %v109_v30 = vpop.f32.mrf.mxu1 }
  0xd7   :  { %126 = vst.msk [vmem:[%s283_s3 + $0x10] sm:$0xff] %vm46_vm0, %v102_v27  ;;  %130 = vst.msk [vmem:[%s283_s3 + $0x30] sm:$0xff] %vm46_vm0, %v118_v28  ;;  %v94_v31 = vadd.f32 %v136_v24, %v93_v29  ;;  %v110_v32 = vadd.f32 %v136_v24, %v109_v30 }
  0xd8   :  { %v160_v33 = vpop.f32.mrf.mxu0  ;;  %v164_v34 = vpop.f32.mrf.mxu1 }
  0xd9   :  { %124 = vst.msk [vmem:[%s283_s3] sm:$0xff] %vm46_vm0, %v94_v31  ;;  %128 = vst.msk [vmem:[%s283_s3 + $0x20] sm:$0xff] %vm46_vm0, %v110_v32  ;;  %v105_v35 = vadd.f32 %v160_v33, %v136_v24  ;;  %v121_v36 = vadd.f32 %v164_v34, %v136_v24 }
  0xda   :  { %v96_v37 = vpop.f32.mrf.mxu0  ;;  %v112_v38 = vpop.f32.mrf.mxu1 }
  0xdb   :  { %127 = vst.msk [vmem:[%s283_s3 + $0x18] sm:$0xff] %vm46_vm0, %v105_v35  ;;  %131 = vst.msk [vmem:[%s283_s3 + $0x38] sm:$0xff] %vm46_vm0, %v121_v36  ;;  %v97_v39 = vadd.f32 %v136_v24, %v96_v37  ;;  %v113_v40 = vadd.f32 %v136_v24, %v112_v38 }
  0xdd   :  { %125 = vst.msk [vmem:[%s283_s3 + $0x8] sm:$0xff] %vm46_vm0, %v97_v39  ;;  %129 = vst.msk [vmem:[%s283_s3 + $0x28] sm:$0xff] %vm46_vm0, %v113_v40 }

// kernel: transmil_forward.17
= control target key start
LH: loop header
LB: loop body
LE: loop exit
PB: predicated region body
PF: predicated region fallthrough
CT: control target
= control target key end

     0   :  { %s1195_s9 = smov 0   ;;  %s1646_s0 = inlined_call_operand.vmem [shape: f32[2,64,64], index: 0, kind: input, shape index: {}]   ;;  %s1647_s1 = inlined_call_operand.vmem [shape: f32[33,64], index: 1, kind: input, shape index: {}]   ;;  %s1648_s2 = inlined_call_operand.vmem [shape: f32[2,32,64], index: 2, kind: output, shape index: {}]  }
   0x1 LB: > { %s1148_s10 = sadd.s32 4294967295, %s1178_s9   ;;  %p1152_p0 = scmp.ge.s32.totalorder %s1178_s9, 1  ;;  %s1178_s9 = sphi %s1195_s9, %s12_s9  }
   0x2   : > { %p112_p1 = scmp.lt.s32.totalorder %s1178_s9, 3 }
   0x4   : > { %p113_p2 = pnand %p1152_p0, %p112_p1 }
   0x5   : > { %p134_p3 = scmp.lt.s32.totalorder (!%p113_p2), %s1148_s10, 1 }
   0x6   : > { %116 = sbr.rel (%p113_p2) target bundleno = 164 (0xa4), region = 28 }
   0xb   : > { %v157_v0 = vlaneseq  ;;  %s1650_s10 = smov (!%p134_p3, %s1148_s10), 1  ;;  %v152_v2 = vld [vmem:[%s1647_s1] sm:$0xff]  ;;  %vm179_vm0 = vcmask 1046528   ;;  %vm211_vm1 = vcmask 1045504   ;;  %vm243_vm2 = vcmask 1044480  }
   0xc   : > { %s1160_s13 = sshll.u32 %s1650_s10, 6  ;;  %vm275_vm3 = vcmask 1043456   ;;  %vm307_vm4 = vcmask 1042432   ;;  %vm339_vm5 = vcmask 1041408   ;;  %vm371_vm6 = vcmask 1040384   ;;  %s1161_s25 = sshll.u32 %s1650_s10, 5 }
   0xd   : > { %v158_v1 = vshrl.u32 %v157_v0, 7  ;;  %s1220_s16 = scalar_lea.vmem %s1646_s0, %s1160_s13  ;;  %s143_s28 = scalar_lea.vmem %s1648_s2, %s1161_s25  ;;  %vm1088_vm7 = vcmask 523264  }
   0xe   : > { %v1231_v11 = vld [vmem:[%s1220_s16] sm:$0xff]  ;;  %v1234_v12 = vld [vmem:[%s1220_s16 + $0x8] sm:$0xff]  ;;  %v1237_v13 = vld [vmem:[%s1220_s16 + $0x10] sm:$0xff] }
   0xf   : > { %v1209_v3 = vsub.s32 0, %v158_v1  ;;  %v1211_v4 = vsub.s32 1, %v158_v1  ;;  %v1213_v5 = vsub.s32 2, %v158_v1  ;;  %v1215_v6 = vsub.s32 3, %v158_v1  ;;  %v1244_v18 = vld [vmem:[%s1220_s16 + $0x18] sm:$0xff]  ;;  %v1247_v19 = vld [vmem:[%s1220_s16 + $0x20] sm:$0xff] }
  0x10   : > { %v1222_v7 = vsub.s32 4, %v158_v1  ;;  %v1224_v8 = vsub.s32 5, %v158_v1  ;;  %v1226_v9 = vsub.s32 6, %v158_v1  ;;  %v1228_v10 = vsub.s32 7, %v158_v1 }
  0x11   : > { %v160_v14 = vrot.slane %v152_v2, %v1209_v3  ;;  %v168_v15 = vrot.slane %v152_v2, %v1211_v4  ;;  %v200_v16 = vrot.slane %v152_v2, %v1213_v5  ;;  %v232_v17 = vrot.slane %v152_v2, %v1215_v6 }
  0x12   : > { %v1250_v20 = vrot.slane %v152_v2, %v1222_v7  ;;  %v1253_v21 = vrot.slane %v152_v2, %v1224_v8  ;;  %v1256_v22 = vrot.slane %v152_v2, %v1226_v9  ;;  %v1259_v23 = vrot.slane %v152_v2, %v1228_v10 }
  0x13   : > { %v161_v24 = vmul.f32 %v160_v14, %v1231_v11  ;;  %v162_v25 = vmul.f32 %v160_v14, %v1234_v12  ;;  %v163_v26 = vmul.f32 %v160_v14, %v1237_v13  ;;  %v164_v27 = vmul.f32 %v160_v14, %v1244_v18 }
  0x14   : > { %v169_v28 = vmul.f32 %v168_v15, %v1231_v11  ;;  %v170_v29 = vmul.f32 %v168_v15, %v1234_v12  ;;  %v171_v30 = vmul.f32 %v168_v15, %v1237_v13  ;;  %v172_v31 = vmul.f32 %v168_v15, %v1244_v18 }
  0x15   : > { %v173_v32 = vmul.f32 %v168_v15, %v1247_v19  ;;  %v201_v33 = vmul.f32 %v200_v16, %v1231_v11  ;;  %v202_v34 = vmul.f32 %v200_v16, %v1234_v12  ;;  %v203_v35 = vmul.f32 %v200_v16, %v1237_v13 }
  0x16   : > { %v180_v36 = vrot.slane %v169_v28, 1  ;;  %v181_v37 = vrot.slane %v170_v29, 1  ;;  %v183_v38 = vrot.slane %v171_v30, 1  ;;  %v185_v39 = vrot.slane %v172_v31, 1 }
  0x17   : > { %v187_v40 = vrot.slane %v173_v32, 1  ;;  %v204_v41 = vmul.f32 %v200_v16, %v1244_v18  ;;  %v205_v42 = vmul.f32 %v200_v16, %v1247_v19  ;;  %v212_v43 = vrot.slane %v201_v33, 2 }
  0x18   : > { %v182_v44 = vsel %vm179_vm0, %v180_v36, %v181_v37  ;;  %v184_v45 = vsel %vm179_vm0, %v181_v37, %v183_v38  ;;  %v186_v46 = vsel %vm179_vm0, %v183_v38, %v185_v39  ;;  %v213_v47 = vrot.slane %v202_v34, 2 }
  0x19   : > { %v188_v48 = vsel %vm179_vm0, %v185_v39, %v187_v40  ;;  %v193_v49 = vadd.f32 %v182_v44, %v161_v24  ;;  %v194_v50 = vadd.f32 %v184_v45, %v162_v25  ;;  %v195_v51 = vadd.f32 %v186_v46, %v163_v26 }
  0x1a   : > { %v196_v52 = vadd.f32 %v188_v48, %v164_v27  ;;  %v214_v53 = vsel %vm211_vm1, %v212_v43, %v213_v47  ;;  %v215_v54 = vrot.slane %v203_v35, 2  ;;  %v217_v55 = vrot.slane %v204_v41, 2 }
  0x1b   : > { %v219_v56 = vrot.slane %v205_v42, 2  ;;  %v225_v57 = vadd.f32 %v214_v53, %v193_v49  ;;  %v233_v58 = vmul.f32 %v232_v17, %v1231_v11  ;;  %v234_v59 = vmul.f32 %v232_v17, %v1234_v12 }
  0x1c   : > { %v216_v60 = vsel %vm211_vm1, %v213_v47, %v215_v54  ;;  %v218_v61 = vsel %vm211_vm1, %v215_v54, %v217_v55  ;;  %v235_v62 = vmul.f32 %v232_v17, %v1237_v13  ;;  %v236_v63 = vmul.f32 %v232_v17, %v1244_v18 }
  0x1d   : > { %v220_v0 = vsel %vm211_vm1, %v217_v55, %v219_v56  ;;  %v226_v1 = vadd.f32 %v216_v60, %v194_v50  ;;  %v227_v2 = vadd.f32 %v218_v61, %v195_v51  ;;  %v237_v14 = vmul.f32 %v232_v17, %v1247_v19 }
  0x1e   : > { %v228_v15 = vadd.f32 %v220_v0, %v196_v52  ;;  %v244_v16 = vrot.slane %v233_v58, 3  ;;  %v245_v24 = vrot.slane %v234_v59, 3  ;;  %v247_v25 = vrot.slane %v235_v62, 3 }
  0x1f   : > { %v249_v26 = vrot.slane %v236_v63, 3  ;;  %v251_v27 = vrot.slane %v237_v14, 3  ;;  %v265_v28 = vmul.f32 %v1250_v20, %v1231_v11  ;;  %v266_v29 = vmul.f32 %v1250_v20, %v1234_v12 }
  0x20   : > { %v246_v30 = vsel %vm243_vm2, %v244_v16, %v245_v24  ;;  %v248_v31 = vsel %vm243_vm2, %v245_v24, %v247_v25  ;;  %v267_v17 = vmul.f32 %v1250_v20, %v1237_v13  ;;  %v268_v32 = vmul.f32 %v1250_v20, %v1244_v18 }
  0x21   : > { %v250_v33 = vsel %vm243_vm2, %v247_v25, %v249_v26  ;;  %v252_v34 = vsel %vm243_vm2, %v249_v26, %v251_v27  ;;  %v257_v35 = vadd.f32 %v246_v30, %v225_v57  ;;  %v258_v36 = vadd.f32 %v248_v31, %v226_v1 }
  0x22   : > { %v259_v37 = vadd.f32 %v250_v33, %v227_v2  ;;  %v260_v38 = vadd.f32 %v252_v34, %v228_v15  ;;  %v269_v39 = vmul.f32 %v1250_v20, %v1247_v19  ;;  %v276_v40 = vrot.slane %v265_v28, 4 }
  0x23   : > { %v277_v41 = vrot.slane %v266_v29, 4  ;;  %v279_v42 = vrot.slane %v267_v17, 4  ;;  %v281_v43 = vrot.slane %v268_v32, 4  ;;  %v297_v44 = vmul.f32 %v1253_v21, %v1231_v11 }
  0x24   : > { %v283_v45 = vrot.slane %v269_v39, 4  ;;  %v298_v46 = vmul.f32 %v1253_v21, %v1234_v12  ;;  %v299_v47 = vmul.f32 %v1253_v21, %v1237_v13  ;;  %v300_v48 = vmul.f32 %v1253_v21, %v1244_v18 }
  0x25   : > { %v278_v20 = vsel %vm275_vm3, %v276_v40, %v277_v41  ;;  %v280_v49 = vsel %vm275_vm3, %v277_v41, %v279_v42  ;;  %v282_v50 = vsel %vm275_vm3, %v279_v42, %v281_v43  ;;  %v301_v51 = vmul.f32 %v1253_v21, %v1247_v19 }
  0x26   : > { %v284_v52 = vsel %vm275_vm3, %v281_v43, %v283_v45  ;;  %v289_v53 = vadd.f32 %v278_v20, %v257_v35  ;;  %v290_v54 = vadd.f32 %v280_v49, %v258_v36  ;;  %v291_v55 = vadd.f32 %v282_v50, %v259_v37 }
  0x27   : > { %v292_v56 = vadd.f32 %v284_v52, %v260_v38  ;;  %v308_v57 = vrot.slane %v297_v44, 5  ;;  %v309_v58 = vrot.slane %v298_v46, 5  ;;  %v311_v59 = vrot.slane %v299_v47, 5 }
  0x28   : > { %v313_v60 = vrot.slane %v300_v48, 5  ;;  %v315_v61 = vrot.slane %v301_v51, 5  ;;  %v329_v62 = vmul.f32 %v1256_v22, %v1231_v11  ;;  %v330_v63 = vmul.f32 %v1256_v22, %v1234_v12 }
  0x29   : > { %v310_v21 = vsel %vm307_vm4, %v308_v57, %v309_v58  ;;  %v312_v0 = vsel %vm307_vm4, %v309_v58, %v311_v59  ;;  %v331_v1 = vmul.f32 %v1256_v22, %v1237_v13  ;;  %v332_v2 = vmul.f32 %v1256_v22, %v1244_v18  ;;  %v1362_v57 = vld [vmem:[%s1220_s16 + $0x28] sm:$0xff] }
  0x2a   : > { %v314_v14 = vsel %vm307_vm4, %v311_v59, %v313_v60  ;;  %v316_v15 = vsel %vm307_vm4, %v313_v60, %v315_v61  ;;  %v321_v16 = vadd.f32 %v310_v21, %v289_v53  ;;  %v322_v24 = vadd.f32 %v312_v0, %v290_v54 }
  0x2b   : > { %v323_v25 = vadd.f32 %v314_v14, %v291_v55  ;;  %v324_v26 = vadd.f32 %v316_v15, %v292_v56  ;;  %v333_v27 = vmul.f32 %v1256_v22, %v1247_v19  ;;  %v340_v28 = vrot.slane %v329_v62, 6  ;;  %v1341_v22 = vld [vmem:[%s1647_s1 + $0x8] sm:$0xff] }
  0x2c   : > { %v341_v29 = vrot.slane %v330_v63, 6  ;;  %v343_v30 = vrot.slane %v331_v1, 6  ;;  %v345_v31 = vrot.slane %v332_v2, 6  ;;  %v361_v17 = vmul.f32 %v1259_v23, %v1231_v11 }
  0x2d   : > { %v347_v32 = vrot.slane %v333_v27, 6  ;;  %v362_v33 = vmul.f32 %v1259_v23, %v1234_v12  ;;  %v363_v34 = vmul.f32 %v1259_v23, %v1237_v13  ;;  %v364_v35 = vmul.f32 %v1259_v23, %v1244_v18 }
  0x2e   : > { %v342_v36 = vsel %vm339_vm5, %v340_v28, %v341_v29  ;;  %v344_v37 = vsel %vm339_vm5, %v341_v29, %v343_v30  ;;  %v346_v11 = vsel %vm339_vm5, %v343_v30, %v345_v31  ;;  %v365_v38 = vmul.f32 %v1259_v23, %v1247_v19 }
  0x2f   : > { %v348_v39 = vsel %vm339_vm5, %v345_v31, %v347_v32  ;;  %v353_v40 = vadd.f32 %v342_v36, %v321_v16  ;;  %v354_v41 = vadd.f32 %v344_v37, %v322_v24  ;;  %v355_v42 = vadd.f32 %v346_v11, %v323_v25 }
  0x30   : > { %v356_v43 = vadd.f32 %v348_v39, %v324_v26  ;;  %v372_v44 = vrot.slane %v361_v17, 7  ;;  %v373_v45 = vrot.slane %v362_v33, 7  ;;  %v375_v46 = vrot.slane %v363_v34, 7 }
  0x31   : > { %v377_v47 = vrot.slane %v364_v35, 7  ;;  %v379_v48 = vrot.slane %v365_v38, 7  ;;  %v392_v20 = vrot.slane %v1341_v22, %v1209_v3  ;;  %v404_v49 = vrot.slane %v1341_v22, %v1211_v4 }
  0x32   : > { %v374_v23 = vsel %vm371_vm6, %v372_v44, %v373_v45  ;;  %v376_v50 = vsel %vm371_vm6, %v373_v45, %v375_v46  ;;  %v435_v51 = vrot.slane %v1341_v22, %v1213_v5  ;;  %v466_v52 = vrot.slane %v1341_v22, %v1215_v6 }
  0x33   : > { %v378_v53 = vsel %vm371_vm6, %v375_v46, %v377_v47  ;;  %v380_v54 = vsel %vm371_vm6, %v377_v47, %v379_v48  ;;  %v385_v55 = vadd.f32 %v374_v23, %v353_v40  ;;  %v386_v56 = vadd.f32 %v376_v50, %v354_v41 }
  0x34   : > { %v387_v58 = vadd.f32 %v378_v53, %v355_v42  ;;  %v388_v59 = vadd.f32 %v380_v54, %v356_v43  ;;  %v393_v60 = vmul.f32 %v392_v20, %v1234_v12  ;;  %v394_v61 = vmul.f32 %v392_v20, %v1237_v13 }
  0x35   : > { %v395_v62 = vmul.f32 %v392_v20, %v1244_v18  ;;  %v396_v63 = vmul.f32 %v392_v20, %v1247_v19  ;;  %v405_v21 = vmul.f32 %v404_v49, %v1234_v12  ;;  %v406_v0 = vmul.f32 %v404_v49, %v1237_v13 }
  0x36   : > { %v397_v1 = vadd.f32 %v393_v60, %v385_v55  ;;  %v398_v2 = vadd.f32 %v394_v61, %v386_v56  ;;  %v407_v14 = vmul.f32 %v404_v49, %v1244_v18  ;;  %v408_v15 = vmul.f32 %v404_v49, %v1247_v19 }
  0x37   : > { %v399_v16 = vadd.f32 %v395_v62, %v387_v58  ;;  %v400_v24 = vadd.f32 %v396_v63, %v388_v59  ;;  %v409_v25 = vmul.f32 %v404_v49, %v1362_v57  ;;  %v415_v26 = vrot.slane %v405_v21, 1 }
  0x38   : > { %v416_v27 = vrot.slane %v406_v0, 1  ;;  %v418_v28 = vrot.slane %v407_v14, 1  ;;  %v420_v29 = vrot.slane %v408_v15, 1  ;;  %v436_v30 = vmul.f32 %v435_v51, %v1234_v12 }
  0x39   : > { %v422_v31 = vrot.slane %v409_v25, 1  ;;  %v437_v17 = vmul.f32 %v435_v51, %v1237_v13  ;;  %v438_v32 = vmul.f32 %v435_v51, %v1244_v18  ;;  %v439_v33 = vmul.f32 %v435_v51, %v1247_v19 }
  0x3a   : > { %v417_v34 = vsel %vm179_vm0, %v415_v26, %v416_v27  ;;  %v419_v35 = vsel %vm179_vm0, %v416_v27, %v418_v28  ;;  %v421_v36 = vsel %vm179_vm0, %v418_v28, %v420_v29  ;;  %v440_v37 = vmul.f32 %v435_v51, %v1362_v57 }
  0x3b   : > { %v423_v11 = vsel %vm179_vm0, %v420_v29, %v422_v31  ;;  %v428_v38 = vadd.f32 %v417_v34, %v397_v1  ;;  %v429_v39 = vadd.f32 %v419_v35, %v398_v2  ;;  %v430_v40 = vadd.f32 %v421_v36, %v399_v16 }
  0x3c   : > { %v431_v41 = vadd.f32 %v423_v11, %v400_v24  ;;  %v446_v42 = vrot.slane %v436_v30, 2  ;;  %v447_v43 = vrot.slane %v437_v17, 2  ;;  %v449_v44 = vrot.slane %v438_v32, 2 }
  0x3d   : > { %v451_v45 = vrot.slane %v439_v33, 2  ;;  %v453_v46 = vrot.slane %v440_v37, 2  ;;  %v467_v47 = vmul.f32 %v466_v52, %v1234_v12  ;;  %v468_v48 = vmul.f32 %v466_v52, %v1237_v13 }
  0x3e   : > { %v448_v20 = vsel %vm211_vm1, %v446_v42, %v447_v43  ;;  %v450_v49 = vsel %vm211_vm1, %v447_v43, %v449_v44  ;;  %v469_v23 = vmul.f32 %v466_v52, %v1244_v18  ;;  %v470_v50 = vmul.f32 %v466_v52, %v1247_v19 }
  0x3f   : > { %v452_v51 = vsel %vm211_vm1, %v449_v44, %v451_v45  ;;  %v454_v53 = vsel %vm211_vm1, %v451_v45, %v453_v46  ;;  %v459_v54 = vadd.f32 %v448_v20, %v428_v38  ;;  %v460_v55 = vadd.f32 %v450_v49, %v429_v39 }
  0x40   : > { %v461_v56 = vadd.f32 %v452_v51, %v430_v40  ;;  %v462_v58 = vadd.f32 %v454_v53, %v431_v41  ;;  %v471_v59 = vmul.f32 %v466_v52, %v1362_v57  ;;  %v477_v60 = vrot.slane %v467_v47, 3 }
  0x41   : > { %v478_v61 = vrot.slane %v468_v48, 3  ;;  %v480_v62 = vrot.slane %v469_v23, 3  ;;  %v482_v63 = vrot.slane %v470_v50, 3  ;;  %v497_v21 = vrot.slane %v1341_v22, %v1222_v7 }
  0x42   : > { %v484_v0 = vrot.slane %v471_v59, 3  ;;  %v528_v1 = vrot.slane %v1341_v22, %v1224_v8  ;;  %v559_v2 = vrot.slane %v1341_v22, %v1226_v9  ;;  %v1399_v14 = vrot.slane %v1341_v22, %v1228_v10 }
  0x43   : > { %v479_v52 = vsel %vm243_vm2, %v477_v60, %v478_v61  ;;  %v481_v15 = vsel %vm243_vm2, %v478_v61, %v480_v62  ;;  %v483_v16 = vsel %vm243_vm2, %v480_v62, %v482_v63  ;;  %v498_v24 = vmul.f32 %v497_v21, %v1234_v12 }
  0x44   : > { %v485_v25 = vsel %vm243_vm2, %v482_v63, %v484_v0  ;;  %v490_v26 = vadd.f32 %v479_v52, %v459_v54  ;;  %v491_v27 = vadd.f32 %v481_v15, %v460_v55  ;;  %v492_v28 = vadd.f32 %v483_v16, %v461_v56 }
  0x45   : > { %v493_v29 = vadd.f32 %v485_v25, %v462_v58  ;;  %v499_v30 = vmul.f32 %v497_v21, %v1237_v13  ;;  %v500_v31 = vmul.f32 %v497_v21, %v1244_v18  ;;  %v501_v22 = vmul.f32 %v497_v21, %v1247_v19 }
  0x46   : > { %v502_v17 = vmul.f32 %v497_v21, %v1362_v57  ;;  %v508_v32 = vrot.slane %v498_v24, 4  ;;  %v529_v33 = vmul.f32 %v528_v1, %v1234_v12  ;;  %v530_v34 = vmul.f32 %v528_v1, %v1237_v13 }
  0x47   : > { %v509_v35 = vrot.slane %v499_v30, 4  ;;  %v511_v36 = vrot.slane %v500_v31, 4  ;;  %v513_v37 = vrot.slane %v501_v22, 4  ;;  %v531_v11 = vmul.f32 %v528_v1, %v1244_v18 }
  0x48   : > { %v515_v38 = vrot.slane %v502_v17, 4  ;;  %v532_v39 = vmul.f32 %v528_v1, %v1247_v19  ;;  %v533_v40 = vmul.f32 %v528_v1, %v1362_v57  ;;  %v539_v41 = vrot.slane %v529_v33, 5 }
  0x49   : > { %v510_v42 = vsel %vm275_vm3, %v508_v32, %v509_v35  ;;  %v512_v43 = vsel %vm275_vm3, %v509_v35, %v511_v36  ;;  %v514_v44 = vsel %vm275_vm3, %v511_v36, %v513_v37  ;;  %v540_v45 = vrot.slane %v530_v34, 5 }
  0x4a   : > { %v516_v46 = vsel %vm275_vm3, %v513_v37, %v515_v38  ;;  %v521_v47 = vadd.f32 %v510_v42, %v490_v26  ;;  %v522_v48 = vadd.f32 %v512_v43, %v491_v27  ;;  %v523_v20 = vadd.f32 %v514_v44, %v492_v28  ;;  %v1435_v28 = vld [vmem:[%s1647_s1 + $0x10] sm:$0xff] }
  0x4b   : > { %v524_v49 = vadd.f32 %v516_v46, %v493_v29  ;;  %v541_v23 = vsel %vm307_vm4, %v539_v41, %v540_v45  ;;  %v542_v50 = vrot.slane %v531_v11, 5  ;;  %v544_v51 = vrot.slane %v532_v39, 5 }
  0x4c   : > { %v546_v53 = vrot.slane %v533_v40, 5  ;;  %v552_v54 = vadd.f32 %v541_v23, %v521_v47  ;;  %v560_v55 = vmul.f32 %v559_v2, %v1234_v12  ;;  %v561_v56 = vmul.f32 %v559_v2, %v1237_v13  ;;  %v1461_v23 = vld [vmem:[%s1220_s16 + $0x30] sm:$0xff] }
  0x4d   : > { %v543_v58 = vsel %vm307_vm4, %v540_v45, %v542_v50  ;;  %v545_v59 = vsel %vm307_vm4, %v542_v50, %v544_v51  ;;  %v562_v60 = vmul.f32 %v559_v2, %v1244_v18  ;;  %v563_v61 = vmul.f32 %v559_v2, %v1247_v19 }
  0x4e   : > { %v547_v62 = vsel %vm307_vm4, %v544_v51, %v546_v53  ;;  %v553_v63 = vadd.f32 %v543_v58, %v522_v48  ;;  %v554_v21 = vadd.f32 %v545_v59, %v523_v20  ;;  %v564_v0 = vmul.f32 %v559_v2, %v1362_v57 }
  0x4f   : > { %v555_v1 = vadd.f32 %v547_v62, %v524_v49  ;;  %v570_v52 = vrot.slane %v560_v55, 6  ;;  %v571_v15 = vrot.slane %v561_v56, 6  ;;  %v573_v16 = vrot.slane %v562_v60, 6 }
  0x50   : > { %v575_v24 = vrot.slane %v563_v61, 6  ;;  %v577_v25 = vrot.slane %v564_v0, 6  ;;  %v591_v26 = vmul.f32 %v1399_v14, %v1234_v12  ;;  %v592_v27 = vmul.f32 %v1399_v14, %v1237_v13 }
  0x51   : > { %v572_v29 = vsel %vm339_vm5, %v570_v52, %v571_v15  ;;  %v574_v2 = vsel %vm339_vm5, %v571_v15, %v573_v16  ;;  %v593_v30 = vmul.f32 %v1399_v14, %v1244_v18  ;;  %v594_v31 = vmul.f32 %v1399_v14, %v1247_v19 }
  0x52   : > { %v576_v12 = vsel %vm339_vm5, %v573_v16, %v575_v24  ;;  %v578_v22 = vsel %vm339_vm5, %v575_v24, %v577_v25  ;;  %v583_v17 = vadd.f32 %v572_v29, %v552_v54  ;;  %v584_v32 = vadd.f32 %v574_v2, %v553_v63 }
  0x53   : > { %v585_v33 = vadd.f32 %v576_v12, %v554_v21  ;;  %v586_v34 = vadd.f32 %v578_v22, %v555_v1  ;;  %v595_v35 = vmul.f32 %v1399_v14, %v1362_v57  ;;  %v601_v36 = vrot.slane %v591_v26, 7 }
  0x54   : > { %v602_v37 = vrot.slane %v592_v27, 7  ;;  %v604_v11 = vrot.slane %v593_v30, 7  ;;  %v606_v38 = vrot.slane %v594_v31, 7  ;;  %v621_v39 = vrot.slane %v1435_v28, %v1209_v3 }
  0x55   : > { %v608_v40 = vrot.slane %v595_v35, 7  ;;  %v633_v41 = vrot.slane %v1435_v28, %v1211_v4  ;;  %v664_v42 = vrot.slane %v1435_v28, %v1213_v5  ;;  %v695_v43 = vrot.slane %v1435_v28, %v1215_v6 }
  0x56   : > { %v603_v14 = vsel %vm371_vm6, %v601_v36, %v602_v37  ;;  %v605_v44 = vsel %vm371_vm6, %v602_v37, %v604_v11  ;;  %v607_v45 = vsel %vm371_vm6, %v604_v11, %v606_v38  ;;  %v622_v46 = vmul.f32 %v621_v39, %v1237_v13 }
  0x57   : > { %v609_v47 = vsel %vm371_vm6, %v606_v38, %v608_v40  ;;  %v614_v48 = vadd.f32 %v603_v14, %v583_v17  ;;  %v615_v20 = vadd.f32 %v605_v44, %v584_v32  ;;  %v616_v49 = vadd.f32 %v607_v45, %v585_v33 }
  0x58   : > { %v617_v50 = vadd.f32 %v609_v47, %v586_v34  ;;  %v623_v51 = vmul.f32 %v621_v39, %v1244_v18  ;;  %v624_v53 = vmul.f32 %v621_v39, %v1247_v19  ;;  %v625_v54 = vmul.f32 %v621_v39, %v1362_v57 }
  0x59   : > { %v626_v55 = vadd.f32 %v622_v46, %v614_v48  ;;  %v634_v56 = vmul.f32 %v633_v41, %v1237_v13  ;;  %v635_v58 = vmul.f32 %v633_v41, %v1244_v18  ;;  %v636_v59 = vmul.f32 %v633_v41, %v1247_v19 }
  0x5a   : > { %v627_v60 = vadd.f32 %v623_v51, %v615_v20  ;;  %v628_v61 = vadd.f32 %v624_v53, %v616_v49  ;;  %v629_v62 = vadd.f32 %v625_v54, %v617_v50  ;;  %v637_v63 = vmul.f32 %v633_v41, %v1362_v57 }
  0x5b   : > { %v638_v21 = vmul.f32 %v633_v41, %v1461_v23  ;;  %v644_v0 = vrot.slane %v634_v56, 1  ;;  %v645_v1 = vrot.slane %v635_v58, 1  ;;  %v647_v52 = vrot.slane %v636_v59, 1 }
  0x5c   : > { %v649_v15 = vrot.slane %v637_v63, 1  ;;  %v665_v16 = vmul.f32 %v664_v42, %v1237_v13  ;;  %v666_v24 = vmul.f32 %v664_v42, %v1244_v18  ;;  %v667_v25 = vmul.f32 %v664_v42, %v1247_v19 }
  0x5d   : > { %v646_v26 = vsel %vm179_vm0, %v644_v0, %v645_v1  ;;  %v648_v27 = vsel %vm179_vm0, %v645_v1, %v647_v52  ;;  %v651_v29 = vrot.slane %v638_v21, 1  ;;  %v668_v2 = vmul.f32 %v664_v42, %v1362_v57 }
  0x5e   : > { %v650_v30 = vsel %vm179_vm0, %v647_v52, %v649_v15  ;;  %v657_v31 = vadd.f32 %v646_v26, %v626_v55  ;;  %v658_v12 = vadd.f32 %v648_v27, %v627_v60  ;;  %v669_v22 = vmul.f32 %v664_v42, %v1461_v23 }
  0x5f   : > { %v652_v17 = vsel %vm179_vm0, %v649_v15, %v651_v29  ;;  %v659_v32 = vadd.f32 %v650_v30, %v628_v61  ;;  %v675_v33 = vrot.slane %v665_v16, 2  ;;  %v676_v34 = vrot.slane %v666_v24, 2 }
  0x60   : > { %v660_v35 = vadd.f32 %v652_v17, %v629_v62  ;;  %v678_v36 = vrot.slane %v667_v25, 2  ;;  %v680_v37 = vrot.slane %v668_v2, 2  ;;  %v682_v11 = vrot.slane %v669_v22, 2 }
  0x61   : > { %v677_v38 = vsel %vm211_vm1, %v675_v33, %v676_v34  ;;  %v696_v39 = vmul.f32 %v695_v43, %v1237_v13  ;;  %v697_v40 = vmul.f32 %v695_v43, %v1244_v18  ;;  %v698_v41 = vmul.f32 %v695_v43, %v1247_v19 }
  0x62   : > { %v679_v14 = vsel %vm211_vm1, %v676_v34, %v678_v36  ;;  %v681_v42 = vsel %vm211_vm1, %v678_v36, %v680_v37  ;;  %v683_v44 = vsel %vm211_vm1, %v680_v37, %v682_v11  ;;  %v688_v45 = vadd.f32 %v677_v38, %v657_v31 }
  0x63   : > { %v689_v46 = vadd.f32 %v679_v14, %v658_v12  ;;  %v690_v47 = vadd.f32 %v681_v42, %v659_v32  ;;  %v691_v48 = vadd.f32 %v683_v44, %v660_v35  ;;  %v699_v20 = vmul.f32 %v695_v43, %v1362_v57 }
  0x64   : > { %v700_v49 = vmul.f32 %v695_v43, %v1461_v23  ;;  %v706_v50 = vrot.slane %v696_v39, 3  ;;  %v707_v51 = vrot.slane %v697_v40, 3  ;;  %v709_v53 = vrot.slane %v698_v41, 3 }
  0x65   : > { %v711_v54 = vrot.slane %v699_v20, 3  ;;  %v726_v55 = vrot.slane %v1435_v28, %v1222_v7  ;;  %v757_v56 = vrot.slane %v1435_v28, %v1224_v8  ;;  %v788_v58 = vrot.slane %v1435_v28, %v1226_v9 }
  0x66   : > { %v708_v59 = vsel %vm243_vm2, %v706_v50, %v707_v51  ;;  %v710_v60 = vsel %vm243_vm2, %v707_v51, %v709_v53  ;;  %v713_v61 = vrot.slane %v700_v49, 3  ;;  %v819_v43 = vrot.slane %v1435_v28, %v1228_v10 }
  0x67   : > { %v712_v62 = vsel %vm243_vm2, %v709_v53, %v711_v54  ;;  %v719_v63 = vadd.f32 %v708_v59, %v688_v45  ;;  %v720_v21 = vadd.f32 %v710_v60, %v689_v46  ;;  %v727_v0 = vmul.f32 %v726_v55, %v1237_v13 }
  0x68   : > { %v714_v1 = vsel %vm243_vm2, %v711_v54, %v713_v61  ;;  %v721_v52 = vadd.f32 %v712_v62, %v690_v47  ;;  %v728_v15 = vmul.f32 %v726_v55, %v1244_v18  ;;  %v729_v16 = vmul.f32 %v726_v55, %v1247_v19 }
  0x69   : > { %v722_v24 = vadd.f32 %v714_v1, %v691_v48  ;;  %v730_v25 = vmul.f32 %v726_v55, %v1362_v57  ;;  %v731_v26 = vmul.f32 %v726_v55, %v1461_v23  ;;  %v737_v27 = vrot.slane %v727_v0, 4 }
  0x6a   : > { %v738_v28 = vrot.slane %v728_v15, 4  ;;  %v740_v29 = vrot.slane %v729_v16, 4  ;;  %v758_v2 = vmul.f32 %v757_v56, %v1237_v13  ;;  %v759_v30 = vmul.f32 %v757_v56, %v1244_v18  ;;  %v1531_v16 = vld [vmem:[%s1647_s1 + $0x18] sm:$0xff] }
  0x6b   : > { %v742_v31 = vrot.slane %v730_v25, 4  ;;  %v744_v12 = vrot.slane %v731_v26, 4  ;;  %v760_v22 = vmul.f32 %v757_v56, %v1247_v19  ;;  %v761_v17 = vmul.f32 %v757_v56, %v1362_v57 }
  0x6c   : > { %v739_v32 = vsel %vm275_vm3, %v737_v27, %v738_v28  ;;  %v741_v33 = vsel %vm275_vm3, %v738_v28, %v740_v29  ;;  %v762_v34 = vmul.f32 %v757_v56, %v1461_v23  ;;  %v768_v35 = vrot.slane %v758_v2, 5 }
  0x6d   : > { %v743_v36 = vsel %vm275_vm3, %v740_v29, %v742_v31  ;;  %v745_v37 = vsel %vm275_vm3, %v742_v31, %v744_v12  ;;  %v750_v11 = vadd.f32 %v739_v32, %v719_v63  ;;  %v751_v38 = vadd.f32 %v741_v33, %v720_v21 }
  0x6e   : > { %v752_v39 = vadd.f32 %v743_v36, %v721_v52  ;;  %v753_v40 = vadd.f32 %v745_v37, %v722_v24  ;;  %v769_v41 = vrot.slane %v759_v30, 5  ;;  %v771_v14 = vrot.slane %v760_v22, 5 }
  0x6f   : > { %v773_v42 = vrot.slane %v761_v17, 5  ;;  %v775_v44 = vrot.slane %v762_v34, 5  ;;  %v789_v45 = vmul.f32 %v788_v58, %v1237_v13  ;;  %v790_v46 = vmul.f32 %v788_v58, %v1244_v18 }
  0x70   : > { %v770_v47 = vsel %vm307_vm4, %v768_v35, %v769_v41  ;;  %v772_v48 = vsel %vm307_vm4, %v769_v41, %v771_v14  ;;  %v791_v20 = vmul.f32 %v788_v58, %v1247_v19  ;;  %v792_v49 = vmul.f32 %v788_v58, %v1362_v57 }
  0x71   : > { %v774_v50 = vsel %vm307_vm4, %v771_v14, %v773_v42  ;;  %v776_v51 = vsel %vm307_vm4, %v773_v42, %v775_v44  ;;  %v781_v53 = vadd.f32 %v770_v47, %v750_v11  ;;  %v782_v54 = vadd.f32 %v772_v48, %v751_v38 }
  0x72   : > { %v783_v55 = vadd.f32 %v774_v50, %v752_v39  ;;  %v784_v56 = vadd.f32 %v776_v51, %v753_v40  ;;  %v793_v59 = vmul.f32 %v788_v58, %v1461_v23  ;;  %v799_v60 = vrot.slane %v789_v45, 6 }
  0x73   : > { %v800_v61 = vrot.slane %v790_v46, 6  ;;  %v802_v62 = vrot.slane %v791_v20, 6  ;;  %v804_v63 = vrot.slane %v792_v49, 6  ;;  %v820_v21 = vmul.f32 %v819_v43, %v1237_v13 }
  0x74   : > { %v806_v0 = vrot.slane %v793_v59, 6  ;;  %v821_v1 = vmul.f32 %v819_v43, %v1244_v18  ;;  %v822_v52 = vmul.f32 %v819_v43, %v1247_v19  ;;  %v823_v15 = vmul.f32 %v819_v43, %v1362_v57 }
  0x75   : > { %v801_v58 = vsel %vm339_vm5, %v799_v60, %v800_v61  ;;  %v803_v24 = vsel %vm339_vm5, %v800_v61, %v802_v62  ;;  %v805_v25 = vsel %vm339_vm5, %v802_v62, %v804_v63  ;;  %v824_v13 = vmul.f32 %v819_v43, %v1461_v23 }
  0x76   : > { %v807_v26 = vsel %vm339_vm5, %v804_v63, %v806_v0  ;;  %v812_v27 = vadd.f32 %v801_v58, %v781_v53  ;;  %v813_v28 = vadd.f32 %v803_v24, %v782_v54  ;;  %v814_v29 = vadd.f32 %v805_v25, %v783_v55 }
  0x77   : > { %v815_v2 = vadd.f32 %v807_v26, %v784_v56  ;;  %v830_v30 = vrot.slane %v820_v21, 7  ;;  %v831_v31 = vrot.slane %v821_v1, 7  ;;  %v833_v12 = vrot.slane %v822_v52, 7 }
  0x78   : > { %v835_v22 = vrot.slane %v823_v15, 7  ;;  %v837_v17 = vrot.slane %v824_v13, 7  ;;  %v850_v32 = vrot.slane %v1531_v16, %v1209_v3  ;;  %v862_v33 = vrot.slane %v1531_v16, %v1211_v4  ;;  %v1551_v3 = vld [vmem:[%s1220_s16 + $0x38] sm:$0xff] }
  0x79   : > { %v832_v43 = vsel %vm371_vm6, %v830_v30, %v831_v31  ;;  %v834_v34 = vsel %vm371_vm6, %v831_v31, %v833_v12  ;;  %v893_v35 = vrot.slane %v1531_v16, %v1213_v5  ;;  %v924_v36 = vrot.slane %v1531_v16, %v1215_v6 }
  0x7a   : > { %v836_v37 = vsel %vm371_vm6, %v833_v12, %v835_v22  ;;  %v838_v11 = vsel %vm371_vm6, %v835_v22, %v837_v17  ;;  %v843_v38 = vadd.f32 %v832_v43, %v812_v27  ;;  %v844_v39 = vadd.f32 %v834_v34, %v813_v28 }
  0x7b   : > { %v845_v40 = vadd.f32 %v836_v37, %v814_v29  ;;  %v846_v4 = vadd.f32 %v838_v11, %v815_v2  ;;  %v851_v41 = vmul.f32 %v850_v32, %v1244_v18  ;;  %v852_v14 = vmul.f32 %v850_v32, %v1247_v19 }
  0x7c   : > { %v853_v42 = vmul.f32 %v850_v32, %v1362_v57  ;;  %v854_v5 = vmul.f32 %v850_v32, %v1461_v23  ;;  %v863_v6 = vmul.f32 %v862_v33, %v1244_v18  ;;  %v864_v44 = vmul.f32 %v862_v33, %v1247_v19 }
  0x7d   : > { %v855_v45 = vadd.f32 %v851_v41, %v843_v38  ;;  %v856_v46 = vadd.f32 %v852_v14, %v844_v39  ;;  %v865_v47 = vmul.f32 %v862_v33, %v1362_v57  ;;  %v866_v48 = vmul.f32 %v862_v33, %v1461_v23 }
  0x7e   : > { %v857_v20 = vadd.f32 %v853_v42, %v845_v40  ;;  %v858_v49 = vadd.f32 %v854_v5, %v846_v4  ;;  %v867_v50 = vmul.f32 %v862_v33, %v1551_v3  ;;  %v873_v51 = vrot.slane %v863_v6, 1 }
  0x7f   : > { %v874_v53 = vrot.slane %v864_v44, 1  ;;  %v876_v54 = vrot.slane %v865_v47, 1  ;;  %v878_v55 = vrot.slane %v866_v48, 1  ;;  %v894_v56 = vmul.f32 %v893_v35, %v1244_v18 }
  0x80   : > { %v880_v59 = vrot.slane %v867_v50, 1  ;;  %v895_v60 = vmul.f32 %v893_v35, %v1247_v19  ;;  %v896_v61 = vmul.f32 %v893_v35, %v1362_v57  ;;  %v897_v62 = vmul.f32 %v893_v35, %v1461_v23 }
  0x81   : > { %v875_v63 = vsel %vm179_vm0, %v873_v51, %v874_v53  ;;  %v877_v21 = vsel %vm179_vm0, %v874_v53, %v876_v54  ;;  %v879_v0 = vsel %vm179_vm0, %v876_v54, %v878_v55  ;;  %v898_v1 = vmul.f32 %v893_v35, %v1551_v3 }
  0x82   : > { %v881_v52 = vsel %vm179_vm0, %v878_v55, %v880_v59  ;;  %v886_v15 = vadd.f32 %v875_v63, %v855_v45  ;;  %v887_v58 = vadd.f32 %v877_v21, %v856_v46  ;;  %v888_v24 = vadd.f32 %v879_v0, %v857_v20 }
  0x83   : > { %v889_v25 = vadd.f32 %v881_v52, %v858_v49  ;;  %v904_v13 = vrot.slane %v894_v56, 2  ;;  %v905_v26 = vrot.slane %v895_v60, 2  ;;  %v907_v27 = vrot.slane %v896_v61, 2 }
  0x84   : > { %v909_v28 = vrot.slane %v897_v62, 2  ;;  %v911_v29 = vrot.slane %v898_v1, 2  ;;  %v925_v2 = vmul.f32 %v924_v36, %v1244_v18  ;;  %v926_v30 = vmul.f32 %v924_v36, %v1247_v19 }
  0x85   : > { %v906_v31 = vsel %vm211_vm1, %v904_v13, %v905_v26  ;;  %v908_v12 = vsel %vm211_vm1, %v905_v26, %v907_v27  ;;  %v927_v22 = vmul.f32 %v924_v36, %v1362_v57  ;;  %v928_v17 = vmul.f32 %v924_v36, %v1461_v23 }
  0x86   : > { %v910_v32 = vsel %vm211_vm1, %v907_v27, %v909_v28  ;;  %v912_v33 = vsel %vm211_vm1, %v909_v28, %v911_v29  ;;  %v917_v43 = vadd.f32 %v906_v31, %v886_v15  ;;  %v918_v34 = vadd.f32 %v908_v12, %v887_v58  ;;  %v1170_v29 = vld [vmem:[%s1220_s16 + $0x18] sm:$0xff] }
  0x87   : > { %v919_v35 = vadd.f32 %v910_v32, %v888_v24  ;;  %v920_v37 = vadd.f32 %v912_v33, %v889_v25  ;;  %v929_v11 = vmul.f32 %v924_v36, %v1551_v3  ;;  %v935_v38 = vrot.slane %v925_v2, 3 }
  0x88   : > { %v936_v39 = vrot.slane %v926_v30, 3  ;;  %v938_v40 = vrot.slane %v927_v22, 3  ;;  %v940_v4 = vrot.slane %v928_v17, 3  ;;  %v955_v41 = vrot.slane %v1531_v16, %v1222_v7  ;;  %v1171_v30 = vld [vmem:[%s1220_s16 + $0x20] sm:$0xff] }
  0x89   : > { %v942_v14 = vrot.slane %v929_v11, 3  ;;  %v986_v42 = vrot.slane %v1531_v16, %v1224_v8  ;;  %v1017_v5 = vrot.slane %v1531_v16, %v1226_v9  ;;  %v1588_v6 = vrot.slane %v1531_v16, %v1228_v10 }
  0x8a   : > { %v937_v36 = vsel %vm243_vm2, %v935_v38, %v936_v39  ;;  %v939_v44 = vsel %vm243_vm2, %v936_v39, %v938_v40  ;;  %v941_v45 = vsel %vm243_vm2, %v938_v40, %v940_v4  ;;  %v956_v46 = vmul.f32 %v955_v41, %v1244_v18 }
  0x8b   : > { %v943_v7 = vsel %vm243_vm2, %v940_v4, %v942_v14  ;;  %v948_v47 = vadd.f32 %v937_v36, %v917_v43  ;;  %v949_v48 = vadd.f32 %v939_v44, %v918_v34  ;;  %v950_v8 = vadd.f32 %v941_v45, %v919_v35  ;;  %v1157_v45 = vld [vmem:[%s1647_s1 + $0x20] ss:$0 sm:$0xff] }
  0x8c   : > { %v951_v20 = vadd.f32 %v943_v7, %v920_v37  ;;  %v957_v9 = vmul.f32 %v955_v41, %v1247_v19  ;;  %v958_v49 = vmul.f32 %v955_v41, %v1362_v57  ;;  %v959_v10 = vmul.f32 %v955_v41, %v1461_v23 }
  0x8d   : > { %v960_v16 = vmul.f32 %v955_v41, %v1551_v3  ;;  %v966_v50 = vrot.slane %v956_v46, 4  ;;  %v987_v51 = vmul.f32 %v986_v42, %v1244_v18  ;;  %v988_v53 = vmul.f32 %v986_v42, %v1247_v19 }
  0x8e   : > { %v967_v54 = vrot.slane %v957_v9, 4  ;;  %v969_v55 = vrot.slane %v958_v49, 4  ;;  %v971_v56 = vrot.slane %v959_v10, 4  ;;  %v989_v59 = vmul.f32 %v986_v42, %v1362_v57 }
  0x8f   : > { %v973_v60 = vrot.slane %v960_v16, 4  ;;  %v990_v61 = vmul.f32 %v986_v42, %v1461_v23  ;;  %v991_v62 = vmul.f32 %v986_v42, %v1551_v3  ;;  %v997_v63 = vrot.slane %v987_v51, 5 }
  0x90   : > { %v968_v21 = vsel %vm275_vm3, %v966_v50, %v967_v54  ;;  %v970_v0 = vsel %vm275_vm3, %v967_v54, %v969_v55  ;;  %v972_v18 = vsel %vm275_vm3, %v969_v55, %v971_v56  ;;  %v998_v19 = vrot.slane %v988_v53, 5 }
  0x91   : > { %v974_v1 = vsel %vm275_vm3, %v971_v56, %v973_v60  ;;  %v979_v52 = vadd.f32 %v968_v21, %v948_v47  ;;  %v980_v15 = vadd.f32 %v970_v0, %v949_v48  ;;  %v981_v58 = vadd.f32 %v972_v18, %v950_v8 }
  0x92   : > { %v982_v24 = vadd.f32 %v974_v1, %v951_v20  ;;  %v999_v25 = vsel %vm307_vm4, %v997_v63, %v998_v19  ;;  %v1000_v13 = vrot.slane %v989_v59, 5  ;;  %v1002_v26 = vrot.slane %v990_v61, 5 }
  0x93   : > { %v1004_v27 = vrot.slane %v991_v62, 5  ;;  %v1010_v28 = vadd.f32 %v999_v25, %v979_v52  ;;  %v1018_v2 = vmul.f32 %v1170_v29, %v1017_v5  ;;  %v1019_v31 = vmul.f32 %v1171_v30, %v1017_v5 }
  0x94   : > { %v1001_v12 = vsel %vm307_vm4, %v998_v19, %v1000_v13  ;;  %v1003_v22 = vsel %vm307_vm4, %v1000_v13, %v1002_v26  ;;  %v1020_v17 = vmul.f32 %v1017_v5, %v1362_v57  ;;  %v1021_v32 = vmul.f32 %v1017_v5, %v1461_v23 }
  0x95   : > { %v1005_v33 = vsel %vm307_vm4, %v1002_v26, %v1004_v27  ;;  %v1011_v43 = vadd.f32 %v1001_v12, %v980_v15  ;;  %v1012_v34 = vadd.f32 %v1003_v22, %v981_v58  ;;  %v1022_v35 = vmul.f32 %v1017_v5, %v1551_v3 }
  0x96   : > { %v1013_v37 = vadd.f32 %v1005_v33, %v982_v24  ;;  %v1028_v11 = vrot.slane %v1018_v2, 6  ;;  %v1029_v38 = vrot.slane %v1019_v31, 6  ;;  %v1031_v39 = vrot.slane %v1020_v17, 6 }
  0x97   : > { %v1033_v40 = vrot.slane %v1021_v32, 6  ;;  %v1035_v4 = vrot.slane %v1022_v35, 6  ;;  %v1049_v41 = vmul.f32 %v1170_v29, %v1588_v6  ;;  %v1050_v14 = vmul.f32 %v1171_v30, %v1588_v6 }
  0x98   : > { %v1030_v42 = vsel %vm339_vm5, %v1028_v11, %v1029_v38  ;;  %v1032_v36 = vsel %vm339_vm5, %v1029_v38, %v1031_v39  ;;  %v1051_v44 = vmul.f32 %v1588_v6, %v1362_v57  ;;  %v1052_v5 = vmul.f32 %v1588_v6, %v1461_v23 }
  0x99   : > { %v1034_v46 = vsel %vm339_vm5, %v1031_v39, %v1033_v40  ;;  %v1036_v7 = vsel %vm339_vm5, %v1033_v40, %v1035_v4  ;;  %v1041_v47 = vadd.f32 %v1030_v42, %v1010_v28  ;;  %v1042_v48 = vadd.f32 %v1032_v36, %v1011_v43 }
  0x9a   : > { %v1043_v8 = vadd.f32 %v1034_v46, %v1012_v34  ;;  %v1053_v20 = vmul.f32 %v1588_v6, %v1551_v3  ;;  %v1059_v9 = vrot.slane %v1049_v41, 7  ;;  %v1044_v49 = vadd.f32 %v1036_v7, %v1013_v37 }
  0x9b   : > { %v1060_v10 = vrot.slane %v1050_v14, 7  ;;  %v1062_v16 = vrot.slane %v1051_v44, 7  ;;  %v1064_v50 = vrot.slane %v1052_v5, 7  ;;  %v1080_v53 = vmul.f32 %v1171_v30, %v1157_v45 }
  0x9c   : > { %v1066_v51 = vrot.slane %v1053_v20, 7  ;;  %v1081_v54 = vmul.f32 %v1157_v45, %v1362_v57  ;;  %v1082_v55 = vmul.f32 %v1157_v45, %v1461_v23  ;;  %v1083_v6 = vmul.f32 %v1157_v45, %v1551_v3 }
  0x9d   : > { %v1061_v56 = vsel %vm371_vm6, %v1059_v9, %v1060_v10  ;;  %v1063_v59 = vsel %vm371_vm6, %v1060_v10, %v1062_v16  ;;  %v1065_v60 = vsel %vm371_vm6, %v1062_v16, %v1064_v50 }
  0x9e   : > { %v1067_v61 = vsel %vm371_vm6, %v1064_v50, %v1066_v51  ;;  %v1072_v62 = vadd.f32 %v1061_v56, %v1041_v47  ;;  %v1073_v63 = vadd.f32 %v1063_v59, %v1042_v48  ;;  %v1074_v21 = vadd.f32 %v1065_v60, %v1043_v8 }
  0x9f   : > { %v1075_v57 = vadd.f32 %v1067_v61, %v1044_v49 }
  0xa0   : > { %v1084_v23 = vadd.f32 %v1080_v53, %v1072_v62  ;;  %v1085_v0 = vadd.f32 %v1081_v54, %v1073_v63  ;;  %v1086_v18 = vadd.f32 %v1082_v55, %v1074_v21 }
  0xa1   : > { %v1087_v19 = vadd.f32 %v1083_v6, %v1075_v57 }
  0xa2   : > { %1089 = vst.msk [vmem:[%s143_s28] sm:$0xff] %vm1088_vm7, %v1084_v23  ;;  %1090 = vst.msk [vmem:[%s143_s28 + $0x8] sm:$0xff] %vm1088_vm7, %v1085_v0 }
  0xa3   : > { %1091 = vst.msk [vmem:[%s143_s28 + $0x10] sm:$0xff] %vm1088_vm7, %v1086_v18  ;;  %1092 = vst.msk [vmem:[%s143_s28 + $0x18] sm:$0xff] %vm1088_vm7, %v1087_v19 }
  0xa4 PF: > { %s12_s9 = sadd.s32 1, %s1178_s9  }
  0xa5   : > { %p9_p4 = scmp.ge.s32.totalorder %s12_s9, 4  }
  0xa7   :  { %11 = sbr.rel (!%p9_p4) target bundleno = 1 (0x1), region = 58 }

// kernel: transmil_forward.18
= control target key start
LH: loop header
LB: loop body
LE: loop exit
PB: predicated region body
PF: predicated region fallthrough
CT: control target
= control target key end

     0   :  { %s4184_s29 = smov 0   ;;  %s4698_s0 = inlined_call_operand.vmem [shape: f32[16,32,8], index: 0, kind: input, shape index: {}, may-alias: {0,3}]   ;;  %s4699_s1 = inlined_call_operand.vmem [shape: f32[16,32,8], index: 1, kind: input, shape index: {}, may-alias: {1,4}]   ;;  %s4700_s2 = inlined_call_operand.vmem [shape: f32[16,32,8], index: 2, kind: input, shape index: {}]   ;;  %s4701_s3 = inlined_call_operand.vmem [shape: f32[16,32,8], index: 3, kind: input, shape index: {}, may-alias: {0,3}]   ;;  %s4702_s4 = inlined_call_operand.vmem [shape: f32[16,32,8], index: 4, kind: input, shape index: {}, may-alias: {1,4}]   ;;  %s4703_s5 = inlined_call_operand.vmem [shape: f32[16,32,32], index: 5, kind: input, shape index: {}]   ;;  %s4704_s6 = inlined_call_operand.vmem [shape: f32[32,32], index: 6, kind: input, shape index: {}]   ;;  %s4705_s7 = inlined_call_operand.<no memory space> [shape: f32[1,1], index: 7, kind: input, shape index: {}]   ;;  %s4706_s8 = inlined_call_operand.vmem [shape: f32[16,32,8], index: 8, kind: output, shape index: {}]  }
   0x1   :  { %v13_v0 = vstv %s4705_s7 }
   0x2   :  { %14 = vst [vmem:[#allocation2] sm:$0x1] %v13_v0 }
   0x3 LB: > { %s3341_s30 = sadd.s32 4294967295, %s4133_s29   ;;  %p3345_p0 = scmp.ge.s32.totalorder %s4133_s29, 1  ;;  %s4133_s29 = sphi %s4184_s29, %s20_s29  }
   0x4   : > { %p314_p1 = scmp.lt.s32.totalorder %s4133_s29, 17 }
   0x6   : > { %p315_p2 = pnand %p3345_p0, %p314_p1 }
   0x7   : > { %p373_p3 = scmp.lt.s32.totalorder (!%p315_p2), %s3341_s30, 15 }
   0x8   : > { %318 = sbr.rel (%p315_p2) target bundleno = 5560 (0x15b8), region = 52 }
   0xd   : > { %v3364_v1 = vld [vmem:[#allocation2] ss:$0 sm:$0xff]  ;;  %v4135_v2 = vmov 0   ;;  %s4708_s30 = smov (!%p373_p3, %s3341_s30), 15  ;;  %vm448_vm0 = vcmask 64512   ;;  %vm571_vm1 = vcmask 261120  }
   0xe   : > { %4090 = vset.pattern.permute.xlu0 %v4135_v2  ;;  %s4192_s7 = sshll.u32 %s4708_s30, 5 }
   0xf   : > { %698 = vperm.xlu0 %4090, %v3364_v1   ;;  %s382_s11 = scalar_lea.vmem %s4699_s1, %s4192_s7  ;;  %s392_s14 = scalar_lea.vmem %s4701_s3, %s4192_s7 }
  0x10   : > { %v415_v3 = vld [vmem:[%s382_s11 + $0x10] sm:$0xff]  ;;  %v416_v4 = vld [vmem:[%s382_s11 + $0x18] sm:$0xff]  ;;  %v413_v5 = vld [vmem:[%s382_s11] sm:$0xff]  ;;  %s397_s17 = scalar_lea.vmem %s4702_s4, %s4192_s7  ;;  %s4218_s20 = scalar_lea.vmem %s4703_s5, %s4192_s7 }
  0x11   : > { %v441_v6 = vpack.c.bf16 %v416_v4, %v415_v3  ;;  %v414_v7 = vld [vmem:[%s382_s11 + $0x8] sm:$0xff]  ;;  %v421_v8 = vld [vmem:[%s392_s14] sm:$0xff]  ;;  %v427_v13 = vld [vmem:[%s397_s17 + $0x10] sm:$0xff]  ;;  %s377_s23 = scalar_lea.vmem %s4698_s0, %s4192_s7  ;;  %s387_s13 = scalar_lea.vmem %s4700_s2, %s4192_s7 }
  0x12   : > { %v422_v9 = vld [vmem:[%s392_s14 + $0x8] sm:$0xff]  ;;  %v440_v10 = vpack.c.bf16 %v414_v7, %v413_v5  ;;  %v428_v14 = vld [vmem:[%s397_s17 + $0x18] sm:$0xff]  ;;  %v423_v18 = vld [vmem:[%s392_s14 + $0x10] sm:$0xff]  ;;  %s407_s16 = scalar_lea.vmem %s4706_s8, %s4192_s7 }
  0x13   : > { %v444_v11 = vpack.c.bf16 %v422_v9, %v421_v8  ;;  %4078 = vmatprep.subr.msk.bf16.mxu1 %vm448_vm0, %v441_v6  ;;  %v520_v12 = vsel %vm448_vm0, %v441_v6, 0  ;;  %v447_v15 = vpack.c.bf16 %v428_v14, %v427_v13  ;;  %v424_v19 = vld [vmem:[%s392_s14 + $0x18] sm:$0xff]  ;;  %v425_v21 = vld [vmem:[%s397_s17] sm:$0xff]  ;;  %v426_v22 = vld [vmem:[%s397_s17 + $0x8] sm:$0xff] }
  0x14   : > { %3703 = vmatpush3.bf16.xpose.msra.mxu1 %v520_v12  ;;  %v517_v17 = vsel %vm448_vm0, %v440_v10, 0  ;;  %v445_v20 = vpack.c.bf16 %v424_v19, %v423_v18  ;;  %v446_v23 = vpack.c.bf16 %v426_v22, %v425_v21  ;;  %v4221_v24 = vld [vmem:[%s4218_s20] sm:$0xff]  ;;  %v4231_v26 = vld [vmem:[%s4218_s20 + $0x8] sm:$0xff]  ;;  %v411_v30 = vld [vmem:[%s377_s23 + $0x10] sm:$0xff] }
  0x15   : > { %3706 = vmatprep.mubr.msk.bf16.mxu1 %vm448_vm0, %v444_v11  ;;  %4079 = vmatprep.subr.msk.bf16.mxu1 %vm448_vm0, %v440_v10  ;;  %v459_v16 = vsel %vm448_vm0, %v447_v15, 0  ;;  %v409_v27 = vld [vmem:[%s377_s23] sm:$0xff]  ;;  %v410_v28 = vld [vmem:[%s377_s23 + $0x8] sm:$0xff]  ;;  %v412_v31 = vld [vmem:[%s377_s23 + $0x18] sm:$0xff] }
  0x16   : > { %4076 = vmatprep.subr.msk.bf16.mxu0 %vm448_vm0, %v447_v15  ;;  %v456_v25 = vsel %vm448_vm0, %v446_v23, 0  ;;  %v438_v29 = vpack.c.bf16 %v410_v28, %v409_v27  ;;  %v439_v32 = vpack.c.bf16 %v412_v31, %v411_v30  ;;  %v4236_v33 = vld [vmem:[%s4218_s20 + $0x10] sm:$0xff]  ;;  %v4241_v34 = vld [vmem:[%s4218_s20 + $0x18] sm:$0xff]  ;;  %v4298_v8 = vld [vmem:[%s4704_s6 + $0x8] sm:$0xff] }
  0x17   : > { %3695 = vmatpush3.bf16.xpose.msra.mxu0 %v459_v16  ;;  %v4283_v3 = vld [vmem:[%s4704_s6 + $0x18] sm:$0xff]  ;;  %v4290_v6 = vld [vmem:[%s4704_s6 + $0x10] sm:$0xff]  ;;  %v4310_v12 = vld [vmem:[%s4704_s6] sm:$0xff]  ;;  %v4317_v15 = vmul.f32 7.0, %v4298_v8 }
  0x18   : > { %4077 = vmatprep.subr.msk.bf16.mxu0 %vm448_vm0, %v446_v23  ;;  %3698 = vmatprep.mubr.msk.bf16.mxu0 %vm448_vm0, %v438_v29  ;;  %v4293_v7 = vmul.f32 7.0, %v4283_v3  ;;  %v4305_v11 = vmul.f32 7.0, %v4290_v6  ;;  %v4324_v19 = vmul.f32 7.0, %v4310_v12 }
  0x1c   : > { %3705 = vmatpush3.bf16.xpose.msra.mxu1 %v517_v17 }
  0x1f   : > { %3697 = vmatpush3.bf16.xpose.msra.mxu0 %v456_v25 }
  0x23   : > { %3707 = vmatmul.mubr.msk.bf16.vlgmr.msra.gmra.mxu1 %vm448_vm0, %v445_v20 }
  0x26   : > { %3699 = vmatmul.mubr.msk.bf16.vlgmr.msra.gmra.mxu0 %vm448_vm0, %v439_v32 }
  0x27   : > { %3718 = vmatprep.mubr.msk.f32.mxu0 %vm571_vm1, %v4221_v24 }
  0x2d   : > { %660 = vxpose.xlu0.b32.start [1/4] (short) (narrow) %v4221_v24, 32 }
  0x31   : > { %661 = vxpose.xlu0.b32.cont [2/4] (short) (narrow) %v4231_v26, 32 }
  0x35   : > { %662 = vxpose.xlu0.b32.cont [3/4] (short) (narrow) %v4236_v33, 32 }
  0x39   : > { %663 = vxpose.xlu0.b32.end [4/4] (short) (narrow) %v4241_v34, 32 }
  0x8a   : > { %v699_v35 = vpop.permute.xlu0 %698 }
  0xa9   : > { %v676_v36 = vpop.trf.xlu0 }
  0xaa   : > { %v4256_v43 = vmul.f32 %v699_v35, %v676_v36 }
  0xad   : > { %v677_v37 = vpop.trf.xlu0 }
  0xae   : > { %v4252_v42 = vmul.f32 %v699_v35, %v677_v37 }
  0xb1   : > { %v678_v38 = vpop.trf.xlu0 }
  0xb2   : > { %v4248_v41 = vmul.f32 %v699_v35, %v678_v38 }
  0xb5   : > { %v679_v39 = vpop.trf.xlu0 }
  0xb6   : > { %v4246_v40 = vmul.f32 %v699_v35, %v679_v39 }
  0xb8   : > { %3710 = vmatprep.subr.mxu0 %v4246_v40 }
  0xb9   : > { %3711 = vmatpush3.msra.mxu0 %v4246_v40 }
  0xba   : > { %3712 = vmatprep.subr.mxu0 %v4248_v41 }
  0xbb   : > { %3713 = vmatpush3.msra.mxu0 %v4248_v41 }
  0xbc   : > { %3714 = vmatprep.subr.mxu0 %v4252_v42 }
  0xbd   : > { %3715 = vmatpush3.msra.mxu0 %v4252_v42 }
  0xbe   : > { %3716 = vmatprep.subr.mxu0 %v4256_v43 }
  0xbf   : > { %3717 = vmatpush3.msra.mxu0 %v4256_v43 }
  0xc0   : > { %3719 = vmatmul.mubr.msk.f32.vlgmr.msra.gmra.mxu0 %vm571_vm1, %v4231_v26 }
  0xc1   : > { %3721 = vmatprep.mubr.msk.f32.mxu0 %vm571_vm1, %v4236_v33 }
  0xc4   : > { %3722 = vmatmul.mubr.msk.f32.gmra.mxu0 %vm571_vm1, %v4241_v34 }
  0xe3   : > { %v3708_v44 = vpop.f32.mrf.mxu1 }
  0xe4   : > { %v622_v45 = vsel %vm571_vm1, %v3708_v44, -inf }
  0xe5   : > { %623 = vmax.xlane.f32.xlu1 %v622_v45  ;;  %v556_v46 = vpop.f32.mrf.mxu1 }
  0xe6   : > { %v616_v47 = vsel %vm571_vm1, %v556_v46, -inf  ;;  %v4272_v54 = vpop.f32.mrf.mxu0 }
  0xe7   : > { %v3709_v48 = vpop.f32.mrf.mxu1  ;;  %v578_v32 = vsel %vm571_vm1, %v4272_v54, -inf }
  0xe8   : > { %v625_v51 = vsel %vm571_vm1, %v3709_v48, -inf  ;;  %v4274_v57 = vpop.f32.mrf.mxu0 }
  0xe9   : > { %617 = vmax.xlane.f32.xlu1 %v616_v47  ;;  %v559_v49 = vpop.f32.mrf.mxu1  ;;  %v572_v30 = vsel %vm571_vm1, %v4274_v57, -inf }
  0xea   : > { %v619_v50 = vsel %vm571_vm1, %v559_v49, -inf  ;;  %v4276_v61 = vpop.f32.mrf.mxu0 }
  0xeb   : > { %v581_v35 = vsel %vm571_vm1, %v4276_v61, -inf }
  0xec   : > { %v4278_v1 = vpop.f32.mrf.mxu0 }
  0xed   : > { %620 = vmax.xlane.f32.xlu1 %v619_v50  ;;  %v575_v31 = vsel %vm571_vm1, %v4278_v1, -inf }
  0xf1   : > { %626 = vmax.xlane.f32.xlu1 %v625_v51 }
 0x16e   : > { %v624_v52 = vpop.xlane.xlu1 %623 }
 0x16f   : > { %v630_v53 = vsub.f32 %v3708_v44, %v624_v52 }
 0x171   : > { %v636_v55 = vmul.f32 1.442695, %v630_v53 }
 0x172   : > { %v618_v56 = vpop.xlane.xlu1 %617 }
 0x173   : > { %4091 = vpow2.f32 %v636_v55  ;;  %v628_v58 = vsub.f32 %v556_v46, %v618_v56 }
 0x175   : > { %v632_v59 = vmul.f32 1.442695, %v628_v58 }
 0x176   : > { %v621_v60 = vpop.xlane.xlu1 %620 }
 0x177   : > { %4093 = vpow2.f32 %v632_v59  ;;  %v629_v62 = vsub.f32 %v559_v49, %v621_v60 }
 0x179   : > { %v634_v63 = vmul.f32 1.442695, %v629_v62 }
 0x17a   : > { %v627_v0 = vpop.xlane.xlu1 %626 }
 0x17b   : > { %4095 = vpow2.f32 %v634_v63  ;;  %v631_v2 = vsub.f32 %v3709_v48, %v627_v0 }
 0x17d   : > { %v638_v4 = vmul.f32 1.442695, %v631_v2 }
 0x17f   : > { %4097 = vpow2.f32 %v638_v4 }
 0x180   : > { %v4285_v5 = vpop.f32.mrf.mxu0  ;;  %v4300_v10 = vpop.eup %4091 }
 0x181   : > { %v646_v14 = vsel %vm571_vm1, %v4300_v10, 0.0  ;;  %v807_v22 = vsub.f32 %v4317_v15, %v4285_v5 }
 0x182   : > { %v783_v9 = vpop.f32.mrf.mxu0  ;;  %647 = vadd.xlane.f32.xlu1 %v646_v14 }
 0x183   : > { %3732 = vmatprep.mubr.msk.f32.mxu1 %vm571_vm1, %v783_v9  ;;  %3746 = vmatprep.mubr.msk.f32.mxu0 %vm571_vm1, %v783_v9  ;;  %v806_v25 = vsub.f32 %v4324_v19, %v783_v9 }
 0x184   : > { %v4312_v13 = vpop.f32.mrf.mxu0  ;;  %v4094_v18 = vpop.eup %4093 }
 0x185   : > { %v809_v16 = vsub.f32 %v4293_v7, %v4312_v13  ;;  %v640_v21 = vsel %vm571_vm1, %v4094_v18, 0.0 }
 0x186   : > { %v4321_v17 = vpop.f32.mrf.mxu0  ;;  %641 = vadd.xlane.f32.xlu1 %v640_v21  ;;  %v4384_v21 = vmul.f32 15.0, %v4283_v3 }
 0x187   : > { %v808_v20 = vsub.f32 %v4305_v11, %v4321_v17  ;;  %3724 = vmatprep.subr.mxu1 %v809_v16 }
 0x188   : > { %3725 = vmatpush3.msra.mxu1 %v809_v16  ;;  %v4096_v23 = vpop.eup %4095 }
 0x189   : > { %3726 = vmatprep.subr.mxu1 %v808_v20  ;;  %v643_v27 = vsel %vm571_vm1, %v4096_v23, 0.0 }
 0x18a   : > { %3727 = vmatpush3.msra.mxu1 %v808_v20  ;;  %644 = vadd.xlane.f32.xlu1 %v643_v27  ;;  %v4390_v27 = vmul.f32 15.0, %v4298_v8 }
 0x18b   : > { %3728 = vmatprep.subr.mxu1 %v807_v22 }
 0x18c   : > { %3729 = vmatpush3.msra.mxu1 %v807_v22  ;;  %v4098_v28 = vpop.eup %4097 }
 0x18d   : > { %3730 = vmatprep.subr.mxu1 %v806_v25  ;;  %v649_v29 = vsel %vm571_vm1, %v4098_v28, 0.0 }
 0x18e   : > { %3731 = vmatpush3.msra.mxu1 %v806_v25  ;;  %650 = vadd.xlane.f32.xlu1 %v649_v29 }
 0x18f   : > { %3733 = vmatmul.mubr.msk.f32.vlgmr.msra.gmra.mxu1 %vm571_vm1, %v4285_v5 }
 0x190   : > { %3735 = vmatprep.mubr.msk.f32.mxu1 %vm571_vm1, %v4321_v17 }
 0x192   : > { %573 = vmax.xlane.f32.xlu1 %v572_v30  ;;  %v4394_v30 = vmul.f32 15.0, %v4310_v12 }
 0x193   : > { %3736 = vmatmul.mubr.msk.f32.gmra.mxu1 %vm571_vm1, %v4312_v13 }
 0x194   : > { %3760 = vmatprep.mubr.msk.f32.mxu1 %vm571_vm1, %v4256_v43 }
 0x196   : > { %576 = vmax.xlane.f32.xlu1 %v575_v31 }
 0x19a   : > { %579 = vmax.xlane.f32.xlu1 %v578_v32 }
 0x19e   : > { %582 = vmax.xlane.f32.xlu1 %v581_v35 }
 0x20b   : > { %v648_v36 = vpop.xlane.xlu1 %647 }
 0x20f   : > { %v642_v37 = vpop.xlane.xlu1 %641 }
 0x210   : > { %4099 = vrcp.f32 %v642_v37  ;;  %v4408_v37 = vmul.f32 13.0, %v4283_v3 }
 0x211   : > { %4101 = vrcp.f32 %v648_v36 }
 0x213   : > { %v645_v38 = vpop.xlane.xlu1 %644 }
 0x214   : > { %4103 = vrcp.f32 %v645_v38 }
 0x217   : > { %v651_v39 = vpop.xlane.xlu1 %650 }
 0x218   : > { %4105 = vrcp.f32 %v651_v39  ;;  %v4411_v39 = vmul.f32 13.0, %v4290_v6 }
 0x21b   : > { %v574_v43 = vpop.xlane.xlu1 %573 }
 0x21c   : > { %v584_v44 = vsub.f32 %v4274_v57, %v574_v43 }
 0x21d   : > { %v4100_v45 = vpop.eup %4099 }
 0x21e   : > { %v588_v46 = vmul.f32 1.442695, %v584_v44  ;;  %v4102_v48 = vpop.eup %4101  ;;  %v4351_v49 = vmul.f32 %v4100_v45, %v4094_v18 }
 0x21f   : > { %v577_v47 = vpop.xlane.xlu1 %576  ;;  %v4357_v55 = vmul.f32 %v4102_v48, %v4300_v10 }
 0x220   : > { %4107 = vpow2.f32 %v588_v46  ;;  %v585_v51 = vsub.f32 %v4278_v1, %v577_v47 }
 0x221   : > { %v4104_v50 = vpop.eup %4103 }
 0x222   : > { %v4354_v52 = vmul.f32 %v4104_v50, %v4096_v23  ;;  %v590_v60 = vmul.f32 1.442695, %v585_v51  ;;  %v4387_v23 = vmul.f32 15.0, %v4290_v6 }
 0x223   : > { %v580_v53 = vpop.xlane.xlu1 %579 }
 0x224   : > { %v586_v56 = vsub.f32 %v4272_v54, %v580_v53  ;;  %v3009_v57 = vpack.c.bf16 %v4354_v52, %v4351_v49 }
 0x225   : > { %v4106_v58 = vpop.eup %4105 }
 0x226   : > { %v4362_v59 = vmul.f32 %v4106_v58, %v4098_v28  ;;  %v592_v62 = vmul.f32 1.442695, %v586_v56 }
 0x227   : > { %v583_v63 = vpop.xlane.xlu1 %582 }
 0x228   : > { %v3010_v0 = vpack.c.bf16 %v4362_v59, %v4357_v55  ;;  %4109 = vpow2.f32 %v592_v62  ;;  %v587_v1 = vsub.f32 %v4276_v61, %v583_v63 }
 0x229   : > { %4111 = vpow2.f32 %v590_v60 }
 0x22a   : > { %v594_v2 = vmul.f32 1.442695, %v587_v1 }
 0x22c   : > { %4113 = vpow2.f32 %v594_v2 }
 0x22d   : > { %v4367_v4 = vpop.eup %4107 }
 0x22e   : > { %v596_v54 = vsel %vm571_vm1, %v4367_v4, 0.0 }
 0x22f   : > { %597 = vadd.xlane.f32.xlu0 %v596_v54 }
 0x235   : > { %v4371_v9 = vpop.eup %4109 }
 0x236   : > { %v602_v10 = vsel %vm571_vm1, %v4371_v9, 0.0  ;;  %v4375_v14 = vpop.eup %4111 }
 0x237   : > { %603 = vadd.xlane.f32.xlu1 %v602_v10  ;;  %v599_v61 = vsel %vm571_vm1, %v4375_v14, 0.0 }
 0x239   : > { %v4379_v16 = vpop.eup %4113 }
 0x23a   : > { %v605_v18 = vsel %vm571_vm1, %v4379_v16, 0.0 }
 0x23b   : > { %600 = vadd.xlane.f32.xlu1 %v599_v61 }
 0x23f   : > { %606 = vadd.xlane.f32.xlu1 %v605_v18 }
 0x24f   : > { %v3734_v20 = vpop.f32.mrf.mxu1 }
 0x250   : > { %v912_v32 = vsub.f32 %v4390_v27, %v3734_v20 }
 0x251   : > { %v892_v22 = vpop.f32.mrf.mxu1 }
 0x252   : > { %v911_v35 = vsub.f32 %v4394_v30, %v892_v22 }
 0x253   : > { %v3737_v25 = vpop.f32.mrf.mxu1 }
 0x254   : > { %v914_v28 = vsub.f32 %v4384_v21, %v3737_v25 }
 0x255   : > { %v902_v29 = vpop.f32.mrf.mxu1 }
 0x256   : > { %v913_v31 = vsub.f32 %v4387_v23, %v902_v29  ;;  %3738 = vmatprep.subr.mxu0 %v914_v28 }
 0x257   : > { %3739 = vmatpush3.msra.mxu0 %v914_v28 }
 0x258   : > { %3740 = vmatprep.subr.mxu0 %v913_v31 }
 0x259   : > { %3741 = vmatpush3.msra.mxu0 %v913_v31 }
 0x25a   : > { %3742 = vmatprep.subr.mxu0 %v912_v32 }
 0x25b   : > { %3743 = vmatpush3.msra.mxu0 %v912_v32 }
 0x25c   : > { %3744 = vmatprep.subr.mxu0 %v911_v35 }
 0x25d   : > { %3745 = vmatpush3.msra.mxu0 %v911_v35 }
 0x25e   : > { %3747 = vmatmul.mubr.msk.f32.vlgmr.msra.gmra.mxu0 %vm571_vm1, %v4285_v5  ;;  %v4414_v5 = vmul.f32 13.0, %v4298_v8 }
 0x25f   : > { %3749 = vmatprep.mubr.msk.f32.mxu0 %vm571_vm1, %v4321_v17 }
 0x262   : > { %3750 = vmatmul.mubr.msk.f32.gmra.mxu0 %vm571_vm1, %v4312_v13  ;;  %v4418_v13 = vmul.f32 13.0, %v4310_v12 }
 0x263   : > { %3774 = vmatprep.mubr.msk.f32.mxu0 %vm571_vm1, %v4221_v24 }
 0x31e   : > { %v3748_v36 = vpop.f32.mrf.mxu0 }
 0x31f   : > { %v1005_v3 = vsub.f32 %v4414_v5, %v3748_v36 }
 0x320   : > { %v985_v38 = vpop.f32.mrf.mxu0 }
 0x321   : > { %v1004_v6 = vsub.f32 %v4418_v13, %v985_v38 }
 0x322   : > { %v3751_v43 = vpop.f32.mrf.mxu0 }
 0x323   : > { %v1007_v17 = vsub.f32 %v4408_v37, %v3751_v43 }
 0x324   : > { %v995_v44 = vpop.f32.mrf.mxu0 }
 0x325   : > { %v1006_v45 = vsub.f32 %v4411_v39, %v995_v44  ;;  %3752 = vmatprep.subr.mxu1 %v1007_v17 }
 0x326   : > { %3753 = vmatpush3.msra.mxu1 %v1007_v17 }
 0x327   : > { %3754 = vmatprep.subr.mxu1 %v1006_v45 }
 0x328   : > { %3755 = vmatpush3.msra.mxu1 %v1006_v45 }
 0x329   : > { %3756 = vmatprep.subr.mxu1 %v1005_v3 }
 0x32a   : > { %3757 = vmatpush3.msra.mxu1 %v1005_v3 }
 0x32b   : > { %3758 = vmatprep.subr.mxu1 %v1004_v6 }
 0x32c   : > { %3759 = vmatpush3.msra.mxu1 %v1004_v6 }
 0x32d   : > { %3761 = vmatmul.mubr.msk.f32.vlgmr.msra.gmra.mxu1 %vm571_vm1, %v4252_v42 }
 0x32e   : > { %3763 = vmatprep.mubr.msk.f32.mxu1 %vm571_vm1, %v4248_v41 }
 0x331   : > { %3764 = vmatmul.mubr.msk.f32.gmra.mxu1 %vm571_vm1, %v4246_v40 }
 0x3ed   : > { %v3762_v8 = vpop.f32.mrf.mxu1 }
 0x3ee   : > { %v4435_v51 = vmul.f32 0.25, %v3762_v8 }
 0x3ef   : > { %v1086_v12 = vpop.f32.mrf.mxu1 }
 0x3f0   : > { %v1105_v41 = vmul.f32 0.25, %v1086_v12 }
 0x3f1   : > { %v3765_v46 = vpop.f32.mrf.mxu1 }
 0x3f2   : > { %v4429_v47 = vmul.f32 0.25, %v3765_v46 }
 0x3f3   : > { %v1096_v48 = vpop.f32.mrf.mxu1 }
 0x3f4   : > { %v4431_v50 = vmul.f32 0.25, %v1096_v48  ;;  %3766 = vmatprep.subr.mxu0 %v4429_v47 }
 0x3f5   : > { %3767 = vmatpush3.msra.mxu0 %v4429_v47 }
 0x3f6   : > { %3768 = vmatprep.subr.mxu0 %v4431_v50 }
 0x3f7   : > { %3769 = vmatpush3.msra.mxu0 %v4431_v50 }
 0x3f8   : > { %3770 = vmatprep.subr.mxu0 %v4435_v51 }
 0x3f9   : > { %3771 = vmatpush3.msra.mxu0 %v4435_v51 }
 0x3fa   : > { %3772 = vmatprep.subr.mxu0 %v1105_v41 }
 0x3fb   : > { %3773 = vmatpush3.msra.mxu0 %v1105_v41 }
 0x3fc   : > { %3775 = vmatmul.mubr.msk.f32.vlgmr.msra.gmra.mxu0 %vm571_vm1, %v4231_v26 }
 0x3fd   : > { %3777 = vmatprep.mubr.msk.f32.mxu0 %vm571_vm1, %v4236_v33 }
 0x400   : > { %3778 = vmatmul.mubr.msk.f32.gmra.mxu0 %vm571_vm1, %v4241_v34 }
 0x4bc   : > { %v3776_v40 = vpop.f32.mrf.mxu0 }
 0x4bd   : > { %v1195_v62 = vsub.f32 %v4317_v15, %v3776_v40 }
 0x4be   : > { %v1175_v42 = vpop.f32.mrf.mxu0 }
 0x4bf   : > { %3788 = vmatprep.mubr.msk.f32.mxu1 %vm571_vm1, %v1175_v42  ;;  %3802 = vmatprep.mubr.msk.f32.mxu0 %vm571_vm1, %v1175_v42  ;;  %v1194_v63 = vsub.f32 %v4324_v19, %v1175_v42 }
 0x4c0   : > { %v3779_v53 = vpop.f32.mrf.mxu0 }
 0x4c1   : > { %v1197_v56 = vsub.f32 %v4293_v7, %v3779_v53 }
 0x4c2   : > { %v1185_v58 = vpop.f32.mrf.mxu0 }
 0x4c3   : > { %v1196_v60 = vsub.f32 %v4305_v11, %v1185_v58  ;;  %3780 = vmatprep.subr.mxu1 %v1197_v56 }
 0x4c4   : > { %3781 = vmatpush3.msra.mxu1 %v1197_v56 }
 0x4c5   : > { %3782 = vmatprep.subr.mxu1 %v1196_v60 }
 0x4c6   : > { %3783 = vmatpush3.msra.mxu1 %v1196_v60 }
 0x4c7   : > { %3784 = vmatprep.subr.mxu1 %v1195_v62 }
 0x4c8   : > { %3785 = vmatpush3.msra.mxu1 %v1195_v62 }
 0x4c9   : > { %3786 = vmatprep.subr.mxu1 %v1194_v63 }
 0x4ca   : > { %3787 = vmatpush3.msra.mxu1 %v1194_v63 }
 0x4cb   : > { %3789 = vmatmul.mubr.msk.f32.vlgmr.msra.gmra.mxu1 %vm571_vm1, %v3776_v40 }
 0x4cc   : > { %3791 = vmatprep.mubr.msk.f32.mxu1 %vm571_vm1, %v1185_v58 }
 0x4cf   : > { %3792 = vmatmul.mubr.msk.f32.gmra.mxu1 %vm571_vm1, %v3779_v53 }
 0x4d0   : > { %3816 = vmatprep.mubr.msk.f32.mxu1 %vm571_vm1, %v1105_v41 }
 0x58b   : > { %v3790_v1 = vpop.f32.mrf.mxu1 }
 0x58c   : > { %v1296_v20 = vsub.f32 %v4390_v27, %v3790_v1 }
 0x58d   : > { %v1276_v2 = vpop.f32.mrf.mxu1 }
 0x58e   : > { %v1295_v22 = vsub.f32 %v4394_v30, %v1276_v2 }
 0x58f   : > { %v3793_v54 = vpop.f32.mrf.mxu1 }
 0x590   : > { %v1298_v10 = vsub.f32 %v4384_v21, %v3793_v54 }
 0x591   : > { %v1286_v61 = vpop.f32.mrf.mxu1 }
 0x592   : > { %v1297_v18 = vsub.f32 %v4387_v23, %v1286_v61  ;;  %3794 = vmatprep.subr.mxu0 %v1298_v10 }
 0x593   : > { %3795 = vmatpush3.msra.mxu0 %v1298_v10 }
 0x594   : > { %3796 = vmatprep.subr.mxu0 %v1297_v18 }
 0x595   : > { %3797 = vmatpush3.msra.mxu0 %v1297_v18 }
 0x596   : > { %3798 = vmatprep.subr.mxu0 %v1296_v20 }
 0x597   : > { %3799 = vmatpush3.msra.mxu0 %v1296_v20 }
 0x598   : > { %3800 = vmatprep.subr.mxu0 %v1295_v22 }
 0x599   : > { %3801 = vmatpush3.msra.mxu0 %v1295_v22 }
 0x59a   : > { %3803 = vmatmul.mubr.msk.f32.vlgmr.msra.gmra.mxu0 %vm571_vm1, %v3776_v40 }
 0x59b   : > { %3805 = vmatprep.mubr.msk.f32.mxu0 %vm571_vm1, %v1185_v58 }
 0x59e   : > { %3806 = vmatmul.mubr.msk.f32.gmra.mxu0 %vm571_vm1, %v3779_v53 }
 0x59f   : > { %3830 = vmatprep.mubr.msk.f32.mxu0 %vm571_vm1, %v4221_v24 }
 0x65a   : > { %v3804_v25 = vpop.f32.mrf.mxu0 }
 0x65b   : > { %v1385_v36 = vsub.f32 %v4414_v5, %v3804_v25 }
 0x65c   : > { %v1365_v28 = vpop.f32.mrf.mxu0 }
 0x65d   : > { %v1384_v38 = vsub.f32 %v4418_v13, %v1365_v28 }
 0x65e   : > { %v3807_v29 = vpop.f32.mrf.mxu0 }
 0x65f   : > { %v1387_v31 = vsub.f32 %v4408_v37, %v3807_v29 }
 0x660   : > { %v1375_v32 = vpop.f32.mrf.mxu0 }
 0x661   : > { %v1386_v35 = vsub.f32 %v4411_v39, %v1375_v32  ;;  %3808 = vmatprep.subr.mxu1 %v1387_v31 }
 0x662   : > { %3809 = vmatpush3.msra.mxu1 %v1387_v31 }
 0x663   : > { %3810 = vmatprep.subr.mxu1 %v1386_v35 }
 0x664   : > { %3811 = vmatpush3.msra.mxu1 %v1386_v35 }
 0x665   : > { %3812 = vmatprep.subr.mxu1 %v1385_v36 }
 0x666   : > { %3813 = vmatpush3.msra.mxu1 %v1385_v36 }
 0x667   : > { %3814 = vmatprep.subr.mxu1 %v1384_v38 }
 0x668   : > { %3815 = vmatpush3.msra.mxu1 %v1384_v38 }
 0x669   : > { %3817 = vmatmul.mubr.msk.f32.vlgmr.msra.gmra.mxu1 %vm571_vm1, %v4435_v51 }
 0x66a   : > { %3819 = vmatprep.mubr.msk.f32.mxu1 %vm571_vm1, %v4431_v50 }
 0x66d   : > { %3820 = vmatmul.mubr.msk.f32.gmra.mxu1 %vm571_vm1, %v4429_v47 }
 0x729   : > { %v3818_v43 = vpop.f32.mrf.mxu1 }
 0x72a   : > { %v4482_v8 = vmul.f32 0.25, %v3818_v43 }
 0x72b   : > { %v1466_v17 = vpop.f32.mrf.mxu1 }
 0x72c   : > { %v1485_v12 = vmul.f32 0.25, %v1466_v17 }
 0x72d   : > { %v3821_v44 = vpop.f32.mrf.mxu1 }
 0x72e   : > { %v4476_v45 = vmul.f32 0.25, %v3821_v44 }
 0x72f   : > { %v1476_v3 = vpop.f32.mrf.mxu1 }
 0x730   : > { %v4478_v6 = vmul.f32 0.25, %v1476_v3  ;;  %3822 = vmatprep.subr.mxu0 %v4476_v45 }
 0x731   : > { %3823 = vmatpush3.msra.mxu0 %v4476_v45 }
 0x732   : > { %3824 = vmatprep.subr.mxu0 %v4478_v6 }
 0x733   : > { %3825 = vmatpush3.msra.mxu0 %v4478_v6 }
 0x734   : > { %3826 = vmatprep.subr.mxu0 %v4482_v8 }
 0x735   : > { %3827 = vmatpush3.msra.mxu0 %v4482_v8 }
 0x736   : > { %3828 = vmatprep.subr.mxu0 %v1485_v12 }
 0x737   : > { %3829 = vmatpush3.msra.mxu0 %v1485_v12 }
 0x738   : > { %3831 = vmatmul.mubr.msk.f32.vlgmr.msra.gmra.mxu0 %vm571_vm1, %v4231_v26 }
 0x739   : > { %3833 = vmatprep.mubr.msk.f32.mxu0 %vm571_vm1, %v4236_v33 }
 0x73c   : > { %3834 = vmatmul.mubr.msk.f32.gmra.mxu0 %vm571_vm1, %v4241_v34 }
 0x7f8   : > { %v3832_v46 = vpop.f32.mrf.mxu0 }
 0x7f9   : > { %v1575_v40 = vsub.f32 %v4317_v15, %v3832_v46 }
 0x7fa   : > { %v1555_v47 = vpop.f32.mrf.mxu0 }
 0x7fb   : > { %3844 = vmatprep.mubr.msk.f32.mxu1 %vm571_vm1, %v1555_v47  ;;  %3858 = vmatprep.mubr.msk.f32.mxu0 %vm571_vm1, %v1555_v47  ;;  %v1574_v42 = vsub.f32 %v4324_v19, %v1555_v47 }
 0x7fc   : > { %v3835_v48 = vpop.f32.mrf.mxu0 }
 0x7fd   : > { %v1577_v50 = vsub.f32 %v4293_v7, %v3835_v48 }
 0x7fe   : > { %v1565_v51 = vpop.f32.mrf.mxu0 }
 0x7ff   : > { %v1576_v41 = vsub.f32 %v4305_v11, %v1565_v51  ;;  %3836 = vmatprep.subr.mxu1 %v1577_v50 }
 0x800   : > { %3837 = vmatpush3.msra.mxu1 %v1577_v50 }
 0x801   : > { %3838 = vmatprep.subr.mxu1 %v1576_v41 }
 0x802   : > { %3839 = vmatpush3.msra.mxu1 %v1576_v41 }
 0x803   : > { %3840 = vmatprep.subr.mxu1 %v1575_v40 }
 0x804   : > { %3841 = vmatpush3.msra.mxu1 %v1575_v40 }
 0x805   : > { %3842 = vmatprep.subr.mxu1 %v1574_v42 }
 0x806   : > { %3843 = vmatpush3.msra.mxu1 %v1574_v42 }
 0x807   : > { %3845 = vmatmul.mubr.msk.f32.vlgmr.msra.gmra.mxu1 %vm571_vm1, %v3832_v46 }
 0x808   : > { %3847 = vmatprep.mubr.msk.f32.mxu1 %vm571_vm1, %v1565_v51 }
 0x80b   : > { %3848 = vmatmul.mubr.msk.f32.gmra.mxu1 %vm571_vm1, %v3835_v48 }
 0x80c   : > { %3872 = vmatprep.mubr.msk.f32.mxu1 %vm571_vm1, %v1485_v12 }
 0x8c7   : > { %v3846_v53 = vpop.f32.mrf.mxu1 }
 0x8c8   : > { %v1676_v1 = vsub.f32 %v4390_v27, %v3846_v53 }
 0x8c9   : > { %v1656_v56 = vpop.f32.mrf.mxu1 }
 0x8ca   : > { %v1675_v2 = vsub.f32 %v4394_v30, %v1656_v56 }
 0x8cb   : > { %v3849_v58 = vpop.f32.mrf.mxu1 }
 0x8cc   : > { %v1678_v60 = vsub.f32 %v4384_v21, %v3849_v58 }
 0x8cd   : > { %v1666_v62 = vpop.f32.mrf.mxu1 }
 0x8ce   : > { %v1677_v63 = vsub.f32 %v4387_v23, %v1666_v62  ;;  %3850 = vmatprep.subr.mxu0 %v1678_v60 }
 0x8cf   : > { %3851 = vmatpush3.msra.mxu0 %v1678_v60 }
 0x8d0   : > { %3852 = vmatprep.subr.mxu0 %v1677_v63 }
 0x8d1   : > { %3853 = vmatpush3.msra.mxu0 %v1677_v63 }
 0x8d2   : > { %3854 = vmatprep.subr.mxu0 %v1676_v1 }
 0x8d3   : > { %3855 = vmatpush3.msra.mxu0 %v1676_v1 }
 0x8d4   : > { %3856 = vmatprep.subr.mxu0 %v1675_v2 }
 0x8d5   : > { %3857 = vmatpush3.msra.mxu0 %v1675_v2 }
 0x8d6   : > { %3859 = vmatmul.mubr.msk.f32.vlgmr.msra.gmra.mxu0 %vm571_vm1, %v3832_v46 }
 0x8d7   : > { %3861 = vmatprep.mubr.msk.f32.mxu0 %vm571_vm1, %v1565_v51 }
 0x8da   : > { %3862 = vmatmul.mubr.msk.f32.gmra.mxu0 %vm571_vm1, %v3835_v48 }
 0x8db   : > { %3886 = vmatprep.mubr.msk.f32.mxu0 %vm571_vm1, %v4221_v24 }
 0x996   : > { %v3860_v54 = vpop.f32.mrf.mxu0 }
 0x997   : > { %v1765_v25 = vsub.f32 %v4414_v5, %v3860_v54 }
 0x998   : > { %v1745_v10 = vpop.f32.mrf.mxu0 }
 0x999   : > { %v1764_v28 = vsub.f32 %v4418_v13, %v1745_v10 }
 0x99a   : > { %v3863_v61 = vpop.f32.mrf.mxu0 }
 0x99b   : > { %v1767_v18 = vsub.f32 %v4408_v37, %v3863_v61 }
 0x99c   : > { %v1755_v20 = vpop.f32.mrf.mxu0 }
 0x99d   : > { %v1766_v22 = vsub.f32 %v4411_v39, %v1755_v20  ;;  %3864 = vmatprep.subr.mxu1 %v1767_v18 }
 0x99e   : > { %3865 = vmatpush3.msra.mxu1 %v1767_v18 }
 0x99f   : > { %3866 = vmatprep.subr.mxu1 %v1766_v22 }
 0x9a0   : > { %3867 = vmatpush3.msra.mxu1 %v1766_v22 }
 0x9a1   : > { %3868 = vmatprep.subr.mxu1 %v1765_v25 }
 0x9a2   : > { %3869 = vmatpush3.msra.mxu1 %v1765_v25 }
 0x9a3   : > { %3870 = vmatprep.subr.mxu1 %v1764_v28 }
 0x9a4   : > { %3871 = vmatpush3.msra.mxu1 %v1764_v28 }
 0x9a5   : > { %3873 = vmatmul.mubr.msk.f32.vlgmr.msra.gmra.mxu1 %vm571_vm1, %v4482_v8 }
 0x9a6   : > { %3875 = vmatprep.mubr.msk.f32.mxu1 %vm571_vm1, %v4478_v6 }
 0x9a9   : > { %3876 = vmatmul.mubr.msk.f32.gmra.mxu1 %vm571_vm1, %v4476_v45 }
 0xa65   : > { %v3874_v29 = vpop.f32.mrf.mxu1 }
 0xa66   : > { %v4529_v43 = vmul.f32 0.25, %v3874_v29 }
 0xa67   : > { %v1846_v31 = vpop.f32.mrf.mxu1 }
 0xa68   : > { %v1865_v17 = vmul.f32 0.25, %v1846_v31 }
 0xa69   : > { %v3877_v32 = vpop.f32.mrf.mxu1 }
 0xa6a   : > { %v4523_v35 = vmul.f32 0.25, %v3877_v32 }
 0xa6b   : > { %v1856_v36 = vpop.f32.mrf.mxu1 }
 0xa6c   : > { %v4525_v38 = vmul.f32 0.25, %v1856_v36  ;;  %3878 = vmatprep.subr.mxu0 %v4523_v35 }
 0xa6d   : > { %3879 = vmatpush3.msra.mxu0 %v4523_v35 }
 0xa6e   : > { %3880 = vmatprep.subr.mxu0 %v4525_v38 }
 0xa6f   : > { %3881 = vmatpush3.msra.mxu0 %v4525_v38 }
 0xa70   : > { %3882 = vmatprep.subr.mxu0 %v4529_v43 }
 0xa71   : > { %3883 = vmatpush3.msra.mxu0 %v4529_v43 }
 0xa72   : > { %3884 = vmatprep.subr.mxu0 %v1865_v17 }
 0xa73   : > { %3885 = vmatpush3.msra.mxu0 %v1865_v17 }
 0xa74   : > { %3887 = vmatmul.mubr.msk.f32.vlgmr.msra.gmra.mxu0 %vm571_vm1, %v4231_v26 }
 0xa75   : > { %3889 = vmatprep.mubr.msk.f32.mxu0 %vm571_vm1, %v4236_v33 }
 0xa78   : > { %3890 = vmatmul.mubr.msk.f32.gmra.mxu0 %vm571_vm1, %v4241_v34 }
 0xb34   : > { %v3888_v44 = vpop.f32.mrf.mxu0 }
 0xb35   : > { %v1955_v46 = vsub.f32 %v4317_v15, %v3888_v44 }
 0xb36   : > { %v1935_v45 = vpop.f32.mrf.mxu0 }
 0xb37   : > { %3900 = vmatprep.mubr.msk.f32.mxu1 %vm571_vm1, %v1935_v45  ;;  %3914 = vmatprep.mubr.msk.f32.mxu0 %vm571_vm1, %v1935_v45  ;;  %v1954_v47 = vsub.f32 %v4324_v19, %v1935_v45 }
 0xb38   : > { %v3891_v3 = vpop.f32.mrf.mxu0 }
 0xb39   : > { %v1957_v6 = vsub.f32 %v4293_v7, %v3891_v3 }
 0xb3a   : > { %v1945_v8 = vpop.f32.mrf.mxu0 }
 0xb3b   : > { %v1956_v12 = vsub.f32 %v4305_v11, %v1945_v8  ;;  %3892 = vmatprep.subr.mxu1 %v1957_v6 }
 0xb3c   : > { %3893 = vmatpush3.msra.mxu1 %v1957_v6 }
 0xb3d   : > { %3894 = vmatprep.subr.mxu1 %v1956_v12 }
 0xb3e   : > { %3895 = vmatpush3.msra.mxu1 %v1956_v12 }
 0xb3f   : > { %3896 = vmatprep.subr.mxu1 %v1955_v46 }
 0xb40   : > { %3897 = vmatpush3.msra.mxu1 %v1955_v46  ;;  %v4123_v46 = vld [vmem:[%s4218_s20] sm:$0xff] }
 0xb41   : > { %3898 = vmatprep.subr.mxu1 %v1954_v47 }
 0xb42   : > { %3899 = vmatpush3.msra.mxu1 %v1954_v47 }
 0xb43   : > { %3901 = vmatmul.mubr.msk.f32.vlgmr.msra.gmra.mxu1 %vm571_vm1, %v3888_v44 }
 0xb44   : > { %3903 = vmatprep.mubr.msk.f32.mxu1 %vm571_vm1, %v1945_v8 }
 0xb47   : > { %3904 = vmatmul.mubr.msk.f32.gmra.mxu1 %vm571_vm1, %v3891_v3 }
 0xb48   : > { %3928 = vmatprep.mubr.msk.f32.mxu1 %vm571_vm1, %v1865_v17 }
 0xc03   : > { %v3902_v48 = vpop.f32.mrf.mxu1 }
 0xc04   : > { %v2056_v53 = vsub.f32 %v4390_v27, %v3902_v48 }
 0xc05   : > { %v2036_v50 = vpop.f32.mrf.mxu1 }
 0xc06   : > { %v2055_v56 = vsub.f32 %v4394_v30, %v2036_v50 }
 0xc07   : > { %v3905_v51 = vpop.f32.mrf.mxu1 }
 0xc08   : > { %v2058_v41 = vsub.f32 %v4384_v21, %v3905_v51 }
 0xc09   : > { %v2046_v40 = vpop.f32.mrf.mxu1 }
 0xc0a   : > { %v2057_v42 = vsub.f32 %v4387_v23, %v2046_v40  ;;  %3906 = vmatprep.subr.mxu0 %v2058_v41 }
 0xc0b   : > { %3907 = vmatpush3.msra.mxu0 %v2058_v41 }
 0xc0c   : > { %3908 = vmatprep.subr.mxu0 %v2057_v42 }
 0xc0d   : > { %3909 = vmatpush3.msra.mxu0 %v2057_v42 }
 0xc0e   : > { %3910 = vmatprep.subr.mxu0 %v2056_v53 }
 0xc0f   : > { %3911 = vmatpush3.msra.mxu0 %v2056_v53 }
 0xc10   : > { %3912 = vmatprep.subr.mxu0 %v2055_v56 }
 0xc11   : > { %3913 = vmatpush3.msra.mxu0 %v2055_v56 }
 0xc12   : > { %3915 = vmatmul.mubr.msk.f32.vlgmr.msra.gmra.mxu0 %vm571_vm1, %v3888_v44 }
 0xc13   : > { %3917 = vmatprep.mubr.msk.f32.mxu0 %vm571_vm1, %v1945_v8 }
 0xc16   : > { %3918 = vmatmul.mubr.msk.f32.gmra.mxu0 %vm571_vm1, %v3891_v3 }
 0xc17   : > { %3942 = vmatprep.mubr.msk.f32.mxu0 %vm571_vm1, %v4221_v24 }
 0xcd2   : > { %v3916_v58 = vpop.f32.mrf.mxu0 }
 0xcd3   : > { %v2145_v54 = vsub.f32 %v4414_v5, %v3916_v58 }
 0xcd4   : > { %v2125_v60 = vpop.f32.mrf.mxu0 }
 0xcd5   : > { %v2144_v10 = vsub.f32 %v4418_v13, %v2125_v60 }
 0xcd6   : > { %v3919_v62 = vpop.f32.mrf.mxu0 }
 0xcd7   : > { %v2147_v63 = vsub.f32 %v4408_v37, %v3919_v62 }
 0xcd8   : > { %v2135_v1 = vpop.f32.mrf.mxu0 }
 0xcd9   : > { %v2146_v2 = vsub.f32 %v4411_v39, %v2135_v1  ;;  %3920 = vmatprep.subr.mxu1 %v2147_v63 }
 0xcda   : > { %3921 = vmatpush3.msra.mxu1 %v2147_v63 }
 0xcdb   : > { %3922 = vmatprep.subr.mxu1 %v2146_v2 }
 0xcdc   : > { %3923 = vmatpush3.msra.mxu1 %v2146_v2 }
 0xcdd   : > { %3924 = vmatprep.subr.mxu1 %v2145_v54 }
 0xcde   : > { %3925 = vmatpush3.msra.mxu1 %v2145_v54 }
 0xcdf   : > { %3926 = vmatprep.subr.mxu1 %v2144_v10 }
 0xce0   : > { %3927 = vmatpush3.msra.mxu1 %v2144_v10  ;;  %v4124_v10 = vld [vmem:[%s4218_s20 + $0x8] sm:$0xff] }
 0xce1   : > { %3929 = vmatmul.mubr.msk.f32.vlgmr.msra.gmra.mxu1 %vm571_vm1, %v4529_v43 }
 0xce2   : > { %3931 = vmatprep.mubr.msk.f32.mxu1 %vm571_vm1, %v4525_v38 }
 0xce5   : > { %3932 = vmatmul.mubr.msk.f32.gmra.mxu1 %vm571_vm1, %v4523_v35 }
 0xda1   : > { %v3930_v24 = vpop.f32.mrf.mxu1 }
 0xda2   : > { %v4576_v28 = vmul.f32 0.25, %v3930_v24  ;;  %v4125_v24 = vld [vmem:[%s4218_s20 + $0x10] sm:$0xff] }
 0xda3   : > { %v2226_v61 = vpop.f32.mrf.mxu1 }
 0xda4   : > { %v2245_v29 = vmul.f32 0.25, %v2226_v61  ;;  %v4126_v61 = vld [vmem:[%s4218_s20 + $0x18] sm:$0xff] }
 0xda5   : > { %v3933_v18 = vpop.f32.mrf.mxu1 }
 0xda6   : > { %v4570_v20 = vmul.f32 0.25, %v3933_v18 }
 0xda7   : > { %v2236_v22 = vpop.f32.mrf.mxu1 }
 0xda8   : > { %v4572_v25 = vmul.f32 0.25, %v2236_v22  ;;  %3934 = vmatprep.subr.mxu0 %v4570_v20 }
 0xda9   : > { %3935 = vmatpush3.msra.mxu0 %v4570_v20 }
 0xdaa   : > { %3936 = vmatprep.subr.mxu0 %v4572_v25 }
 0xdab   : > { %3937 = vmatpush3.msra.mxu0 %v4572_v25 }
 0xdac   : > { %3938 = vmatprep.subr.mxu0 %v4576_v28 }
 0xdad   : > { %3939 = vmatpush3.msra.mxu0 %v4576_v28 }
 0xdae   : > { %3940 = vmatprep.subr.mxu0 %v2245_v29 }
 0xdaf   : > { %3941 = vmatpush3.msra.mxu0 %v2245_v29 }
 0xdb0   : > { %3943 = vmatmul.mubr.msk.f32.vlgmr.msra.gmra.mxu0 %vm571_vm1, %v4231_v26 }
 0xdb1   : > { %3945 = vmatprep.mubr.msk.f32.mxu0 %vm571_vm1, %v4236_v33 }
 0xdb4   : > { %3946 = vmatmul.mubr.msk.f32.gmra.mxu0 %vm571_vm1, %v4241_v34 }
 0xe70   : > { %v3944_v31 = vpop.f32.mrf.mxu0 }
 0xe71   : > { %v2335_v26 = vsub.f32 %v4317_v15, %v3944_v31 }
 0xe72   : > { %v2315_v32 = vpop.f32.mrf.mxu0 }
 0xe73   : > { %3956 = vmatprep.mubr.msk.f32.mxu1 %vm571_vm1, %v2315_v32  ;;  %3970 = vmatprep.mubr.msk.f32.mxu0 %vm571_vm1, %v2315_v32  ;;  %v2334_v33 = vsub.f32 %v4324_v19, %v2315_v32 }
 0xe74   : > { %v3947_v35 = vpop.f32.mrf.mxu0 }
 0xe75   : > { %v2337_v36 = vsub.f32 %v4293_v7, %v3947_v35 }
 0xe76   : > { %v2325_v38 = vpop.f32.mrf.mxu0 }
 0xe77   : > { %v2336_v43 = vsub.f32 %v4305_v11, %v2325_v38  ;;  %3948 = vmatprep.subr.mxu1 %v2337_v36 }
 0xe78   : > { %3949 = vmatpush3.msra.mxu1 %v2337_v36 }
 0xe79   : > { %3950 = vmatprep.subr.mxu1 %v2336_v43 }
 0xe7a   : > { %3951 = vmatpush3.msra.mxu1 %v2336_v43 }
 0xe7b   : > { %3952 = vmatprep.subr.mxu1 %v2335_v26 }
 0xe7c   : > { %3953 = vmatpush3.msra.mxu1 %v2335_v26 }
 0xe7d   : > { %3954 = vmatprep.subr.mxu1 %v2334_v33 }
 0xe7e   : > { %3955 = vmatpush3.msra.mxu1 %v2334_v33  ;;  %v419_v33 = vld [vmem:[%s387_s13 + $0x10] sm:$0xff] }
 0xe7f   : > { %3957 = vmatmul.mubr.msk.f32.vlgmr.msra.gmra.mxu1 %vm571_vm1, %v3944_v31 }
 0xe80   : > { %3959 = vmatprep.mubr.msk.f32.mxu1 %vm571_vm1, %v2325_v38 }
 0xe83   : > { %3960 = vmatmul.mubr.msk.f32.gmra.mxu1 %vm571_vm1, %v3947_v35 }
 0xe84   : > { %3984 = vmatprep.mubr.msk.f32.mxu1 %vm571_vm1, %v2245_v29 }
 0xf3f   : > { %v3958_v34 = vpop.f32.mrf.mxu1 }
 0xf40   : > { %v2436_v8 = vsub.f32 %v4390_v27, %v3958_v34  ;;  %v420_v34 = vld [vmem:[%s387_s13 + $0x18] sm:$0xff] }
 0xf41   : > { %v2416_v17 = vpop.f32.mrf.mxu1 }
 0xf42   : > { %v2435_v12 = vsub.f32 %v4394_v30, %v2416_v17 }
 0xf43   : > { %v3961_v44 = vpop.f32.mrf.mxu1 }
 0xf44   : > { %v2438_v45 = vsub.f32 %v4384_v21, %v3961_v44  ;;  %v417_v44 = vld [vmem:[%s387_s13] sm:$0xff] }
 0xf45   : > { %v2426_v3 = vpop.f32.mrf.mxu1 }
 0xf46   : > { %v2437_v6 = vsub.f32 %v4387_v23, %v2426_v3  ;;  %3962 = vmatprep.subr.mxu0 %v2438_v45 }
 0xf47   : > { %3963 = vmatpush3.msra.mxu0 %v2438_v45  ;;  %v418_v45 = vld [vmem:[%s387_s13 + $0x8] sm:$0xff] }
 0xf48   : > { %3964 = vmatprep.subr.mxu0 %v2437_v6 }
 0xf49   : > { %3965 = vmatpush3.msra.mxu0 %v2437_v6  ;;  %v442_v6 = vpack.c.bf16 %v418_v45, %v417_v44 }
 0xf4a   : > { %3966 = vmatprep.subr.mxu0 %v2436_v8 }
 0xf4b   : > { %3967 = vmatpush3.msra.mxu0 %v2436_v8 }
 0xf4c   : > { %3968 = vmatprep.subr.mxu0 %v2435_v12 }
 0xf4d   : > { %3969 = vmatpush3.msra.mxu0 %v2435_v12 }
 0xf4e   : > { %3971 = vmatmul.mubr.msk.f32.vlgmr.msra.gmra.mxu0 %vm571_vm1, %v3944_v31 }
 0xf4f   : > { %3973 = vmatprep.mubr.msk.f32.mxu0 %vm571_vm1, %v2325_v38 }
 0xf52   : > { %3974 = vmatmul.mubr.msk.f32.gmra.mxu0 %vm571_vm1, %v3947_v35  ;;  %v598_v35 = vpop.xlane.xlu0 %597 }
 0xf53   : > { %3998 = vmatprep.mubr.msk.f32.mxu0 %vm571_vm1, %v4123_v46 }
0x100e   : > { %v3972_v47 = vpop.f32.mrf.mxu0 }
0x100f   : > { %v2525_v42 = vsub.f32 %v4414_v5, %v3972_v47 }
0x1010   : > { %v2505_v48 = vpop.f32.mrf.mxu0 }
0x1011   : > { %v2524_v53 = vsub.f32 %v4418_v13, %v2505_v48 }
0x1012   : > { %v3975_v50 = vpop.f32.mrf.mxu0 }
0x1013   : > { %v2527_v51 = vsub.f32 %v4408_v37, %v3975_v50 }
0x1014   : > { %v2515_v41 = vpop.f32.mrf.mxu0 }
0x1015   : > { %v2526_v40 = vsub.f32 %v4411_v39, %v2515_v41  ;;  %3976 = vmatprep.subr.mxu1 %v2527_v51 }
0x1016   : > { %3977 = vmatpush3.msra.mxu1 %v2527_v51 }
0x1017   : > { %3978 = vmatprep.subr.mxu1 %v2526_v40 }
0x1018   : > { %3979 = vmatpush3.msra.mxu1 %v2526_v40 }
0x1019   : > { %3980 = vmatprep.subr.mxu1 %v2525_v42 }
0x101a   : > { %3981 = vmatpush3.msra.mxu1 %v2525_v42 }
0x101b   : > { %3982 = vmatprep.subr.mxu1 %v2524_v53 }
0x101c   : > { %3983 = vmatpush3.msra.mxu1 %v2524_v53 }
0x101d   : > { %3985 = vmatmul.mubr.msk.f32.vlgmr.msra.gmra.mxu1 %vm571_vm1, %v4576_v28 }
0x101e   : > { %3987 = vmatprep.mubr.msk.f32.mxu1 %vm571_vm1, %v4572_v25 }
0x1021   : > { %3988 = vmatmul.mubr.msk.f32.gmra.mxu1 %vm571_vm1, %v4570_v20 }
0x10dd   : > { %v3986_v56 = vpop.f32.mrf.mxu1 }
0x10de   : > { %v4623_v2 = vmul.f32 0.25, %v3986_v56 }
0x10df   : > { %v2606_v58 = vpop.f32.mrf.mxu1 }
0x10e0   : > { %v2625_v54 = vmul.f32 0.25, %v2606_v58 }
0x10e1   : > { %v3989_v60 = vpop.f32.mrf.mxu1 }
0x10e2   : > { %v4617_v62 = vmul.f32 0.25, %v3989_v60 }
0x10e3   : > { %v2616_v63 = vpop.f32.mrf.mxu1 }
0x10e4   : > { %v4619_v1 = vmul.f32 0.25, %v2616_v63  ;;  %3990 = vmatprep.subr.mxu0 %v4617_v62 }
0x10e5   : > { %3991 = vmatpush3.msra.mxu0 %v4617_v62 }
0x10e6   : > { %3992 = vmatprep.subr.mxu0 %v4619_v1 }
0x10e7   : > { %3993 = vmatpush3.msra.mxu0 %v4619_v1 }
0x10e8   : > { %3994 = vmatprep.subr.mxu0 %v4623_v2 }
0x10e9   : > { %3995 = vmatpush3.msra.mxu0 %v4623_v2 }
0x10ea   : > { %3996 = vmatprep.subr.mxu0 %v2625_v54 }
0x10eb   : > { %3997 = vmatpush3.msra.mxu0 %v2625_v54 }
0x10ec   : > { %3999 = vmatmul.mubr.msk.f32.vlgmr.msra.gmra.mxu0 %vm571_vm1, %v4124_v10 }
0x10ed   : > { %4001 = vmatprep.mubr.msk.f32.mxu0 %vm571_vm1, %v4125_v24 }
0x10f0   : > { %4002 = vmatmul.mubr.msk.f32.gmra.mxu0 %vm571_vm1, %v4126_v61 }
0x11ac   : > { %v4000_v18 = vpop.f32.mrf.mxu0 }
0x11ad   : > { %v2715_v31 = vsub.f32 %v4317_v15, %v4000_v18 }
0x11ae   : > { %v2695_v20 = vpop.f32.mrf.mxu0 }
0x11af   : > { %4012 = vmatprep.mubr.msk.f32.mxu1 %vm571_vm1, %v2695_v20  ;;  %4026 = vmatprep.mubr.msk.f32.mxu0 %vm571_vm1, %v2695_v20  ;;  %v2714_v32 = vsub.f32 %v4324_v19, %v2695_v20 }
0x11b0   : > { %v4003_v22 = vpop.f32.mrf.mxu0 }
0x11b1   : > { %v2717_v25 = vsub.f32 %v4293_v7, %v4003_v22  ;;  %v4645_v7 = vpop.xlane.xlu1 %603 }
0x11b2   : > { %v2705_v28 = vpop.f32.mrf.mxu0 }
0x11b3   : > { %v2716_v29 = vsub.f32 %v4305_v11, %v2705_v28  ;;  %4004 = vmatprep.subr.mxu1 %v2717_v25 }
0x11b4   : > { %4005 = vmatpush3.msra.mxu1 %v2717_v25 }
0x11b5   : > { %4006 = vmatprep.subr.mxu1 %v2716_v29  ;;  %v601_v11 = vpop.xlane.xlu1 %600 }
0x11b6   : > { %4007 = vmatpush3.msra.mxu1 %v2716_v29  ;;  %4115 = vrcp.f32 %v601_v11 }
0x11b7   : > { %4008 = vmatprep.subr.mxu1 %v2715_v31  ;;  %4117 = vrcp.f32 %v598_v35 }
0x11b8   : > { %4009 = vmatpush3.msra.mxu1 %v2715_v31 }
0x11b9   : > { %4010 = vmatprep.subr.mxu1 %v2714_v32  ;;  %v607_v53 = vpop.xlane.xlu1 %606 }
0x11ba   : > { %4011 = vmatpush3.msra.mxu1 %v2714_v32  ;;  %4119 = vrcp.f32 %v607_v53 }
0x11bb   : > { %4013 = vmatmul.mubr.msk.f32.vlgmr.msra.gmra.mxu1 %vm571_vm1, %v4000_v18  ;;  %4121 = vrcp.f32 %v4645_v7 }
0x11bc   : > { %4015 = vmatprep.mubr.msk.f32.mxu1 %vm571_vm1, %v2705_v28 }
0x11bf   : > { %4016 = vmatmul.mubr.msk.f32.gmra.mxu1 %vm571_vm1, %v4003_v22 }
0x11c0   : > { %4040 = vmatprep.mubr.msk.f32.mxu1 %vm571_vm1, %v2625_v54 }
0x11c3   : > { %v4116_v8 = vpop.eup %4115 }
0x127b   : > { %v4014_v15 = vpop.f32.mrf.mxu1 }
0x127c   : > { %v2816_v17 = vsub.f32 %v4390_v27, %v4014_v15  ;;  %v613_v27 = vmul.f32 %v4116_v8, %v4375_v14 }
0x127d   : > { %v2796_v19 = vpop.f32.mrf.mxu1 }
0x127e   : > { %v2815_v3 = vsub.f32 %v4394_v30, %v2796_v19 }
0x127f   : > { %v4017_v36 = vpop.f32.mrf.mxu1 }
0x1280   : > { %v2818_v38 = vsub.f32 %v4384_v21, %v4017_v36  ;;  %v443_v21 = vpack.c.bf16 %v420_v34, %v419_v33 }
0x1281   : > { %v2806_v43 = vpop.f32.mrf.mxu1 }
0x1282   : > { %v2817_v26 = vsub.f32 %v4387_v23, %v2806_v43  ;;  %4018 = vmatprep.subr.mxu0 %v2818_v38  ;;  %v4118_v23 = vpop.eup %4117 }
0x1283   : > { %4019 = vmatpush3.msra.mxu0 %v2818_v38  ;;  %v612_v30 = vmul.f32 %v4118_v23, %v4367_v4 }
0x1284   : > { %4020 = vmatprep.subr.mxu0 %v2817_v26 }
0x1285   : > { %4021 = vmatpush3.msra.mxu0 %v2817_v26  ;;  %v3163_v12 = vpack.c.bf16 %v613_v27, %v612_v30 }
0x1286   : > { %4022 = vmatprep.subr.mxu0 %v2816_v17 }
0x1287   : > { %4023 = vmatpush3.msra.mxu0 %v2816_v17 }
0x1288   : > { %4024 = vmatprep.subr.mxu0 %v2815_v3 }
0x1289   : > { %4025 = vmatpush3.msra.mxu0 %v2815_v3 }
0x128a   : > { %4027 = vmatmul.mubr.msk.f32.vlgmr.msra.gmra.mxu0 %vm571_vm1, %v4000_v18  ;;  %4046 = vmatprep.subr.bf16.mxu0 %v443_v21 }
0x128b   : > { %4029 = vmatprep.mubr.msk.f32.mxu0 %vm571_vm1, %v2705_v28  ;;  %4047 = vmatpush3.bf16.msra.mxu0 %v443_v21 }
0x128c   : > { %4048 = vmatprep.subr.bf16.mxu0 %v442_v6 }
0x128e   : > { %4030 = vmatmul.mubr.msk.f32.gmra.mxu0 %vm571_vm1, %v4003_v22 }
0x128f   : > { %4049 = vmatpush3.bf16.msra.mxu0 %v442_v6  ;;  %4050 = vmatprep.mubr.msk.bf16.mxu0 %vm571_vm1, %v3009_v57 }
0x1292   : > { %4051 = vmatmul.mubr.msk.bf16.vlgmr.msra.gmra.mxu0 %vm571_vm1, %v3010_v0 }
0x1293   : > { %4072 = vmatprep.mubr.msk.bf16.mxu0 %vm571_vm1, %v3163_v12 }
0x134a   : > { %v4028_v46 = vpop.f32.mrf.mxu0 }
0x134b   : > { %v2905_v57 = vsub.f32 %v4414_v5, %v4028_v46 }
0x134c   : > { %v2885_v14 = vpop.f32.mrf.mxu0 }
0x134d   : > { %v2904_v59 = vsub.f32 %v4418_v13, %v2885_v14 }
0x134e   : > { %v4031_v47 = vpop.f32.mrf.mxu0 }
0x134f   : > { %v2907_v48 = vsub.f32 %v4408_v37, %v4031_v47 }
0x1350   : > { %v2895_v50 = vpop.f32.mrf.mxu0 }
0x1351   : > { %v2906_v49 = vsub.f32 %v4411_v39, %v2895_v50  ;;  %4032 = vmatprep.subr.mxu1 %v2907_v48 }
0x1352   : > { %4033 = vmatpush3.msra.mxu1 %v2907_v48  ;;  %v4052_v52 = vpop.f32.mrf.mxu0 }
0x1353   : > { %4034 = vmatprep.subr.mxu1 %v2906_v49 }
0x1354   : > { %4035 = vmatpush3.msra.mxu1 %v2906_v49  ;;  %v3051_v55 = vpop.f32.mrf.mxu0 }
0x1355   : > { %4036 = vmatprep.subr.mxu1 %v2905_v57 }
0x1356   : > { %4037 = vmatpush3.msra.mxu1 %v2905_v57  ;;  %v4053_v0 = vpop.f32.mrf.mxu0 }
0x1357   : > { %4038 = vmatprep.subr.mxu1 %v2904_v59 }
0x1358   : > { %4039 = vmatpush3.msra.mxu1 %v2904_v59  ;;  %v3054_v4 = vpop.f32.mrf.mxu0 }
0x1359   : > { %4041 = vmatmul.mubr.msk.f32.vlgmr.msra.gmra.mxu1 %vm571_vm1, %v4623_v2  ;;  %4054 = vmatprep.subr.mxu1 %v4053_v0 }
0x135a   : > { %4043 = vmatprep.mubr.msk.f32.mxu1 %vm571_vm1, %v4619_v1  ;;  %4055 = vmatpush3.msra.mxu1 %v4053_v0  ;;  %v4120_v1 = vpop.eup %4119 }
0x135b   : > { %4056 = vmatprep.subr.mxu1 %v4052_v52  ;;  %v4122_v54 = vpop.eup %4121  ;;  %v615_v10 = vmul.f32 %v4120_v1, %v4379_v16 }
0x135c   : > { %4057 = vmatpush3.msra.mxu1 %v4052_v52  ;;  %v614_v24 = vmul.f32 %v4122_v54, %v4371_v9 }
0x135d   : > { %4044 = vmatmul.mubr.msk.f32.gmra.mxu1 %vm571_vm1, %v4617_v62  ;;  %4058 = vmatprep.subr.mxu1 %v3054_v4 }
0x135e   : > { %4059 = vmatpush3.msra.mxu1 %v3054_v4  ;;  %v3164_v61 = vpack.c.bf16 %v615_v10, %v614_v24 }
0x135f   : > { %4060 = vmatprep.subr.mxu1 %v3051_v55 }
0x1360   : > { %4061 = vmatpush3.msra.mxu1 %v3051_v55 }
0x1419   : > { %v4042_v37 = vpop.f32.mrf.mxu1 }
0x141a   : > { %v3006_v13 = vmul.f32 0.25, %v4042_v37 }
0x141b   : > { %v2986_v39 = vpop.f32.mrf.mxu1 }
0x141c   : > { %v3005_v5 = vmul.f32 0.25, %v2986_v39 }
0x141d   : > { %v4045_v51 = vpop.f32.mrf.mxu1 }
0x141e   : > { %4062 = vmatprep.mubr.msk.f32.mxu1 %vm571_vm1, %v3005_v5  ;;  %v3008_v42 = vmul.f32 0.25, %v4045_v51 }
0x141f   : > { %v2996_v41 = vpop.f32.mrf.mxu1  ;;  %4063 = vmatmul.mubr.msk.f32.vlgmr.msra.gmra.mxu1 %vm571_vm1, %v3006_v13 }
0x1420   : > { %v3007_v40 = vmul.f32 0.25, %v2996_v41 }
0x1422   : > { %4065 = vmatprep.mubr.msk.f32.mxu1 %vm571_vm1, %v3007_v40 }
0x1423   : > { %4066 = vmatmul.mubr.msk.f32.gmra.mxu1 %vm571_vm1, %v3008_v42 }
0x14df   : > { %v4064_v56 = vpop.f32.mrf.mxu1 }
0x14e1   : > { %v3144_v58 = vpop.f32.mrf.mxu1 }
0x14e2   : > { %v3165_v2 = vpack.c.bf16 %v4064_v56, %v3144_v58 }
0x14e3   : > { %v4067_v60 = vpop.f32.mrf.mxu1 }
0x14e5   : > { %v3154_v62 = vpop.f32.mrf.mxu1 }
0x14e6   : > { %v3166_v63 = vpack.c.bf16 %v4067_v60, %v3154_v62 }
0x14e8   : > { %4068 = vmatprep.subr.bf16.mxu0 %v3166_v63 }
0x14e9   : > { %4069 = vmatpush3.bf16.msra.mxu0 %v3166_v63 }
0x14ea   : > { %4070 = vmatprep.subr.bf16.mxu0 %v3165_v2 }
0x14ed   : > { %4071 = vmatpush3.bf16.msra.mxu0 %v3165_v2 }
0x14f0   : > { %4073 = vmatmul.mubr.msk.bf16.vlgmr.msra.gmra.mxu0 %vm571_vm1, %v3164_v61 }
0x15b0   : > { %v4074_v18 = vpop.f32.mrf.mxu0 }
0x15b1   : > { %3224 = vst.msk [vmem:[%s407_s16 + $0x10] sm:$0xff] %vm448_vm0, %v4074_v18 }
0x15b2   : > { %v3207_v20 = vpop.f32.mrf.mxu0 }
0x15b3   : > { %3222 = vst.msk [vmem:[%s407_s16] sm:$0xff] %vm448_vm0, %v3207_v20 }
0x15b4   : > { %v4075_v22 = vpop.f32.mrf.mxu0 }
0x15b5   : > { %3225 = vst.msk [vmem:[%s407_s16 + $0x18] sm:$0xff] %vm448_vm0, %v4075_v22 }
0x15b6   : > { %v3210_v16 = vpop.f32.mrf.mxu0 }
0x15b7   : > { %3223 = vst.msk [vmem:[%s407_s16 + $0x8] sm:$0xff] %vm448_vm0, %v3210_v16 }
0x15b8 PF: > { %s20_s29 = sadd.s32 1, %s4133_s29  }
0x15b9   : > { %p17_p4 = scmp.ge.s32.totalorder %s20_s29, 18  }
0x15bb   :  { %19 = sbr.rel (!%p17_p4) target bundleno = 3 (0x3), region = 97 }

// kernel: transmil_forward.27
= control target key start
LH: loop header
LB: loop body
LE: loop exit
PB: predicated region body
PF: predicated region fallthrough
CT: control target
= control target key end

     0   :  { %v107_v0 = vmov 0.0   ;;  %vm108_vm0 = vmmov 0   ;;  %vm36_vm1 = vcmask 523264   ;;  %vm80_vm2 = vcmask 9216   ;;  %s162_s1 = inlined_call_operand.vmem [shape: f32[64,2], index: 1, kind: input, shape index: {}]   ;;  %s163_s0 = inlined_call_operand.vmem [shape: f32[2,64], index: 0, kind: input, shape index: {}]   ;;  %s164_s2 = inlined_call_operand.vmem [shape: f32[1,2], index: 2, kind: input, shape index: {}]   ;;  %s165_s3 = inlined_call_operand.vmem [shape: f32[2,2], index: 3, kind: output, shape index: {}]  }
   0x1   :  { %93 = vmatprep.subr.bf16.mxu0 %v107_v0  ;;  %v23_v1 = vld [vmem:[%s162_s1 + $0x30] sm:$0xff]  ;;  %v24_v2 = vld [vmem:[%s162_s1 + $0x38] sm:$0xff]  ;;  %v21_v3 = vld [vmem:[%s162_s1 + $0x20] sm:$0xff]  ;;  %101 = vmatprep.mubr.msk.bf16.mxu0 %vm108_vm0, %v107_v0 }
   0x2   :  { %v28_v4 = vpack.c.bf16 %v24_v2, %v23_v1  ;;  %v22_v5 = vld [vmem:[%s162_s1 + $0x28] sm:$0xff]  ;;  %v19_v7 = vld [vmem:[%s162_s1 + $0x10] sm:$0xff]  ;;  %v20_v8 = vld [vmem:[%s162_s1 + $0x18] sm:$0xff] }
   0x3   :  { %v27_v6 = vpack.c.bf16 %v22_v5, %v21_v3  ;;  %v26_v9 = vpack.c.bf16 %v20_v8, %v19_v7  ;;  %v17_v10 = vld [vmem:[%s162_s1] sm:$0xff]  ;;  %v18_v11 = vld [vmem:[%s162_s1 + $0x8] sm:$0xff] }
   0x4   :  { %94 = vmatpush3.bf16.msra.mxu0 %v28_v4  ;;  %v25_v12 = vpack.c.bf16 %v18_v11, %v17_v10  ;;  %v15_v13 = vld [vmem:[%s163_s0] sm:$0x3] }
   0x5   :  { %95 = vmatprep.subr.bf16.mxu0 %v107_v0  ;;  %v16_v14 = vpack.c.bf16 %v15_v13, %v15_v13  ;;  %v86_v15 = vld [vmem:[%s164_s2] ss:$0 sm:$0xff] }
   0x8   :  { %96 = vmatpush3.bf16.msra.mxu0 %v27_v6 }
   0x9   :  { %97 = vmatprep.subr.bf16.mxu0 %v107_v0 }
   0xc   :  { %98 = vmatpush3.bf16.msra.mxu0 %v26_v9 }
   0xd   :  { %99 = vmatprep.subr.bf16.mxu0 %v107_v0 }
  0x10   :  { %100 = vmatpush3.bf16.msra.mxu0 %v25_v12 }
  0x13   :  { %102 = vmatmul.mubr.msk.bf16.vlgmr.msra.gmra.mxu0 %vm36_vm1, %v16_v14 }
  0xd3   :  { %v74_v16 = vpop.f32.mrf.mxu0 }
  0xd4   :  { %v75_v17 = vadd.f32 %v86_v15, %v74_v16 }
  0xd5   :  { %v103_v18 = vpop.f32.mrf.mxu0 }
  0xd6   :  { %81 = vst.msk [vmem:[%s165_s3] sm:$0x3] %vm80_vm2, %v75_v17 }
  0xd7   :  { %v77_v19 = vpop.f32.mrf.mxu0 }
  0xd9   :  { %v104_v20 = vpop.f32.mrf.mxu0 }

// kernel: transmil_forward.20
= control target key start
LH: loop header
LB: loop body
LE: loop exit
PB: predicated region body
PF: predicated region fallthrough
CT: control target
= control target key end

     0   :  { %v57_v0 = vlaneseq  ;;  %vm265_vm0 = vcmask 1041408   ;;  %vm1773_vm1 = vcmask 518144   ;;  %s2556_s1 = inlined_call_operand.vmem [shape: f32[7,7,64], index: 1, kind: input, shape index: {}]   ;;  %s2557_s0 = inlined_call_operand.vmem [shape: f32[2,9,9,64], index: 0, kind: input, shape index: {}]   ;;  %s2558_s2 = inlined_call_operand.vmem [shape: f32[1,1,1,64], index: 2, kind: input, shape index: {}]   ;;  %s2559_s3 = inlined_call_operand.vmem [shape: f32[2,3,3,64], index: 3, kind: output, shape index: {}]  }
   0x1   :  { %v50_v9 = vld [vmem:[%s2556_s1] sm:$0x7f]  ;;  %v1825_v10 = vld [vmem:[%s2556_s1 + $0x8] sm:$0x7f]  ;;  %v1835_v12 = vld [vmem:[%s2557_s0 + $0x10] sm:$0xff] }
   0x2   :  { %v58_v1 = vshrl.u32 %v57_v0, 7  ;;  %v1830_v11 = vld [vmem:[%s2557_s0] sm:$0xff]  ;;  %v1849_v18 = vld [vmem:[%s2557_s0 + $0x90] sm:$0xff] }
   0x3   :  { %v1840_v13 = vld [vmem:[%s2557_s0 + $0x20] sm:$0xff]  ;;  %v1859_v20 = vld [vmem:[%s2557_s0 + $0xb0] sm:$0xff] }
   0x4   :  { %v1805_v2 = vsub.s32 0, %v58_v1  ;;  %v1807_v3 = vsub.s32 1, %v58_v1  ;;  %v1809_v4 = vsub.s32 2, %v58_v1  ;;  %v1811_v5 = vsub.s32 3, %v58_v1  ;;  %v1854_v19 = vld [vmem:[%s2557_s0 + $0xa0] sm:$0xff] }
   0x5   :  { %v1813_v6 = vsub.s32 4, %v58_v1  ;;  %v1815_v7 = vsub.s32 5, %v58_v1  ;;  %v1817_v8 = vsub.s32 6, %v58_v1 }
   0x6   :  { %v60_v14 = vrot.slane %v50_v9, %v1805_v2  ;;  %v70_v15 = vrot.slane %v50_v9, %v1807_v3  ;;  %v104_v16 = vrot.slane %v50_v9, %v1809_v4  ;;  %v138_v17 = vrot.slane %v50_v9, %v1811_v5 }
   0x7   :  { %v1862_v21 = vrot.slane %v50_v9, %v1813_v6  ;;  %v1865_v22 = vrot.slane %v50_v9, %v1815_v7  ;;  %v1868_v23 = vrot.slane %v50_v9, %v1817_v8  ;;  %v1872_v24 = vrot.slane %v1825_v10, %v1805_v2 }
   0x8   :  { %v61_v25 = vmul.f32 %v60_v14, %v1830_v11  ;;  %v62_v26 = vmul.f32 %v60_v14, %v1835_v12  ;;  %v63_v27 = vmul.f32 %v60_v14, %v1840_v13  ;;  %v64_v28 = vmul.f32 %v60_v14, %v1849_v18 }
   0x9   :  { %v65_v29 = vmul.f32 %v60_v14, %v1854_v19  ;;  %v66_v30 = vmul.f32 %v60_v14, %v1859_v20  ;;  %v71_v31 = vmul.f32 %v70_v15, %v1830_v11  ;;  %v72_v32 = vmul.f32 %v70_v15, %v1835_v12 }
   0xa   :  { %v73_v33 = vmul.f32 %v70_v15, %v1840_v13  ;;  %v74_v34 = vmul.f32 %v70_v15, %v1849_v18  ;;  %v75_v35 = vmul.f32 %v70_v15, %v1854_v19  ;;  %v76_v36 = vmul.f32 %v70_v15, %v1859_v20 }
   0xb   :  { %v83_v37 = vrot.slane %v71_v31, 1  ;;  %v84_v38 = vrot.slane %v72_v32, 1  ;;  %v105_v39 = vmul.f32 %v104_v16, %v1830_v11  ;;  %v106_v40 = vmul.f32 %v104_v16, %v1835_v12 }
   0xc   :  { %v85_v41 = vrot.slane %v73_v33, 1  ;;  %v86_v42 = vrot.slane %v74_v34, 1  ;;  %v87_v43 = vrot.slane %v75_v35, 1  ;;  %v88_v44 = vrot.slane %v76_v36, 1 }
   0xd   :  { %v95_v45 = vadd.f32 %v83_v37, %v61_v25  ;;  %v96_v46 = vadd.f32 %v84_v38, %v62_v26  ;;  %v107_v47 = vmul.f32 %v104_v16, %v1840_v13  ;;  %v108_v48 = vmul.f32 %v104_v16, %v1849_v18 }
   0xe   :  { %v97_v49 = vadd.f32 %v85_v41, %v63_v27  ;;  %v98_v50 = vadd.f32 %v86_v42, %v64_v28  ;;  %v99_v51 = vadd.f32 %v87_v43, %v65_v29  ;;  %v100_v52 = vadd.f32 %v88_v44, %v66_v30 }
   0xf   :  { %v109_v53 = vmul.f32 %v104_v16, %v1854_v19  ;;  %v110_v54 = vmul.f32 %v104_v16, %v1859_v20  ;;  %v117_v55 = vrot.slane %v105_v39, 2  ;;  %v118_v56 = vrot.slane %v106_v40, 2 }
  0x10   :  { %v119_v57 = vrot.slane %v107_v47, 2  ;;  %v120_v58 = vrot.slane %v108_v48, 2  ;;  %v139_v59 = vmul.f32 %v138_v17, %v1830_v11  ;;  %v140_v60 = vmul.f32 %v138_v17, %v1835_v12 }
  0x11   :  { %v121_v61 = vrot.slane %v109_v53, 2  ;;  %v122_v62 = vrot.slane %v110_v54, 2  ;;  %v129_v63 = vadd.f32 %v117_v55, %v95_v45  ;;  %v130_v0 = vadd.f32 %v118_v56, %v96_v46  ;;  %v15_v55 = vld [vmem:[%s2557_s0 + $0x8] sm:$0x1] }
  0x12   :  { %v131_v1 = vadd.f32 %v119_v57, %v97_v49  ;;  %v132_v9 = vadd.f32 %v120_v58, %v98_v50  ;;  %v141_v14 = vmul.f32 %v138_v17, %v1840_v13  ;;  %v142_v15 = vmul.f32 %v138_v17, %v1849_v18 }
  0x13   :  { %v133_v25 = vadd.f32 %v121_v61, %v99_v51  ;;  %v134_v16 = vadd.f32 %v122_v62, %v100_v52  ;;  %v143_v26 = vmul.f32 %v138_v17, %v1854_v19  ;;  %v144_v27 = vmul.f32 %v138_v17, %v1859_v20 }
  0x14   :  { %v151_v28 = vrot.slane %v139_v59, 3  ;;  %v152_v29 = vrot.slane %v140_v60, 3  ;;  %v153_v30 = vrot.slane %v141_v14, 3  ;;  %v154_v31 = vrot.slane %v142_v15, 3  ;;  %v1933_v15 = vld [vmem:[%s2557_s0 + $0x28] sm:$0x1] }
  0x15   :  { %v155_v32 = vrot.slane %v143_v26, 3  ;;  %v156_v33 = vrot.slane %v144_v27, 3  ;;  %v173_v34 = vmul.f32 %v1862_v21, %v1830_v11  ;;  %v174_v35 = vmul.f32 %v1862_v21, %v1835_v12 }
  0x16   :  { %v163_v36 = vadd.f32 %v151_v28, %v129_v63  ;;  %v164_v37 = vadd.f32 %v152_v29, %v130_v0  ;;  %v165_v38 = vadd.f32 %v153_v30, %v131_v1  ;;  %v166_v39 = vadd.f32 %v154_v31, %v132_v9  ;;  %v1928_v63 = vld [vmem:[%s2557_s0 + $0x18] sm:$0x1]  ;;  %v1944_v28 = vld [vmem:[%s2557_s0 + $0xa8] sm:$0x1] }
  0x17   :  { %v167_v40 = vadd.f32 %v155_v32, %v133_v25  ;;  %v168_v41 = vadd.f32 %v156_v33, %v134_v16  ;;  %v175_v17 = vmul.f32 %v1862_v21, %v1840_v13  ;;  %v176_v42 = vmul.f32 %v1862_v21, %v1849_v18  ;;  %v33_v25 = vld [vmem:[%s2557_s0 + $0x98] sm:$0x1] }
  0x18   :  { %v177_v43 = vmul.f32 %v1862_v21, %v1854_v19  ;;  %v178_v44 = vmul.f32 %v1862_v21, %v1859_v20  ;;  %v185_v45 = vrot.slane %v173_v34, 4  ;;  %v186_v46 = vrot.slane %v174_v35, 4  ;;  %v1949_v29 = vld [vmem:[%s2557_s0 + $0xb8] sm:$0x1] }
  0x19   :  { %v187_v47 = vrot.slane %v175_v17, 4  ;;  %v188_v48 = vrot.slane %v176_v42, 4  ;;  %v207_v49 = vmul.f32 %v1865_v22, %v1830_v11  ;;  %v208_v50 = vmul.f32 %v1865_v22, %v1835_v12 }
  0x1a   :  { %v189_v51 = vrot.slane %v177_v43, 4  ;;  %v190_v52 = vrot.slane %v178_v44, 4  ;;  %v197_v53 = vadd.f32 %v185_v45, %v163_v36  ;;  %v198_v54 = vadd.f32 %v186_v46, %v164_v37 }
  0x1b   :  { %v199_v21 = vadd.f32 %v187_v47, %v165_v38  ;;  %v200_v56 = vadd.f32 %v188_v48, %v166_v39  ;;  %v209_v57 = vmul.f32 %v1865_v22, %v1840_v13  ;;  %v210_v58 = vmul.f32 %v1865_v22, %v1849_v18 }
  0x1c   :  { %v201_v59 = vadd.f32 %v189_v51, %v167_v40  ;;  %v202_v60 = vadd.f32 %v190_v52, %v168_v41  ;;  %v211_v61 = vmul.f32 %v1865_v22, %v1854_v19  ;;  %v212_v62 = vmul.f32 %v1865_v22, %v1859_v20 }
  0x1d   :  { %v219_v0 = vrot.slane %v207_v49, 5  ;;  %v220_v1 = vrot.slane %v208_v50, 5  ;;  %v221_v9 = vrot.slane %v209_v57, 5  ;;  %v222_v14 = vrot.slane %v210_v58, 5  ;;  %v1982_v58 = vld [vmem:[%s2557_s0 + $0xc0] sm:$0xff] }
  0x1e   :  { %v223_v16 = vrot.slane %v211_v61, 5  ;;  %v224_v22 = vrot.slane %v212_v62, 5  ;;  %v241_v26 = vmul.f32 %v1868_v23, %v1830_v11  ;;  %v242_v27 = vmul.f32 %v1868_v23, %v15_v55  ;;  %v1975_v55 = vld [vmem:[%s2557_s0 + $0x30] sm:$0xff] }
  0x1f   :  { %v231_v30 = vadd.f32 %v219_v0, %v197_v53  ;;  %v232_v31 = vadd.f32 %v220_v1, %v198_v54  ;;  %v233_v32 = vadd.f32 %v221_v9, %v199_v21  ;;  %v234_v33 = vadd.f32 %v222_v14, %v200_v56 }
  0x20   :  { %v235_v34 = vadd.f32 %v223_v16, %v201_v59  ;;  %v236_v35 = vadd.f32 %v224_v22, %v202_v60  ;;  %v243_v11 = vmul.f32 %v1868_v23, %v1835_v12  ;;  %v244_v36 = vmul.f32 %v1868_v23, %v1928_v63 }
  0x21   :  { %v245_v37 = vmul.f32 %v1868_v23, %v1840_v13  ;;  %v246_v38 = vmul.f32 %v1868_v23, %v1933_v15  ;;  %v247_v39 = vmul.f32 %v1868_v23, %v1849_v18  ;;  %v248_v40 = vmul.f32 %v1868_v23, %v33_v25 }
  0x22   :  { %v249_v41 = vmul.f32 %v1868_v23, %v1854_v19  ;;  %v250_v17 = vmul.f32 %v1868_v23, %v1944_v28  ;;  %v251_v42 = vmul.f32 %v1868_v23, %v1859_v20  ;;  %v252_v43 = vmul.f32 %v1868_v23, %v1949_v29 }
  0x23   :  { %v266_v44 = vrot.slane %v241_v26, 6  ;;  %v267_v45 = vrot.slane %v242_v27, 6  ;;  %v269_v46 = vrot.slane %v243_v11, 6  ;;  %v270_v47 = vrot.slane %v244_v36, 6 }
  0x24   :  { %v272_v48 = vrot.slane %v245_v37, 6  ;;  %v273_v18 = vrot.slane %v246_v38, 6  ;;  %v275_v49 = vrot.slane %v247_v39, 6  ;;  %v276_v50 = vrot.slane %v248_v40, 6 }
  0x25   :  { %v268_v51 = vsel %vm265_vm0, %v266_v44, %v267_v45  ;;  %v271_v52 = vsel %vm265_vm0, %v269_v46, %v270_v47  ;;  %v278_v53 = vrot.slane %v249_v41, 6  ;;  %v279_v54 = vrot.slane %v250_v17, 6 }
  0x26   :  { %v274_v23 = vsel %vm265_vm0, %v272_v48, %v273_v18  ;;  %v277_v21 = vsel %vm265_vm0, %v275_v49, %v276_v50  ;;  %v281_v56 = vrot.slane %v251_v42, 6  ;;  %v282_v57 = vrot.slane %v252_v43, 6 }
  0x27   :  { %v280_v59 = vsel %vm265_vm0, %v278_v53, %v279_v54  ;;  %v290_v60 = vadd.f32 %v268_v51, %v231_v30  ;;  %v291_v61 = vadd.f32 %v271_v52, %v232_v31  ;;  %v292_v62 = vadd.f32 %v274_v23, %v233_v32 }
  0x28   :  { %v283_v0 = vsel %vm265_vm0, %v281_v56, %v282_v57  ;;  %v293_v1 = vadd.f32 %v277_v21, %v234_v33  ;;  %v294_v9 = vadd.f32 %v280_v59, %v235_v34  ;;  %v300_v14 = vmul.f32 %v1872_v24, %v1835_v12 }
  0x29   :  { %v295_v25 = vadd.f32 %v283_v0, %v236_v35  ;;  %v301_v16 = vmul.f32 %v1872_v24, %v1840_v13  ;;  %v302_v22 = vmul.f32 %v1872_v24, %v1975_v55  ;;  %v303_v26 = vmul.f32 %v1872_v24, %v1854_v19 }
  0x2a   :  { %v304_v27 = vmul.f32 %v1872_v24, %v1859_v20  ;;  %v305_v30 = vmul.f32 %v1872_v24, %v1982_v58  ;;  %v306_v31 = vadd.f32 %v300_v14, %v290_v60  ;;  %v315_v32 = vrot.slane %v1825_v10, %v1807_v3 }
  0x2b   :  { %v307_v33 = vadd.f32 %v301_v16, %v291_v61  ;;  %v308_v34 = vadd.f32 %v302_v22, %v292_v62  ;;  %v309_v35 = vadd.f32 %v303_v26, %v293_v1  ;;  %v349_v11 = vrot.slane %v1825_v10, %v1809_v4 }
  0x2c   :  { %v310_v36 = vadd.f32 %v304_v27, %v294_v9  ;;  %v311_v37 = vadd.f32 %v305_v30, %v295_v25  ;;  %v316_v38 = vmul.f32 %v315_v32, %v1835_v12  ;;  %v317_v39 = vmul.f32 %v315_v32, %v1840_v13 }
  0x2d   :  { %v318_v40 = vmul.f32 %v315_v32, %v1975_v55  ;;  %v319_v24 = vmul.f32 %v315_v32, %v1854_v19  ;;  %v320_v41 = vmul.f32 %v315_v32, %v1859_v20  ;;  %v321_v17 = vmul.f32 %v315_v32, %v1982_v58 }
  0x2e   :  { %v328_v42 = vrot.slane %v316_v38, 1  ;;  %v329_v43 = vrot.slane %v317_v39, 1  ;;  %v350_v44 = vmul.f32 %v349_v11, %v1835_v12  ;;  %v351_v45 = vmul.f32 %v349_v11, %v1840_v13 }
  0x2f   :  { %v330_v46 = vrot.slane %v318_v40, 1  ;;  %v331_v47 = vrot.slane %v319_v24, 1  ;;  %v332_v48 = vrot.slane %v320_v41, 1  ;;  %v333_v18 = vrot.slane %v321_v17, 1 }
  0x30   :  { %v340_v49 = vadd.f32 %v328_v42, %v306_v31  ;;  %v341_v50 = vadd.f32 %v329_v43, %v307_v33  ;;  %v352_v51 = vmul.f32 %v349_v11, %v1975_v55  ;;  %v353_v52 = vmul.f32 %v349_v11, %v1854_v19 }
  0x31   :  { %v342_v53 = vadd.f32 %v330_v46, %v308_v34  ;;  %v343_v54 = vadd.f32 %v331_v47, %v309_v35  ;;  %v344_v23 = vadd.f32 %v332_v48, %v310_v36  ;;  %v345_v21 = vadd.f32 %v333_v18, %v311_v37 }
  0x32   :  { %v354_v56 = vmul.f32 %v349_v11, %v1859_v20  ;;  %v355_v57 = vmul.f32 %v349_v11, %v1982_v58  ;;  %v362_v59 = vrot.slane %v350_v44, 2  ;;  %v363_v60 = vrot.slane %v351_v45, 2 }
  0x33   :  { %v364_v61 = vrot.slane %v352_v51, 2  ;;  %v365_v62 = vrot.slane %v353_v52, 2  ;;  %v383_v0 = vrot.slane %v1825_v10, %v1811_v5  ;;  %v417_v1 = vrot.slane %v1825_v10, %v1813_v6 }
  0x34   :  { %v366_v9 = vrot.slane %v354_v56, 2  ;;  %v367_v14 = vrot.slane %v355_v57, 2  ;;  %v374_v25 = vadd.f32 %v362_v59, %v340_v49  ;;  %v375_v16 = vadd.f32 %v363_v60, %v341_v50 }
  0x35   :  { %v376_v22 = vadd.f32 %v364_v61, %v342_v53  ;;  %v377_v26 = vadd.f32 %v365_v62, %v343_v54  ;;  %v384_v27 = vmul.f32 %v383_v0, %v1835_v12  ;;  %v385_v30 = vmul.f32 %v383_v0, %v1840_v13 }
  0x36   :  { %v378_v31 = vadd.f32 %v366_v9, %v344_v23  ;;  %v379_v32 = vadd.f32 %v367_v14, %v345_v21  ;;  %v386_v33 = vmul.f32 %v383_v0, %v1975_v55  ;;  %v387_v34 = vmul.f32 %v383_v0, %v1854_v19 }
  0x37   :  { %v388_v35 = vmul.f32 %v383_v0, %v1859_v20  ;;  %v389_v11 = vmul.f32 %v383_v0, %v1982_v58  ;;  %v396_v36 = vrot.slane %v384_v27, 3  ;;  %v397_v37 = vrot.slane %v385_v30, 3 }
  0x38   :  { %v398_v38 = vrot.slane %v386_v33, 3  ;;  %v399_v39 = vrot.slane %v387_v34, 3  ;;  %v418_v40 = vmul.f32 %v417_v1, %v1835_v12  ;;  %v419_v24 = vmul.f32 %v417_v1, %v1840_v13 }
  0x39   :  { %v400_v41 = vrot.slane %v388_v35, 3  ;;  %v401_v17 = vrot.slane %v389_v11, 3  ;;  %v408_v42 = vadd.f32 %v396_v36, %v374_v25  ;;  %v409_v43 = vadd.f32 %v397_v37, %v375_v16  ;;  %v2050_v36 = vld [vmem:[%s2557_s0 + $0xc8] sm:$0x1] }
  0x3a   :  { %v410_v44 = vadd.f32 %v398_v38, %v376_v22  ;;  %v411_v45 = vadd.f32 %v399_v39, %v377_v26  ;;  %v420_v46 = vmul.f32 %v417_v1, %v1975_v55  ;;  %v421_v47 = vmul.f32 %v417_v1, %v1854_v19 }
  0x3b   :  { %v412_v48 = vadd.f32 %v400_v41, %v378_v31  ;;  %v413_v18 = vadd.f32 %v401_v17, %v379_v32  ;;  %v422_v49 = vmul.f32 %v417_v1, %v1859_v20  ;;  %v423_v50 = vmul.f32 %v417_v1, %v1982_v58  ;;  %v2045_v32 = vld [vmem:[%s2557_s0 + $0x38] sm:$0x1] }
  0x3c   :  { %v430_v51 = vrot.slane %v418_v40, 4  ;;  %v431_v52 = vrot.slane %v419_v24, 4  ;;  %v432_v53 = vrot.slane %v420_v46, 4  ;;  %v433_v54 = vrot.slane %v421_v47, 4 }
  0x3d   :  { %v434_v23 = vrot.slane %v422_v49, 4  ;;  %v435_v21 = vrot.slane %v423_v50, 4  ;;  %v451_v56 = vrot.slane %v1825_v10, %v1815_v7  ;;  %v485_v57 = vrot.slane %v1825_v10, %v1817_v8 }
  0x3e   :  { %v442_v59 = vadd.f32 %v430_v51, %v408_v42  ;;  %v443_v60 = vadd.f32 %v431_v52, %v409_v43  ;;  %v444_v61 = vadd.f32 %v432_v53, %v410_v44  ;;  %v445_v62 = vadd.f32 %v433_v54, %v411_v45 }
  0x3f   :  { %v446_v0 = vadd.f32 %v434_v23, %v412_v48  ;;  %v447_v9 = vadd.f32 %v435_v21, %v413_v18  ;;  %v452_v1 = vmul.f32 %v451_v56, %v1835_v12  ;;  %v453_v14 = vmul.f32 %v451_v56, %v1840_v13 }
  0x40   :  { %v454_v25 = vmul.f32 %v451_v56, %v1975_v55  ;;  %v455_v16 = vmul.f32 %v451_v56, %v1854_v19  ;;  %v456_v22 = vmul.f32 %v451_v56, %v1859_v20  ;;  %v457_v26 = vmul.f32 %v451_v56, %v1982_v58 }
  0x41   :  { %v464_v27 = vrot.slane %v452_v1, 5  ;;  %v465_v10 = vrot.slane %v453_v14, 5  ;;  %v486_v30 = vmul.f32 %v485_v57, %v1835_v12  ;;  %v487_v31 = vmul.f32 %v485_v57, %v1928_v63 }
  0x42   :  { %v466_v33 = vrot.slane %v454_v25, 5  ;;  %v467_v34 = vrot.slane %v455_v16, 5  ;;  %v468_v35 = vrot.slane %v456_v22, 5  ;;  %v469_v11 = vrot.slane %v457_v26, 5  ;;  %v2080_v16 = vld [vmem:[%s2557_s0 + $0xd0] sm:$0xff] }
  0x43   :  { %v476_v37 = vadd.f32 %v464_v27, %v442_v59  ;;  %v477_v38 = vadd.f32 %v465_v10, %v443_v60  ;;  %v488_v12 = vmul.f32 %v485_v57, %v1840_v13  ;;  %v489_v63 = vmul.f32 %v485_v57, %v1933_v15 }
  0x44   :  { %v478_v39 = vadd.f32 %v466_v33, %v444_v61  ;;  %v479_v40 = vadd.f32 %v467_v34, %v445_v62  ;;  %v480_v24 = vadd.f32 %v468_v35, %v446_v0  ;;  %v481_v41 = vadd.f32 %v469_v11, %v447_v9  ;;  %v2074_v0 = vld [vmem:[%s2557_s0 + $0x40] sm:$0xff] }
  0x45   :  { %v490_v17 = vmul.f32 %v485_v57, %v1975_v55  ;;  %v491_v42 = vmul.f32 %v485_v57, %v2045_v32  ;;  %v492_v43 = vmul.f32 %v485_v57, %v1854_v19  ;;  %v493_v44 = vmul.f32 %v485_v57, %v1944_v28  ;;  %v2065_v19 = vld [vmem:[%s2556_s1 + $0x10] sm:$0x7f] }
  0x46   :  { %v494_v45 = vmul.f32 %v485_v57, %v1859_v20  ;;  %v495_v46 = vmul.f32 %v485_v57, %v1949_v29  ;;  %v496_v47 = vmul.f32 %v485_v57, %v1982_v58  ;;  %v497_v48 = vmul.f32 %v485_v57, %v2050_v36 }
  0x47   :  { %v510_v18 = vrot.slane %v486_v30, 6  ;;  %v511_v49 = vrot.slane %v487_v31, 6  ;;  %v513_v50 = vrot.slane %v488_v12, 6  ;;  %v514_v51 = vrot.slane %v489_v63, 6 }
  0x48   :  { %v516_v52 = vrot.slane %v490_v17, 6  ;;  %v517_v53 = vrot.slane %v491_v42, 6  ;;  %v519_v54 = vrot.slane %v492_v43, 6  ;;  %v520_v23 = vrot.slane %v493_v44, 6 }
  0x49   :  { %v512_v28 = vsel %vm265_vm0, %v510_v18, %v511_v49  ;;  %v515_v21 = vsel %vm265_vm0, %v513_v50, %v514_v51  ;;  %v522_v56 = vrot.slane %v494_v45, 6  ;;  %v523_v59 = vrot.slane %v495_v46, 6 }
  0x4a   :  { %v518_v57 = vsel %vm265_vm0, %v516_v52, %v517_v53  ;;  %v521_v60 = vsel %vm265_vm0, %v519_v54, %v520_v23  ;;  %v525_v61 = vrot.slane %v496_v47, 6  ;;  %v526_v62 = vrot.slane %v497_v48, 6 }
  0x4b   :  { %v524_v9 = vsel %vm265_vm0, %v522_v56, %v523_v59  ;;  %v534_v1 = vadd.f32 %v512_v28, %v476_v37  ;;  %v535_v14 = vadd.f32 %v515_v21, %v477_v38  ;;  %v536_v25 = vadd.f32 %v518_v57, %v478_v39 }
  0x4c   :  { %v527_v22 = vsel %vm265_vm0, %v525_v61, %v526_v62  ;;  %v537_v26 = vadd.f32 %v521_v60, %v479_v40  ;;  %v538_v27 = vadd.f32 %v524_v9, %v480_v24  ;;  %v543_v10 = vrot.slane %v2065_v19, %v1805_v2 }
  0x4d   :  { %v539_v30 = vadd.f32 %v527_v22, %v481_v41  ;;  %v559_v31 = vrot.slane %v2065_v19, %v1807_v3  ;;  %v593_v33 = vrot.slane %v2065_v19, %v1809_v4  ;;  %v627_v34 = vrot.slane %v2065_v19, %v1811_v5 }
  0x4e   :  { %v544_v35 = vmul.f32 %v543_v10, %v1840_v13  ;;  %v545_v11 = vmul.f32 %v543_v10, %v1975_v55  ;;  %v546_v37 = vmul.f32 %v543_v10, %v2074_v0  ;;  %v547_v38 = vmul.f32 %v543_v10, %v1859_v20 }
  0x4f   :  { %v548_v12 = vmul.f32 %v543_v10, %v1982_v58  ;;  %v549_v63 = vmul.f32 %v543_v10, %v2080_v16  ;;  %v560_v39 = vmul.f32 %v559_v31, %v1840_v13  ;;  %v561_v40 = vmul.f32 %v559_v31, %v1975_v55 }
  0x50   :  { %v550_v24 = vadd.f32 %v544_v35, %v534_v1  ;;  %v551_v41 = vadd.f32 %v545_v11, %v535_v14  ;;  %v552_v17 = vadd.f32 %v546_v37, %v536_v25  ;;  %v553_v42 = vadd.f32 %v547_v38, %v537_v26 }
  0x51   :  { %v554_v43 = vadd.f32 %v548_v12, %v538_v27  ;;  %v555_v44 = vadd.f32 %v549_v63, %v539_v30  ;;  %v562_v45 = vmul.f32 %v559_v31, %v2074_v0  ;;  %v563_v46 = vmul.f32 %v559_v31, %v1859_v20 }
  0x52   :  { %v564_v47 = vmul.f32 %v559_v31, %v1982_v58  ;;  %v565_v48 = vmul.f32 %v559_v31, %v2080_v16  ;;  %v572_v18 = vrot.slane %v560_v39, 1  ;;  %v573_v49 = vrot.slane %v561_v40, 1 }
  0x53   :  { %v574_v50 = vrot.slane %v562_v45, 1  ;;  %v575_v51 = vrot.slane %v563_v46, 1  ;;  %v594_v52 = vmul.f32 %v593_v33, %v1840_v13  ;;  %v595_v53 = vmul.f32 %v593_v33, %v1975_v55 }
  0x54   :  { %v576_v54 = vrot.slane %v564_v47, 1  ;;  %v577_v23 = vrot.slane %v565_v48, 1  ;;  %v584_v28 = vadd.f32 %v572_v18, %v550_v24  ;;  %v585_v21 = vadd.f32 %v573_v49, %v551_v41 }
  0x55   :  { %v586_v56 = vadd.f32 %v574_v50, %v552_v17  ;;  %v587_v59 = vadd.f32 %v575_v51, %v553_v42  ;;  %v596_v57 = vmul.f32 %v593_v33, %v2074_v0  ;;  %v597_v60 = vmul.f32 %v593_v33, %v1859_v20 }
  0x56   :  { %v588_v61 = vadd.f32 %v576_v54, %v554_v43  ;;  %v589_v62 = vadd.f32 %v577_v23, %v555_v44  ;;  %v598_v9 = vmul.f32 %v593_v33, %v1982_v58  ;;  %v599_v1 = vmul.f32 %v593_v33, %v2080_v16 }
  0x57   :  { %v606_v14 = vrot.slane %v594_v52, 2  ;;  %v607_v25 = vrot.slane %v595_v53, 2  ;;  %v608_v22 = vrot.slane %v596_v57, 2  ;;  %v609_v26 = vrot.slane %v597_v60, 2 }
  0x58   :  { %v610_v27 = vrot.slane %v598_v9, 2  ;;  %v611_v10 = vrot.slane %v599_v1, 2  ;;  %v628_v30 = vmul.f32 %v627_v34, %v1840_v13  ;;  %v629_v31 = vmul.f32 %v627_v34, %v1975_v55 }
  0x59   :  { %v618_v35 = vadd.f32 %v606_v14, %v584_v28  ;;  %v619_v11 = vadd.f32 %v607_v25, %v585_v21  ;;  %v620_v37 = vadd.f32 %v608_v22, %v586_v56  ;;  %v621_v38 = vadd.f32 %v609_v26, %v587_v59  ;;  %v2130_v22 = vld [vmem:[%s2556_s1 + $0x18] sm:$0x7f] }
  0x5a   :  { %v622_v12 = vadd.f32 %v610_v27, %v588_v61  ;;  %v623_v63 = vadd.f32 %v611_v10, %v589_v62  ;;  %v630_v39 = vmul.f32 %v627_v34, %v2074_v0  ;;  %v631_v33 = vmul.f32 %v627_v34, %v1859_v20 }
  0x5b   :  { %v632_v40 = vmul.f32 %v627_v34, %v1982_v58  ;;  %v633_v24 = vmul.f32 %v627_v34, %v2080_v16  ;;  %v640_v41 = vrot.slane %v628_v30, 3  ;;  %v641_v17 = vrot.slane %v629_v31, 3 }
  0x5c   :  { %v642_v42 = vrot.slane %v630_v39, 3  ;;  %v643_v43 = vrot.slane %v631_v33, 3  ;;  %v661_v44 = vrot.slane %v2065_v19, %v1813_v6  ;;  %v695_v45 = vrot.slane %v2065_v19, %v1815_v7  ;;  %v2139_v33 = vld [vmem:[%s2557_s0 + $0x48] sm:$0x1] }
  0x5d   :  { %v644_v46 = vrot.slane %v632_v40, 3  ;;  %v645_v47 = vrot.slane %v633_v24, 3  ;;  %v652_v48 = vadd.f32 %v640_v41, %v618_v35  ;;  %v653_v18 = vadd.f32 %v641_v17, %v619_v11 }
  0x5e   :  { %v654_v49 = vadd.f32 %v642_v42, %v620_v37  ;;  %v655_v50 = vadd.f32 %v643_v43, %v621_v38  ;;  %v662_v51 = vmul.f32 %v661_v44, %v1840_v13  ;;  %v663_v34 = vmul.f32 %v661_v44, %v1975_v55 }
  0x5f   :  { %v656_v52 = vadd.f32 %v644_v46, %v622_v12  ;;  %v657_v53 = vadd.f32 %v645_v47, %v623_v63  ;;  %v664_v54 = vmul.f32 %v661_v44, %v2074_v0  ;;  %v665_v23 = vmul.f32 %v661_v44, %v1859_v20  ;;  %v2148_v46 = vld [vmem:[%s2557_s0 + $0xd8] sm:$0x1] }
  0x60   :  { %v666_v28 = vmul.f32 %v661_v44, %v1982_v58  ;;  %v667_v21 = vmul.f32 %v661_v44, %v2080_v16  ;;  %v674_v56 = vrot.slane %v662_v51, 4  ;;  %v675_v59 = vrot.slane %v663_v34, 4 }
  0x61   :  { %v676_v57 = vrot.slane %v664_v54, 4  ;;  %v677_v60 = vrot.slane %v665_v23, 4  ;;  %v696_v61 = vmul.f32 %v695_v45, %v1840_v13  ;;  %v697_v62 = vmul.f32 %v695_v45, %v1975_v55 }
  0x62   :  { %v678_v9 = vrot.slane %v666_v28, 4  ;;  %v679_v1 = vrot.slane %v667_v21, 4  ;;  %v686_v14 = vadd.f32 %v674_v56, %v652_v48  ;;  %v687_v25 = vadd.f32 %v675_v59, %v653_v18 }
  0x63   :  { %v688_v26 = vadd.f32 %v676_v57, %v654_v49  ;;  %v689_v27 = vadd.f32 %v677_v60, %v655_v50  ;;  %v698_v10 = vmul.f32 %v695_v45, %v2074_v0  ;;  %v699_v30 = vmul.f32 %v695_v45, %v1859_v20 }
  0x64   :  { %v690_v31 = vadd.f32 %v678_v9, %v656_v52  ;;  %v691_v35 = vadd.f32 %v679_v1, %v657_v53  ;;  %v700_v11 = vmul.f32 %v695_v45, %v1982_v58  ;;  %v701_v37 = vmul.f32 %v695_v45, %v2080_v16 }
  0x65   :  { %v708_v38 = vrot.slane %v696_v61, 5  ;;  %v709_v12 = vrot.slane %v697_v62, 5  ;;  %v710_v63 = vrot.slane %v698_v10, 5  ;;  %v711_v39 = vrot.slane %v699_v30, 5 }
  0x66   :  { %v712_v40 = vrot.slane %v700_v11, 5  ;;  %v713_v24 = vrot.slane %v701_v37, 5  ;;  %v729_v41 = vrot.slane %v2065_v19, %v1817_v8  ;;  %v787_v17 = vrot.slane %v2130_v22, %v1805_v2 }
  0x67   :  { %v720_v42 = vadd.f32 %v708_v38, %v686_v14  ;;  %v721_v43 = vadd.f32 %v709_v12, %v687_v25  ;;  %v722_v44 = vadd.f32 %v710_v63, %v688_v26  ;;  %v723_v45 = vadd.f32 %v711_v39, %v689_v27  ;;  %v2173_v27 = vld [vmem:[%s2557_s0 + $0xe0] sm:$0xff] }
  0x68   :  { %v724_v47 = vadd.f32 %v712_v40, %v690_v31  ;;  %v725_v48 = vadd.f32 %v713_v24, %v691_v35  ;;  %v730_v18 = vmul.f32 %v729_v41, %v1840_v13  ;;  %v731_v49 = vmul.f32 %v729_v41, %v1933_v15 }
  0x69   :  { %v732_v19 = vmul.f32 %v729_v41, %v1975_v55  ;;  %v733_v50 = vmul.f32 %v729_v41, %v2045_v32  ;;  %v734_v51 = vmul.f32 %v729_v41, %v2074_v0  ;;  %v735_v34 = vmul.f32 %v729_v41, %v2139_v33 }
  0x6a   :  { %v736_v52 = vmul.f32 %v729_v41, %v1859_v20  ;;  %v737_v53 = vmul.f32 %v729_v41, %v1949_v29  ;;  %v738_v54 = vmul.f32 %v729_v41, %v1982_v58  ;;  %v739_v23 = vmul.f32 %v729_v41, %v2050_v36  ;;  %v2166_v29 = vld [vmem:[%s2557_s0 + $0x50] sm:$0xff] }
  0x6b   :  { %v740_v13 = vmul.f32 %v729_v41, %v2080_v16  ;;  %v741_v15 = vmul.f32 %v729_v41, %v2148_v46  ;;  %v754_v28 = vrot.slane %v730_v18, 6  ;;  %v755_v21 = vrot.slane %v731_v49, 6 }
  0x6c   :  { %v757_v56 = vrot.slane %v732_v19, 6  ;;  %v758_v59 = vrot.slane %v733_v50, 6  ;;  %v760_v57 = vrot.slane %v734_v51, 6  ;;  %v761_v60 = vrot.slane %v735_v34, 6 }
  0x6d   :  { %v756_v61 = vsel %vm265_vm0, %v754_v28, %v755_v21  ;;  %v763_v62 = vrot.slane %v736_v52, 6  ;;  %v764_v20 = vrot.slane %v737_v53, 6  ;;  %v766_v9 = vrot.slane %v738_v54, 6 }
  0x6e   :  { %v759_v1 = vsel %vm265_vm0, %v757_v56, %v758_v59  ;;  %v762_v14 = vsel %vm265_vm0, %v760_v57, %v761_v60  ;;  %v767_v25 = vrot.slane %v739_v23, 6  ;;  %v769_v26 = vrot.slane %v740_v13, 6 }
  0x6f   :  { %v765_v10 = vsel %vm265_vm0, %v763_v62, %v764_v20  ;;  %v770_v30 = vrot.slane %v741_v15, 6  ;;  %v778_v31 = vadd.f32 %v756_v61, %v720_v42  ;;  %v779_v35 = vadd.f32 %v759_v1, %v721_v43 }
  0x70   :  { %v768_v11 = vsel %vm265_vm0, %v766_v9, %v767_v25  ;;  %v780_v37 = vadd.f32 %v762_v14, %v722_v44  ;;  %v781_v38 = vadd.f32 %v765_v10, %v723_v45  ;;  %v788_v12 = vmul.f32 %v787_v17, %v1975_v55 }
  0x71   :  { %v771_v63 = vsel %vm265_vm0, %v769_v26, %v770_v30  ;;  %v782_v39 = vadd.f32 %v768_v11, %v724_v47  ;;  %v789_v40 = vmul.f32 %v787_v17, %v2074_v0  ;;  %v790_v24 = vmul.f32 %v787_v17, %v2166_v29 }
  0x72   :  { %v783_v41 = vadd.f32 %v771_v63, %v725_v48  ;;  %v791_v18 = vmul.f32 %v787_v17, %v1982_v58  ;;  %v792_v49 = vmul.f32 %v787_v17, %v2080_v16  ;;  %v793_v42 = vmul.f32 %v787_v17, %v2173_v27 }
  0x73   :  { %v794_v43 = vadd.f32 %v788_v12, %v778_v31  ;;  %v795_v19 = vadd.f32 %v789_v40, %v779_v35  ;;  %v796_v44 = vadd.f32 %v790_v24, %v780_v37  ;;  %v803_v45 = vrot.slane %v2130_v22, %v1807_v3 }
  0x74   :  { %v797_v50 = vadd.f32 %v791_v18, %v781_v38  ;;  %v798_v51 = vadd.f32 %v792_v49, %v782_v39  ;;  %v799_v47 = vadd.f32 %v793_v42, %v783_v41  ;;  %v837_v34 = vrot.slane %v2130_v22, %v1809_v4 }
  0x75   :  { %v804_v48 = vmul.f32 %v803_v45, %v1975_v55  ;;  %v805_v52 = vmul.f32 %v803_v45, %v2074_v0  ;;  %v806_v53 = vmul.f32 %v803_v45, %v2166_v29  ;;  %v807_v17 = vmul.f32 %v803_v45, %v1982_v58 }
  0x76   :  { %v808_v54 = vmul.f32 %v803_v45, %v2080_v16  ;;  %v809_v23 = vmul.f32 %v803_v45, %v2173_v27  ;;  %v838_v13 = vmul.f32 %v837_v34, %v1975_v55  ;;  %v839_v15 = vmul.f32 %v837_v34, %v2074_v0 }
  0x77   :  { %v816_v28 = vrot.slane %v804_v48, 1  ;;  %v817_v21 = vrot.slane %v805_v52, 1  ;;  %v818_v56 = vrot.slane %v806_v53, 1  ;;  %v819_v59 = vrot.slane %v807_v17, 1 }
  0x78   :  { %v820_v57 = vrot.slane %v808_v54, 1  ;;  %v821_v60 = vrot.slane %v809_v23, 1  ;;  %v840_v61 = vmul.f32 %v837_v34, %v2166_v29  ;;  %v841_v62 = vmul.f32 %v837_v34, %v1982_v58 }
  0x79   :  { %v828_v20 = vadd.f32 %v816_v28, %v794_v43  ;;  %v829_v9 = vadd.f32 %v817_v21, %v795_v19  ;;  %v830_v1 = vadd.f32 %v818_v56, %v796_v44  ;;  %v831_v14 = vadd.f32 %v819_v59, %v797_v50 }
  0x7a   :  { %v832_v25 = vadd.f32 %v820_v57, %v798_v51  ;;  %v833_v26 = vadd.f32 %v821_v60, %v799_v47  ;;  %v842_v10 = vmul.f32 %v837_v34, %v2080_v16  ;;  %v843_v30 = vmul.f32 %v837_v34, %v2173_v27 }
  0x7b   :  { %v850_v31 = vrot.slane %v838_v13, 2  ;;  %v851_v35 = vrot.slane %v839_v15, 2  ;;  %v852_v11 = vrot.slane %v840_v61, 2  ;;  %v853_v37 = vrot.slane %v841_v62, 2 }
  0x7c   :  { %v854_v38 = vrot.slane %v842_v10, 2  ;;  %v855_v12 = vrot.slane %v843_v30, 2  ;;  %v871_v63 = vrot.slane %v2130_v22, %v1811_v5  ;;  %v905_v39 = vrot.slane %v2130_v22, %v1813_v6 }
  0x7d   :  { %v862_v40 = vadd.f32 %v850_v31, %v828_v20  ;;  %v863_v24 = vadd.f32 %v851_v35, %v829_v9  ;;  %v864_v41 = vadd.f32 %v852_v11, %v830_v1  ;;  %v865_v18 = vadd.f32 %v853_v37, %v831_v14 }
  0x7e   :  { %v866_v49 = vadd.f32 %v854_v38, %v832_v25  ;;  %v867_v42 = vadd.f32 %v855_v12, %v833_v26  ;;  %v872_v43 = vmul.f32 %v871_v63, %v1975_v55  ;;  %v873_v19 = vmul.f32 %v871_v63, %v2074_v0 }
  0x7f   :  { %v874_v44 = vmul.f32 %v871_v63, %v2166_v29  ;;  %v875_v45 = vmul.f32 %v871_v63, %v1982_v58  ;;  %v876_v50 = vmul.f32 %v871_v63, %v2080_v16  ;;  %v877_v51 = vmul.f32 %v871_v63, %v2173_v27 }
  0x80   :  { %v884_v47 = vrot.slane %v872_v43, 3  ;;  %v885_v34 = vrot.slane %v873_v19, 3  ;;  %v906_v48 = vmul.f32 %v905_v39, %v1975_v55  ;;  %v907_v52 = vmul.f32 %v905_v39, %v2074_v0 }
  0x81   :  { %v886_v53 = vrot.slane %v874_v44, 3  ;;  %v887_v17 = vrot.slane %v875_v45, 3  ;;  %v888_v54 = vrot.slane %v876_v50, 3  ;;  %v889_v23 = vrot.slane %v877_v51, 3 }
  0x82   :  { %v896_v13 = vadd.f32 %v884_v47, %v862_v40  ;;  %v897_v15 = vadd.f32 %v885_v34, %v863_v24  ;;  %v908_v28 = vmul.f32 %v905_v39, %v2166_v29  ;;  %v909_v21 = vmul.f32 %v905_v39, %v1982_v58 }
  0x83   :  { %v898_v56 = vadd.f32 %v886_v53, %v864_v41  ;;  %v899_v59 = vadd.f32 %v887_v17, %v865_v18  ;;  %v900_v57 = vadd.f32 %v888_v54, %v866_v49  ;;  %v901_v60 = vadd.f32 %v889_v23, %v867_v42  ;;  %v2229_v42 = vld [vmem:[%s2557_s0 + $0x58] sm:$0x1] }
  0x84   :  { %v910_v61 = vmul.f32 %v905_v39, %v2080_v16  ;;  %v911_v62 = vmul.f32 %v905_v39, %v2173_v27  ;;  %v918_v20 = vrot.slane %v906_v48, 4  ;;  %v919_v9 = vrot.slane %v907_v52, 4  ;;  %v2236_v48 = vld [vmem:[%s2557_s0 + $0xe8] sm:$0x1] }
  0x85   :  { %v920_v1 = vrot.slane %v908_v28, 4  ;;  %v921_v14 = vrot.slane %v909_v21, 4  ;;  %v939_v25 = vrot.slane %v2130_v22, %v1815_v7  ;;  %v973_v26 = vrot.slane %v2130_v22, %v1817_v8 }
  0x86   :  { %v922_v10 = vrot.slane %v910_v61, 4  ;;  %v923_v30 = vrot.slane %v911_v62, 4  ;;  %v930_v31 = vadd.f32 %v918_v20, %v896_v13  ;;  %v931_v35 = vadd.f32 %v919_v9, %v897_v15 }
  0x87   :  { %v932_v11 = vadd.f32 %v920_v1, %v898_v56  ;;  %v933_v37 = vadd.f32 %v921_v14, %v899_v59  ;;  %v940_v38 = vmul.f32 %v939_v25, %v1975_v55  ;;  %v941_v12 = vmul.f32 %v939_v25, %v2074_v0 }
  0x88   :  { %v934_v63 = vadd.f32 %v922_v10, %v900_v57  ;;  %v935_v39 = vadd.f32 %v923_v30, %v901_v60  ;;  %v942_v40 = vmul.f32 %v939_v25, %v2166_v29  ;;  %v943_v24 = vmul.f32 %v939_v25, %v1982_v58 }
  0x89   :  { %v944_v41 = vmul.f32 %v939_v25, %v2080_v16  ;;  %v945_v22 = vmul.f32 %v939_v25, %v2173_v27  ;;  %v952_v18 = vrot.slane %v940_v38, 5  ;;  %v953_v49 = vrot.slane %v941_v12, 5 }
  0x8a   :  { %v954_v43 = vrot.slane %v942_v40, 5  ;;  %v955_v19 = vrot.slane %v943_v24, 5  ;;  %v974_v44 = vmul.f32 %v973_v26, %v1975_v55  ;;  %v975_v45 = vmul.f32 %v973_v26, %v2045_v32 }
  0x8b   :  { %v956_v50 = vrot.slane %v944_v41, 5  ;;  %v957_v51 = vrot.slane %v945_v22, 5  ;;  %v964_v47 = vadd.f32 %v952_v18, %v930_v31  ;;  %v965_v34 = vadd.f32 %v953_v49, %v931_v35 }
  0x8c   :  { %v966_v52 = vadd.f32 %v954_v43, %v932_v11  ;;  %v967_v53 = vadd.f32 %v955_v19, %v933_v37  ;;  %v976_v17 = vmul.f32 %v973_v26, %v2074_v0  ;;  %v977_v54 = vmul.f32 %v973_v26, %v2139_v33  ;;  %v2259_v11 = vld [vmem:[%s2557_s0 + $0x60] sm:$0xff] }
  0x8d   :  { %v968_v23 = vadd.f32 %v956_v50, %v934_v63  ;;  %v969_v13 = vadd.f32 %v957_v51, %v935_v39  ;;  %v978_v55 = vmul.f32 %v973_v26, %v2166_v29  ;;  %v979_v32 = vmul.f32 %v973_v26, %v2229_v42  ;;  %v2265_v39 = vld [vmem:[%s2557_s0 + $0xf0] sm:$0xff] }
  0x8e   :  { %v980_v15 = vmul.f32 %v973_v26, %v1982_v58  ;;  %v981_v28 = vmul.f32 %v973_v26, %v2050_v36  ;;  %v982_v21 = vmul.f32 %v973_v26, %v2080_v16  ;;  %v983_v56 = vmul.f32 %v973_v26, %v2148_v46  ;;  %v2251_v58 = vld [vmem:[%s2556_s1 + $0x20] sm:$0x7f] }
  0x8f   :  { %v984_v59 = vmul.f32 %v973_v26, %v2173_v27  ;;  %v985_v57 = vmul.f32 %v973_v26, %v2236_v48  ;;  %v998_v60 = vrot.slane %v974_v44, 6  ;;  %v999_v61 = vrot.slane %v975_v45, 6 }
  0x90   :  { %v1001_v62 = vrot.slane %v976_v17, 6  ;;  %v1002_v20 = vrot.slane %v977_v54, 6  ;;  %v1004_v9 = vrot.slane %v978_v55, 6  ;;  %v1005_v1 = vrot.slane %v979_v32, 6 }
  0x91   :  { %v1000_v36 = vsel %vm265_vm0, %v998_v60, %v999_v61  ;;  %v1007_v14 = vrot.slane %v980_v15, 6  ;;  %v1008_v25 = vrot.slane %v981_v28, 6  ;;  %v1010_v10 = vrot.slane %v982_v21, 6 }
  0x92   :  { %v1003_v30 = vsel %vm265_vm0, %v1001_v62, %v1002_v20  ;;  %v1006_v26 = vsel %vm265_vm0, %v1004_v9, %v1005_v1  ;;  %v1011_v31 = vrot.slane %v983_v56, 6  ;;  %v1013_v35 = vrot.slane %v984_v59, 6 }
  0x93   :  { %v1009_v37 = vsel %vm265_vm0, %v1007_v14, %v1008_v25  ;;  %v1014_v38 = vrot.slane %v985_v57, 6  ;;  %v1022_v12 = vadd.f32 %v1000_v36, %v964_v47  ;;  %v1023_v63 = vadd.f32 %v1003_v30, %v965_v34 }
  0x94   :  { %v1012_v40 = vsel %vm265_vm0, %v1010_v10, %v1011_v31  ;;  %v1024_v24 = vadd.f32 %v1006_v26, %v966_v52  ;;  %v1025_v41 = vadd.f32 %v1009_v37, %v967_v53  ;;  %v1031_v22 = vrot.slane %v2251_v58, %v1805_v2 }
  0x95   :  { %v1015_v18 = vsel %vm265_vm0, %v1013_v35, %v1014_v38  ;;  %v1026_v49 = vadd.f32 %v1012_v40, %v968_v23  ;;  %v1047_v43 = vrot.slane %v2251_v58, %v1807_v3  ;;  %v1081_v19 = vrot.slane %v2251_v58, %v1809_v4 }
  0x96   :  { %v1027_v44 = vadd.f32 %v1015_v18, %v969_v13  ;;  %v1032_v45 = vmul.f32 %v1031_v22, %v2074_v0  ;;  %v1033_v50 = vmul.f32 %v1031_v22, %v2166_v29  ;;  %v1034_v51 = vmul.f32 %v1031_v22, %v2259_v11 }
  0x97   :  { %v1035_v47 = vmul.f32 %v1031_v22, %v2080_v16  ;;  %v1036_v34 = vmul.f32 %v1031_v22, %v2173_v27  ;;  %v1037_v52 = vmul.f32 %v1031_v22, %v2265_v39  ;;  %v1048_v53 = vmul.f32 %v1047_v43, %v2074_v0 }
  0x98   :  { %v1038_v17 = vadd.f32 %v1032_v45, %v1022_v12  ;;  %v1039_v54 = vadd.f32 %v1033_v50, %v1023_v63  ;;  %v1040_v23 = vadd.f32 %v1034_v51, %v1024_v24  ;;  %v1049_v55 = vmul.f32 %v1047_v43, %v2166_v29 }
  0x99   :  { %v1041_v13 = vadd.f32 %v1035_v47, %v1025_v41  ;;  %v1042_v32 = vadd.f32 %v1036_v34, %v1026_v49  ;;  %v1043_v15 = vadd.f32 %v1037_v52, %v1027_v44  ;;  %v1050_v28 = vmul.f32 %v1047_v43, %v2259_v11 }
  0x9a   :  { %v1051_v21 = vmul.f32 %v1047_v43, %v2080_v16  ;;  %v1052_v56 = vmul.f32 %v1047_v43, %v2173_v27  ;;  %v1053_v59 = vmul.f32 %v1047_v43, %v2265_v39  ;;  %v1060_v57 = vrot.slane %v1048_v53, 1 }
  0x9b   :  { %v1061_v60 = vrot.slane %v1049_v55, 1  ;;  %v1062_v61 = vrot.slane %v1050_v28, 1  ;;  %v1082_v62 = vmul.f32 %v1081_v19, %v2074_v0  ;;  %v1083_v20 = vmul.f32 %v1081_v19, %v2166_v29 }
  0x9c   :  { %v1063_v9 = vrot.slane %v1051_v21, 1  ;;  %v1064_v1 = vrot.slane %v1052_v56, 1  ;;  %v1065_v36 = vrot.slane %v1053_v59, 1  ;;  %v1072_v14 = vadd.f32 %v1060_v57, %v1038_v17 }
  0x9d   :  { %v1073_v25 = vadd.f32 %v1061_v60, %v1039_v54  ;;  %v1074_v10 = vadd.f32 %v1062_v61, %v1040_v23  ;;  %v1084_v30 = vmul.f32 %v1081_v19, %v2259_v11  ;;  %v1085_v26 = vmul.f32 %v1081_v19, %v2080_v16 }
  0x9e   :  { %v1075_v31 = vadd.f32 %v1063_v9, %v1041_v13  ;;  %v1076_v35 = vadd.f32 %v1064_v1, %v1042_v32  ;;  %v1077_v37 = vadd.f32 %v1065_v36, %v1043_v15  ;;  %v1086_v38 = vmul.f32 %v1081_v19, %v2173_v27 }
  0x9f   :  { %v1087_v12 = vmul.f32 %v1081_v19, %v2265_v39  ;;  %v1094_v63 = vrot.slane %v1082_v62, 2  ;;  %v1095_v40 = vrot.slane %v1083_v20, 2  ;;  %v1096_v24 = vrot.slane %v1084_v30, 2 }
  0xa0   :  { %v1097_v41 = vrot.slane %v1085_v26, 2  ;;  %v1098_v22 = vrot.slane %v1086_v38, 2  ;;  %v1115_v18 = vrot.slane %v2251_v58, %v1811_v5  ;;  %v1149_v49 = vrot.slane %v2251_v58, %v1813_v6 }
  0xa1   :  { %v1099_v43 = vrot.slane %v1087_v12, 2  ;;  %v1106_v44 = vadd.f32 %v1094_v63, %v1072_v14  ;;  %v1107_v45 = vadd.f32 %v1095_v40, %v1073_v25  ;;  %v1108_v50 = vadd.f32 %v1096_v24, %v1074_v10 }
  0xa2   :  { %v1109_v51 = vadd.f32 %v1097_v41, %v1075_v31  ;;  %v1110_v47 = vadd.f32 %v1098_v22, %v1076_v35  ;;  %v1116_v34 = vmul.f32 %v1115_v18, %v2074_v0  ;;  %v1117_v19 = vmul.f32 %v1115_v18, %v2166_v29 }
  0xa3   :  { %v1111_v52 = vadd.f32 %v1099_v43, %v1077_v37  ;;  %v1118_v53 = vmul.f32 %v1115_v18, %v2259_v11  ;;  %v1119_v17 = vmul.f32 %v1115_v18, %v2080_v16  ;;  %v1120_v54 = vmul.f32 %v1115_v18, %v2173_v27 }
  0xa4   :  { %v1121_v23 = vmul.f32 %v1115_v18, %v2265_v39  ;;  %v1128_v55 = vrot.slane %v1116_v34, 3  ;;  %v1129_v13 = vrot.slane %v1117_v19, 3  ;;  %v1150_v32 = vmul.f32 %v1149_v49, %v2074_v0 }
  0xa5   :  { %v1130_v15 = vrot.slane %v1118_v53, 3  ;;  %v1131_v28 = vrot.slane %v1119_v17, 3  ;;  %v1132_v21 = vrot.slane %v1120_v54, 3  ;;  %v1151_v56 = vmul.f32 %v1149_v49, %v2166_v29  ;;  %v2324_v53 = vld [vmem:[%s2557_s0 + $0x68] sm:$0x1] }
  0xa6   :  { %v1133_v59 = vrot.slane %v1121_v23, 3  ;;  %v1140_v57 = vadd.f32 %v1128_v55, %v1106_v44  ;;  %v1141_v60 = vadd.f32 %v1129_v13, %v1107_v45  ;;  %v1152_v61 = vmul.f32 %v1149_v49, %v2259_v11  ;;  %v2329_v13 = vld [vmem:[%s2557_s0 + $0xf8] sm:$0x1] }
  0xa7   :  { %v1142_v62 = vadd.f32 %v1130_v15, %v1108_v50  ;;  %v1143_v20 = vadd.f32 %v1131_v28, %v1109_v51  ;;  %v1144_v9 = vadd.f32 %v1132_v21, %v1110_v47  ;;  %v1153_v1 = vmul.f32 %v1149_v49, %v2080_v16 }
  0xa8   :  { %v1145_v36 = vadd.f32 %v1133_v59, %v1111_v52  ;;  %v1154_v14 = vmul.f32 %v1149_v49, %v2173_v27  ;;  %v1155_v25 = vmul.f32 %v1149_v49, %v2265_v39  ;;  %v1162_v10 = vrot.slane %v1150_v32, 4 }
  0xa9   :  { %v1163_v30 = vrot.slane %v1151_v56, 4  ;;  %v1164_v26 = vrot.slane %v1152_v61, 4  ;;  %v1165_v31 = vrot.slane %v1153_v1, 4  ;;  %v1183_v35 = vrot.slane %v2251_v58, %v1815_v7 }
  0xaa   :  { %v1166_v37 = vrot.slane %v1154_v14, 4  ;;  %v1167_v38 = vrot.slane %v1155_v25, 4  ;;  %v1174_v12 = vadd.f32 %v1162_v10, %v1140_v57  ;;  %v1217_v63 = vrot.slane %v2251_v58, %v1817_v8 }
  0xab   :  { %v1175_v40 = vadd.f32 %v1163_v30, %v1141_v60  ;;  %v1176_v24 = vadd.f32 %v1164_v26, %v1142_v62  ;;  %v1177_v41 = vadd.f32 %v1165_v31, %v1143_v20  ;;  %v1184_v22 = vmul.f32 %v1183_v35, %v2074_v0 }
  0xac   :  { %v1178_v18 = vadd.f32 %v1166_v37, %v1144_v9  ;;  %v1179_v49 = vadd.f32 %v1167_v38, %v1145_v36  ;;  %v1185_v43 = vmul.f32 %v1183_v35, %v2166_v29  ;;  %v1186_v44 = vmul.f32 %v1183_v35, %v2259_v11 }
  0xad   :  { %v1187_v45 = vmul.f32 %v1183_v35, %v2080_v16  ;;  %v1188_v50 = vmul.f32 %v1183_v35, %v2173_v27  ;;  %v1189_v51 = vmul.f32 %v1183_v35, %v2265_v39  ;;  %v1196_v47 = vrot.slane %v1184_v22, 5 }
  0xae   :  { %v1197_v34 = vrot.slane %v1185_v43, 5  ;;  %v1198_v58 = vrot.slane %v1186_v44, 5  ;;  %v1218_v19 = vmul.f32 %v1217_v63, %v2074_v0  ;;  %v1219_v52 = vmul.f32 %v1217_v63, %v2139_v33 }
  0xaf   :  { %v1199_v17 = vrot.slane %v1187_v45, 5  ;;  %v1200_v54 = vrot.slane %v1188_v50, 5  ;;  %v1201_v23 = vrot.slane %v1189_v51, 5  ;;  %v1208_v55 = vadd.f32 %v1196_v47, %v1174_v12  ;;  %v2359_v50 = vld [vmem:[%s2557_s0 + $0x100] sm:$0xff] }
  0xb0   :  { %v1209_v32 = vadd.f32 %v1197_v34, %v1175_v40  ;;  %v1210_v15 = vadd.f32 %v1198_v58, %v1176_v24  ;;  %v1220_v0 = vmul.f32 %v1217_v63, %v2166_v29  ;;  %v1221_v33 = vmul.f32 %v1217_v63, %v2229_v42 }
  0xb1   :  { %v1211_v28 = vadd.f32 %v1199_v17, %v1177_v41  ;;  %v1212_v21 = vadd.f32 %v1200_v54, %v1178_v18  ;;  %v1213_v56 = vadd.f32 %v1201_v23, %v1179_v49  ;;  %v1222_v59 = vmul.f32 %v1217_v63, %v2259_v11  ;;  %v2353_v18 = vld [vmem:[%s2557_s0 + $0x70] sm:$0xff] }
  0xb2   :  { %v1223_v57 = vmul.f32 %v1217_v63, %v2324_v53  ;;  %v1224_v60 = vmul.f32 %v1217_v63, %v2080_v16  ;;  %v1225_v61 = vmul.f32 %v1217_v63, %v2148_v46  ;;  %v1226_v62 = vmul.f32 %v1217_v63, %v2173_v27  ;;  %v2344_v16 = vld [vmem:[%s2556_s1 + $0x28] sm:$0x7f] }
  0xb3   :  { %v1227_v20 = vmul.f32 %v1217_v63, %v2236_v48  ;;  %v1228_v9 = vmul.f32 %v1217_v63, %v2265_v39  ;;  %v1229_v1 = vmul.f32 %v1217_v63, %v2329_v13  ;;  %v1242_v36 = vrot.slane %v1218_v19, 6 }
  0xb4   :  { %v1243_v14 = vrot.slane %v1219_v52, 6  ;;  %v1245_v25 = vrot.slane %v1220_v0, 6  ;;  %v1246_v10 = vrot.slane %v1221_v33, 6  ;;  %v1248_v30 = vrot.slane %v1222_v59, 6 }
  0xb5   :  { %v1249_v26 = vrot.slane %v1223_v57, 6  ;;  %v1251_v31 = vrot.slane %v1224_v60, 6  ;;  %v1252_v35 = vrot.slane %v1225_v61, 6  ;;  %v1254_v37 = vrot.slane %v1226_v62, 6 }
  0xb6   :  { %v1244_v46 = vsel %vm265_vm0, %v1242_v36, %v1243_v14  ;;  %v1247_v38 = vsel %vm265_vm0, %v1245_v25, %v1246_v10  ;;  %v1255_v12 = vrot.slane %v1227_v20, 6  ;;  %v1257_v63 = vrot.slane %v1228_v9, 6 }
  0xb7   :  { %v1250_v40 = vsel %vm265_vm0, %v1248_v30, %v1249_v26  ;;  %v1253_v24 = vsel %vm265_vm0, %v1251_v31, %v1252_v35  ;;  %v1258_v41 = vrot.slane %v1229_v1, 6  ;;  %v1266_v22 = vadd.f32 %v1244_v46, %v1208_v55 }
  0xb8   :  { %v1256_v49 = vsel %vm265_vm0, %v1254_v37, %v1255_v12  ;;  %v1267_v43 = vadd.f32 %v1247_v38, %v1209_v32  ;;  %v1268_v44 = vadd.f32 %v1250_v40, %v1210_v15  ;;  %v1269_v45 = vadd.f32 %v1253_v24, %v1211_v28 }
  0xb9   :  { %v1259_v51 = vsel %vm265_vm0, %v1257_v63, %v1258_v41  ;;  %v1270_v47 = vadd.f32 %v1256_v49, %v1212_v21  ;;  %v1275_v34 = vrot.slane %v2344_v16, %v1805_v2  ;;  %v1291_v58 = vrot.slane %v2344_v16, %v1807_v3 }
  0xba   :  { %v1271_v19 = vadd.f32 %v1259_v51, %v1213_v56  ;;  %v1325_v52 = vrot.slane %v2344_v16, %v1809_v4  ;;  %v1359_v17 = vrot.slane %v2344_v16, %v1811_v5  ;;  %v2372_v54 = vrot.slane %v2344_v16, %v1813_v6 }
  0xbb   :  { %v1276_v23 = vmul.f32 %v1275_v34, %v2166_v29  ;;  %v1277_v55 = vmul.f32 %v1275_v34, %v2259_v11  ;;  %v1278_v32 = vmul.f32 %v1275_v34, %v2353_v18  ;;  %v1279_v15 = vmul.f32 %v1275_v34, %v2173_v27 }
  0xbc   :  { %v1280_v0 = vmul.f32 %v1275_v34, %v2265_v39  ;;  %v1281_v33 = vmul.f32 %v1275_v34, %v2359_v50  ;;  %v1292_v28 = vmul.f32 %v1291_v58, %v2166_v29  ;;  %v1293_v21 = vmul.f32 %v1291_v58, %v2259_v11 }
  0xbd   :  { %v1282_v56 = vadd.f32 %v1276_v23, %v1266_v22  ;;  %v1283_v59 = vadd.f32 %v1277_v55, %v1267_v43  ;;  %v1284_v57 = vadd.f32 %v1278_v32, %v1268_v44  ;;  %v1285_v60 = vadd.f32 %v1279_v15, %v1269_v45 }
  0xbe   :  { %v1286_v61 = vadd.f32 %v1280_v0, %v1270_v47  ;;  %v1287_v62 = vadd.f32 %v1281_v33, %v1271_v19  ;;  %v1294_v20 = vmul.f32 %v1291_v58, %v2353_v18  ;;  %v1295_v9 = vmul.f32 %v1291_v58, %v2173_v27 }
  0xbf   :  { %v1296_v1 = vmul.f32 %v1291_v58, %v2265_v39  ;;  %v1297_v36 = vmul.f32 %v1291_v58, %v2359_v50  ;;  %v1304_v14 = vrot.slane %v1292_v28, 1  ;;  %v1305_v25 = vrot.slane %v1293_v21, 1 }
  0xc0   :  { %v1306_v10 = vrot.slane %v1294_v20, 1  ;;  %v1307_v30 = vrot.slane %v1295_v9, 1  ;;  %v1326_v26 = vmul.f32 %v1325_v52, %v2166_v29  ;;  %v1327_v31 = vmul.f32 %v1325_v52, %v2259_v11 }
  0xc1   :  { %v1308_v35 = vrot.slane %v1296_v1, 1  ;;  %v1309_v37 = vrot.slane %v1297_v36, 1  ;;  %v1316_v46 = vadd.f32 %v1304_v14, %v1282_v56  ;;  %v1317_v38 = vadd.f32 %v1305_v25, %v1283_v59 }
  0xc2   :  { %v1318_v12 = vadd.f32 %v1306_v10, %v1284_v57  ;;  %v1319_v63 = vadd.f32 %v1307_v30, %v1285_v60  ;;  %v1328_v40 = vmul.f32 %v1325_v52, %v2353_v18  ;;  %v1329_v24 = vmul.f32 %v1325_v52, %v2173_v27 }
  0xc3   :  { %v1320_v41 = vadd.f32 %v1308_v35, %v1286_v61  ;;  %v1321_v22 = vadd.f32 %v1309_v37, %v1287_v62  ;;  %v1330_v49 = vmul.f32 %v1325_v52, %v2265_v39  ;;  %v1331_v43 = vmul.f32 %v1325_v52, %v2359_v50 }
  0xc4   :  { %v1338_v44 = vrot.slane %v1326_v26, 2  ;;  %v1339_v45 = vrot.slane %v1327_v31, 2  ;;  %v1340_v51 = vrot.slane %v1328_v40, 2  ;;  %v1341_v47 = vrot.slane %v1329_v24, 2 }
  0xc5   :  { %v1342_v34 = vrot.slane %v1330_v49, 2  ;;  %v1343_v58 = vrot.slane %v1331_v43, 2  ;;  %v1360_v19 = vmul.f32 %v1359_v17, %v2166_v29  ;;  %v1361_v23 = vmul.f32 %v1359_v17, %v2259_v11 }
  0xc6   :  { %v1350_v55 = vadd.f32 %v1338_v44, %v1316_v46  ;;  %v1351_v32 = vadd.f32 %v1339_v45, %v1317_v38  ;;  %v1352_v15 = vadd.f32 %v1340_v51, %v1318_v12  ;;  %v1353_v0 = vadd.f32 %v1341_v47, %v1319_v63 }
  0xc7   :  { %v1354_v33 = vadd.f32 %v1342_v34, %v1320_v41  ;;  %v1355_v28 = vadd.f32 %v1343_v58, %v1321_v22  ;;  %v1362_v21 = vmul.f32 %v1359_v17, %v2353_v18  ;;  %v1363_v52 = vmul.f32 %v1359_v17, %v2173_v27 }
  0xc8   :  { %v1364_v56 = vmul.f32 %v1359_v17, %v2265_v39  ;;  %v1365_v59 = vmul.f32 %v1359_v17, %v2359_v50  ;;  %v1372_v57 = vrot.slane %v1360_v19, 3  ;;  %v1373_v60 = vrot.slane %v1361_v23, 3 }
  0xc9   :  { %v1374_v61 = vrot.slane %v1362_v21, 3  ;;  %v1375_v62 = vrot.slane %v1363_v52, 3  ;;  %v1394_v20 = vmul.f32 %v2372_v54, %v2166_v29  ;;  %v1395_v9 = vmul.f32 %v2372_v54, %v2259_v11 }
  0xca   :  { %v1376_v1 = vrot.slane %v1364_v56, 3  ;;  %v1377_v36 = vrot.slane %v1365_v59, 3  ;;  %v1384_v14 = vadd.f32 %v1372_v57, %v1350_v55  ;;  %v1385_v25 = vadd.f32 %v1373_v60, %v1351_v32  ;;  %v2430_v57 = vld [vmem:[%s2557_s0 + $0x108] sm:$0x1] }
  0xcb   :  { %v1386_v10 = vadd.f32 %v1374_v61, %v1352_v15  ;;  %v1387_v30 = vadd.f32 %v1375_v62, %v1353_v0  ;;  %v1396_v26 = vmul.f32 %v2372_v54, %v2353_v18  ;;  %v1397_v17 = vmul.f32 %v2372_v54, %v2173_v27 }
  0xcc   :  { %v1388_v31 = vadd.f32 %v1376_v1, %v1354_v33  ;;  %v1389_v35 = vadd.f32 %v1377_v36, %v1355_v28  ;;  %v1398_v37 = vmul.f32 %v2372_v54, %v2265_v39  ;;  %v1399_v46 = vmul.f32 %v2372_v54, %v2359_v50  ;;  %v2425_v28 = vld [vmem:[%s2557_s0 + $0x78] sm:$0x1] }
  0xcd   :  { %v1406_v38 = vrot.slane %v1394_v20, 4  ;;  %v1407_v12 = vrot.slane %v1395_v9, 4  ;;  %v1408_v63 = vrot.slane %v1396_v26, 4  ;;  %v1409_v40 = vrot.slane %v1397_v17, 4 }
  0xce   :  { %v1410_v24 = vrot.slane %v1398_v37, 4  ;;  %v1411_v41 = vrot.slane %v1399_v46, 4  ;;  %v1427_v22 = vrot.slane %v2344_v16, %v1815_v7  ;;  %v1461_v49 = vrot.slane %v2344_v16, %v1817_v8 }
  0xcf   :  { %v1418_v43 = vadd.f32 %v1406_v38, %v1384_v14  ;;  %v1419_v44 = vadd.f32 %v1407_v12, %v1385_v25  ;;  %v1420_v45 = vadd.f32 %v1408_v63, %v1386_v10  ;;  %v1421_v51 = vadd.f32 %v1409_v40, %v1387_v30 }
  0xd0   :  { %v1422_v47 = vadd.f32 %v1410_v24, %v1388_v31  ;;  %v1423_v34 = vadd.f32 %v1411_v41, %v1389_v35  ;;  %v1428_v54 = vmul.f32 %v1427_v22, %v2166_v29  ;;  %v1429_v58 = vmul.f32 %v1427_v22, %v2259_v11 }
  0xd1   :  { %v1430_v19 = vmul.f32 %v1427_v22, %v2353_v18  ;;  %v1431_v23 = vmul.f32 %v1427_v22, %v2173_v27  ;;  %v1432_v55 = vmul.f32 %v1427_v22, %v2265_v39  ;;  %v1433_v32 = vmul.f32 %v1427_v22, %v2359_v50 }
  0xd2   :  { %v1440_v15 = vrot.slane %v1428_v54, 5  ;;  %v1441_v16 = vrot.slane %v1429_v58, 5  ;;  %v1462_v0 = vmul.f32 %v1461_v49, %v2166_v29  ;;  %v1463_v33 = vmul.f32 %v1461_v49, %v2229_v42 }
  0xd3   :  { %v1442_v21 = vrot.slane %v1430_v19, 5  ;;  %v1443_v52 = vrot.slane %v1431_v23, 5  ;;  %v1444_v56 = vrot.slane %v1432_v55, 5  ;;  %v1445_v59 = vrot.slane %v1433_v32, 5  ;;  %v2460_v23 = vld [vmem:[%s2557_s0 + $0x110] sm:$0xff] }
  0xd4   :  { %v1452_v60 = vadd.f32 %v1440_v15, %v1418_v43  ;;  %v1453_v61 = vadd.f32 %v1441_v16, %v1419_v44  ;;  %v1464_v29 = vmul.f32 %v1461_v49, %v2259_v11  ;;  %v1465_v42 = vmul.f32 %v1461_v49, %v2324_v53 }
  0xd5   :  { %v1454_v62 = vadd.f32 %v1442_v21, %v1420_v45  ;;  %v1455_v20 = vadd.f32 %v1443_v52, %v1421_v51  ;;  %v1456_v9 = vadd.f32 %v1444_v56, %v1422_v47  ;;  %v1457_v1 = vadd.f32 %v1445_v59, %v1423_v34  ;;  %v2454_v47 = vld [vmem:[%s2557_s0 + $0x80] sm:$0xff] }
  0xd6   :  { %v1466_v36 = vmul.f32 %v1461_v49, %v2353_v18  ;;  %v1467_v14 = vmul.f32 %v1461_v49, %v2425_v28  ;;  %v1468_v25 = vmul.f32 %v1461_v49, %v2173_v27  ;;  %v1469_v10 = vmul.f32 %v1461_v49, %v2236_v48  ;;  %v2445_v27 = vld [vmem:[%s2556_s1 + $0x30] sm:$0x7f] }
  0xd7   :  { %v1470_v30 = vmul.f32 %v1461_v49, %v2265_v39  ;;  %v1471_v26 = vmul.f32 %v1461_v49, %v2329_v13  ;;  %v1472_v17 = vmul.f32 %v1461_v49, %v2359_v50  ;;  %v1473_v31 = vmul.f32 %v1461_v49, %v2430_v57 }
  0xd8   :  { %v1486_v35 = vrot.slane %v1462_v0, 6  ;;  %v1487_v37 = vrot.slane %v1463_v33, 6  ;;  %v1489_v46 = vrot.slane %v1464_v29, 6  ;;  %v1490_v38 = vrot.slane %v1465_v42, 6 }
  0xd9   :  { %v1492_v12 = vrot.slane %v1466_v36, 6  ;;  %v1493_v63 = vrot.slane %v1467_v14, 6  ;;  %v1495_v40 = vrot.slane %v1468_v25, 6  ;;  %v1496_v24 = vrot.slane %v1469_v10, 6 }
  0xda   :  { %v1488_v48 = vsel %vm265_vm0, %v1486_v35, %v1487_v37  ;;  %v1491_v41 = vsel %vm265_vm0, %v1489_v46, %v1490_v38  ;;  %v1498_v22 = vrot.slane %v1470_v30, 6  ;;  %v1499_v43 = vrot.slane %v1471_v26, 6 }
  0xdb   :  { %v1494_v49 = vsel %vm265_vm0, %v1492_v12, %v1493_v63  ;;  %v1497_v44 = vsel %vm265_vm0, %v1495_v40, %v1496_v24  ;;  %v1501_v45 = vrot.slane %v1472_v17, 6  ;;  %v1502_v51 = vrot.slane %v1473_v31, 6 }
  0xdc   :  { %v1500_v34 = vsel %vm265_vm0, %v1498_v22, %v1499_v43  ;;  %v1510_v54 = vadd.f32 %v1488_v48, %v1452_v60  ;;  %v1511_v58 = vadd.f32 %v1491_v41, %v1453_v61  ;;  %v1512_v19 = vadd.f32 %v1494_v49, %v1454_v62 }
  0xdd   :  { %v1503_v55 = vsel %vm265_vm0, %v1501_v45, %v1502_v51  ;;  %v1513_v32 = vadd.f32 %v1497_v44, %v1455_v20  ;;  %v1514_v15 = vadd.f32 %v1500_v34, %v1456_v9  ;;  %v1519_v16 = vrot.slane %v2445_v27, %v1805_v2 }
  0xde   :  { %v1515_v0 = vadd.f32 %v1503_v55, %v1457_v1  ;;  %v1535_v33 = vrot.slane %v2445_v27, %v1807_v3  ;;  %v1569_v21 = vrot.slane %v2445_v27, %v1809_v4  ;;  %v1603_v52 = vrot.slane %v2445_v27, %v1811_v5 }
  0xdf   :  { %v1520_v56 = vmul.f32 %v1519_v16, %v2259_v11  ;;  %v1521_v59 = vmul.f32 %v1519_v16, %v2353_v18  ;;  %v1522_v60 = vmul.f32 %v1519_v16, %v2454_v47  ;;  %v1523_v61 = vmul.f32 %v1519_v16, %v2265_v39 }
  0xe0   :  { %v1524_v2 = vmul.f32 %v1519_v16, %v2359_v50  ;;  %v1525_v29 = vmul.f32 %v1519_v16, %v2460_v23  ;;  %v1536_v3 = vmul.f32 %v1535_v33, %v2259_v11  ;;  %v1537_v42 = vmul.f32 %v1535_v33, %v2353_v18 }
  0xe1   :  { %v1526_v4 = vadd.f32 %v1520_v56, %v1510_v54  ;;  %v1527_v62 = vadd.f32 %v1521_v59, %v1511_v58  ;;  %v1528_v20 = vadd.f32 %v1522_v60, %v1512_v19  ;;  %v1529_v5 = vadd.f32 %v1523_v61, %v1513_v32 }
  0xe2   :  { %v1530_v9 = vadd.f32 %v1524_v2, %v1514_v15  ;;  %v1531_v1 = vadd.f32 %v1525_v29, %v1515_v0  ;;  %v1538_v36 = vmul.f32 %v1535_v33, %v2454_v47  ;;  %v1539_v14 = vmul.f32 %v1535_v33, %v2265_v39 }
  0xe3   :  { %v1540_v25 = vmul.f32 %v1535_v33, %v2359_v50  ;;  %v1541_v10 = vmul.f32 %v1535_v33, %v2460_v23  ;;  %v1548_v30 = vrot.slane %v1536_v3, 1  ;;  %v1549_v26 = vrot.slane %v1537_v42, 1 }
  0xe4   :  { %v1550_v17 = vrot.slane %v1538_v36, 1  ;;  %v1551_v31 = vrot.slane %v1539_v14, 1  ;;  %v1570_v35 = vmul.f32 %v1569_v21, %v2259_v11  ;;  %v1571_v37 = vmul.f32 %v1569_v21, %v2353_v18 }
  0xe5   :  { %v1552_v46 = vrot.slane %v1540_v25, 1  ;;  %v1553_v38 = vrot.slane %v1541_v10, 1  ;;  %v1560_v12 = vadd.f32 %v1548_v30, %v1526_v4  ;;  %v1561_v63 = vadd.f32 %v1549_v26, %v1527_v62 }
  0xe6   :  { %v1562_v40 = vadd.f32 %v1550_v17, %v1528_v20  ;;  %v1563_v24 = vadd.f32 %v1551_v31, %v1529_v5  ;;  %v1572_v48 = vmul.f32 %v1569_v21, %v2454_v47  ;;  %v1573_v41 = vmul.f32 %v1569_v21, %v2265_v39 }
  0xe7   :  { %v1564_v22 = vadd.f32 %v1552_v46, %v1530_v9  ;;  %v1565_v43 = vadd.f32 %v1553_v38, %v1531_v1  ;;  %v1574_v49 = vmul.f32 %v1569_v21, %v2359_v50  ;;  %v1575_v44 = vmul.f32 %v1569_v21, %v2460_v23 }
  0xe8   :  { %v1582_v45 = vrot.slane %v1570_v35, 2  ;;  %v1583_v51 = vrot.slane %v1571_v37, 2  ;;  %v1584_v34 = vrot.slane %v1572_v48, 2  ;;  %v1585_v54 = vrot.slane %v1573_v41, 2 }
  0xe9   :  { %v1586_v58 = vrot.slane %v1574_v49, 2  ;;  %v1587_v19 = vrot.slane %v1575_v44, 2  ;;  %v1604_v55 = vmul.f32 %v1603_v52, %v2259_v11  ;;  %v1605_v32 = vmul.f32 %v1603_v52, %v2353_v18 }
  0xea   :  { %v1594_v15 = vadd.f32 %v1582_v45, %v1560_v12  ;;  %v1595_v16 = vadd.f32 %v1583_v51, %v1561_v63  ;;  %v1596_v0 = vadd.f32 %v1584_v34, %v1562_v40  ;;  %v1597_v33 = vadd.f32 %v1585_v54, %v1563_v24 }
  0xeb   :  { %v1598_v56 = vadd.f32 %v1586_v58, %v1564_v22  ;;  %v1599_v59 = vadd.f32 %v1587_v19, %v1565_v43  ;;  %v1606_v60 = vmul.f32 %v1603_v52, %v2454_v47  ;;  %v1607_v21 = vmul.f32 %v1603_v52, %v2265_v39 }
  0xec   :  { %v1608_v61 = vmul.f32 %v1603_v52, %v2359_v50  ;;  %v1609_v2 = vmul.f32 %v1603_v52, %v2460_v23  ;;  %v1616_v29 = vrot.slane %v1604_v55, 3  ;;  %v1617_v3 = vrot.slane %v1605_v32, 3 }
  0xed   :  { %v1618_v42 = vrot.slane %v1606_v60, 3  ;;  %v1619_v4 = vrot.slane %v1607_v21, 3  ;;  %v1637_v62 = vrot.slane %v2445_v27, %v1813_v6  ;;  %v1671_v20 = vrot.slane %v2445_v27, %v1815_v7 }
  0xee   :  { %v1620_v5 = vrot.slane %v1608_v61, 3  ;;  %v1621_v9 = vrot.slane %v1609_v2, 3  ;;  %v1628_v1 = vadd.f32 %v1616_v29, %v1594_v15  ;;  %v1629_v36 = vadd.f32 %v1617_v3, %v1595_v16  ;;  %v31_v15 = vld [vmem:[%s2557_s0 + $0x88] sm:$0x1]  ;;  %v49_v61 = vld [vmem:[%s2557_s0 + $0x118] sm:$0x1] }
  0xef   :  { %v1630_v14 = vadd.f32 %v1618_v42, %v1596_v0  ;;  %v1631_v25 = vadd.f32 %v1619_v4, %v1597_v33  ;;  %v1638_v10 = vmul.f32 %v1637_v62, %v2259_v11  ;;  %v1639_v52 = vmul.f32 %v1637_v62, %v2353_v18 }
  0xf0   :  { %v1632_v30 = vadd.f32 %v1620_v5, %v1598_v56  ;;  %v1633_v26 = vadd.f32 %v1621_v9, %v1599_v59  ;;  %v1640_v17 = vmul.f32 %v1637_v62, %v2454_v47  ;;  %v1641_v31 = vmul.f32 %v1637_v62, %v2265_v39 }
  0xf1   :  { %v1642_v6 = vmul.f32 %v1637_v62, %v2359_v50  ;;  %v1643_v7 = vmul.f32 %v1637_v62, %v2460_v23  ;;  %v1650_v35 = vrot.slane %v1638_v10, 4  ;;  %v1651_v37 = vrot.slane %v1639_v52, 4 }
  0xf2   :  { %v1652_v46 = vrot.slane %v1640_v17, 4  ;;  %v1653_v38 = vrot.slane %v1641_v31, 4  ;;  %v1672_v12 = vmul.f32 %v1671_v20, %v2259_v11  ;;  %v1673_v63 = vmul.f32 %v1671_v20, %v2353_v18 }
  0xf3   :  { %v1654_v40 = vrot.slane %v1642_v6, 4  ;;  %v1655_v24 = vrot.slane %v1643_v7, 4  ;;  %v1662_v48 = vadd.f32 %v1650_v35, %v1628_v1  ;;  %v1663_v41 = vadd.f32 %v1651_v37, %v1629_v36 }
  0xf4   :  { %v1664_v22 = vadd.f32 %v1652_v46, %v1630_v14  ;;  %v1665_v43 = vadd.f32 %v1653_v38, %v1631_v25  ;;  %v1674_v49 = vmul.f32 %v1671_v20, %v2454_v47  ;;  %v1675_v44 = vmul.f32 %v1671_v20, %v2265_v39 }
  0xf5   :  { %v1666_v45 = vadd.f32 %v1654_v40, %v1632_v30  ;;  %v1667_v51 = vadd.f32 %v1655_v24, %v1633_v26  ;;  %v1676_v34 = vmul.f32 %v1671_v20, %v2359_v50  ;;  %v1677_v54 = vmul.f32 %v1671_v20, %v2460_v23 }
  0xf6   :  { %v1684_v58 = vrot.slane %v1672_v12, 5  ;;  %v1685_v19 = vrot.slane %v1673_v63, 5  ;;  %v1686_v55 = vrot.slane %v1674_v49, 5  ;;  %v1687_v32 = vrot.slane %v1675_v44, 5 }
  0xf7   :  { %v1688_v16 = vrot.slane %v1676_v34, 5  ;;  %v1689_v0 = vrot.slane %v1677_v54, 5  ;;  %v1705_v33 = vrot.slane %v2445_v27, %v1817_v8 }
  0xf8   :  { %v1696_v56 = vadd.f32 %v1684_v58, %v1662_v48  ;;  %v1697_v59 = vadd.f32 %v1685_v19, %v1663_v41  ;;  %v1698_v60 = vadd.f32 %v1686_v55, %v1664_v22  ;;  %v1699_v21 = vadd.f32 %v1687_v32, %v1665_v43 }
  0xf9   :  { %v1700_v2 = vadd.f32 %v1688_v16, %v1666_v45  ;;  %v1701_v29 = vadd.f32 %v1689_v0, %v1667_v51  ;;  %v1706_v3 = vmul.f32 %v1705_v33, %v2259_v11  ;;  %v1707_v42 = vmul.f32 %v1705_v33, %v2324_v53 }
  0xfa   :  { %v1708_v4 = vmul.f32 %v1705_v33, %v2353_v18  ;;  %v1709_v62 = vmul.f32 %v1705_v33, %v2425_v28  ;;  %v1710_v8 = vmul.f32 %v1705_v33, %v2454_v47  ;;  %v1711_v27 = vmul.f32 %v1705_v33, %v31_v15 }
  0xfb   :  { %v1712_v20 = vmul.f32 %v1705_v33, %v2265_v39  ;;  %v1713_v5 = vmul.f32 %v1705_v33, %v2329_v13  ;;  %v1714_v9 = vmul.f32 %v1705_v33, %v2359_v50  ;;  %v1715_v1 = vmul.f32 %v1705_v33, %v2430_v57 }
  0xfc   :  { %v1716_v36 = vmul.f32 %v1705_v33, %v2460_v23  ;;  %v1717_v11 = vmul.f32 %v1705_v33, %v49_v61  ;;  %v1730_v14 = vrot.slane %v1706_v3, 6  ;;  %v1731_v53 = vrot.slane %v1707_v42, 6  ;;  %v1784_v23 = vld [vmem:[%s2558_s2] ss:$0 sm:$0xff] }
  0xfd   :  { %v1733_v25 = vrot.slane %v1708_v4, 6  ;;  %v1734_v18 = vrot.slane %v1709_v62, 6  ;;  %v1736_v10 = vrot.slane %v1710_v8, 6  ;;  %v1737_v28 = vrot.slane %v1711_v27, 6 }
  0xfe   :  { %v1732_v47 = vsel %vm265_vm0, %v1730_v14, %v1731_v53  ;;  %v1739_v52 = vrot.slane %v1712_v20, 6  ;;  %v1740_v30 = vrot.slane %v1713_v5, 6  ;;  %v1742_v39 = vrot.slane %v1714_v9, 6 }
  0xff   :  { %v1735_v13 = vsel %vm265_vm0, %v1733_v25, %v1734_v18  ;;  %v1738_v50 = vsel %vm265_vm0, %v1736_v10, %v1737_v28  ;;  %v1743_v26 = vrot.slane %v1715_v1, 6  ;;  %v1745_v57 = vrot.slane %v1716_v36, 6 }
 0x100   :  { %v1741_v17 = vsel %vm265_vm0, %v1739_v52, %v1740_v30  ;;  %v1746_v31 = vrot.slane %v1717_v11, 6  ;;  %v1754_v6 = vadd.f32 %v1732_v47, %v1696_v56  ;;  %v1755_v7 = vadd.f32 %v1735_v13, %v1697_v59 }
 0x101   :  { %v1744_v35 = vsel %vm265_vm0, %v1742_v39, %v1743_v26  ;;  %v1756_v37 = vadd.f32 %v1738_v50, %v1698_v60  ;;  %v1757_v46 = vadd.f32 %v1741_v17, %v1699_v21 }
 0x102   :  { %v1747_v38 = vsel %vm265_vm0, %v1745_v57, %v1746_v31  ;;  %v1758_v12 = vadd.f32 %v1744_v35, %v1700_v2  ;;  %v1767_v63 = vadd.f32 %v1784_v23, %v1754_v6  ;;  %v1768_v40 = vadd.f32 %v1784_v23, %v1755_v7 }
 0x103   :  { %v1759_v24 = vadd.f32 %v1747_v38, %v1701_v29  ;;  %v1769_v48 = vadd.f32 %v1784_v23, %v1756_v37  ;;  %v1770_v41 = vadd.f32 %v1784_v23, %v1757_v46 }
 0x104   :  { %v1771_v22 = vadd.f32 %v1784_v23, %v1758_v12  ;;  %1774 = vst.msk [vmem:[%s2559_s3] sm:$0x7] %vm1773_vm1, %v1767_v63  ;;  %1775 = vst.msk [vmem:[%s2559_s3 + $0x4] sm:$0x7] %vm1773_vm1, %v1768_v40 }
 0x105   :  { %v1772_v43 = vadd.f32 %v1784_v23, %v1759_v24  ;;  %1776 = vst.msk [vmem:[%s2559_s3 + $0x8] sm:$0x7] %vm1773_vm1, %v1769_v48  ;;  %1777 = vst.msk [vmem:[%s2559_s3 + $0xc] sm:$0x7] %vm1773_vm1, %v1770_v41 }
 0x106   :  { %1778 = vst.msk [vmem:[%s2559_s3 + $0x10] sm:$0x7] %vm1773_vm1, %v1771_v22 }
 0x107   :  { %1779 = vst.msk [vmem:[%s2559_s3 + $0x14] sm:$0x7] %vm1773_vm1, %v1772_v43 }

</bundles_post_ra>
